<compile_context>
chip_gen: v5e
topology: v5e:2x2
jax: 0.10.0
libtpu: 0.0.40
codegen_flags: <defaults>
</compile_context>

<pallas_src>
import functools
import math

import jax
import jax.numpy as jnp
from jax.experimental import pallas as pl
from jax.experimental.pallas import tpu as pltpu


# --------------------------------------------------------------------------
# helpers used *inside* kernels (operate on VMEM-resident values)
# --------------------------------------------------------------------------

def _layernorm(x, w, b, eps):
    """LayerNorm over the last dim, f32 math. x: (M,E); w,b: (1,E)."""
    mean = jnp.mean(x, axis=-1, keepdims=True)
    var = jnp.mean(jnp.square(x - mean), axis=-1, keepdims=True)
    return (x - mean) * jax.lax.rsqrt(var + eps) * w + b


def _mha(xq, xkv, bias, wq, wk, wv, bq, bk, bv, wo, bo, num_heads):
    """Head-batched multi-head attention, fully VMEM/vreg resident.

    xq: (L,E) bf16 query-side activations; xkv: (S,E) bf16 key/value side.
    bias: (L,S) additive f32 mask.  wq/wk/wv: (H,E,dh) bf16; bq/bk/bv: (H,1,dh)
    f32.  wo: (H,dh,E) bf16; bo: (1,E) f32.  Returns (L,E) f32.

    Every matmul is a single batched dot_general over all heads (no per-head
    Python loop, no unaligned lane slices).  Softmax math stays in f32.
    """
    H = num_heads
    L, E = xq.shape
    S = xkv.shape[0]
    dh = E // H
    scale = 1.0 / math.sqrt(dh)

    xq_h = jnp.broadcast_to(xq[None], (H, L, E))     # bf16
    xkv_h = jnp.broadcast_to(xkv[None], (H, S, E))   # bf16

    q = jnp.einsum("hle,hed->hld", xq_h, wq,
                   preferred_element_type=jnp.float32) + bq    # (H,L,dh) f32
    k = jnp.einsum("hse,hed->hsd", xkv_h, wk,
                   preferred_element_type=jnp.float32) + bk    # (H,S,dh) f32
    v = jnp.einsum("hse,hed->hsd", xkv_h, wv,
                   preferred_element_type=jnp.float32) + bv    # (H,S,dh) f32

    s = jnp.einsum("hld,hsd->hls", q.astype(jnp.bfloat16), k.astype(jnp.bfloat16),
                   preferred_element_type=jnp.float32)          # (H,L,S) f32
    s = s * scale + bias[None]
    s = s - jnp.max(s, axis=-1, keepdims=True)
    p = jnp.exp(s)
    p = p * pl.reciprocal(jnp.sum(p, axis=-1, keepdims=True), approx=True)

    o = jnp.einsum("hls,hsd->hld", p.astype(jnp.bfloat16), v.astype(jnp.bfloat16),
                   preferred_element_type=jnp.float32)          # (H,L,dh) f32

    # concat-heads @ Wo expressed as one head-batched matmul + head reduction
    proj = jnp.einsum("hld,hde->hle", o.astype(jnp.bfloat16), wo,
                      preferred_element_type=jnp.float32)       # (H,L,E) f32
    return jnp.sum(proj, axis=0) + bo


# --------------------------------------------------------------------------
# fused per-layer kernels
# --------------------------------------------------------------------------

def _encoder_layer_kernel(x_ref, am_ref, kp_ref,
                          wq_ref, wk_ref, wv_ref, bq_ref, bk_ref, bv_ref,
                          wo_ref, bo_ref,
                          ln1w_ref, ln1b_ref,
                          w1_ref, b1_ref, w2_ref, b2_ref,
                          ln2w_ref, ln2b_ref,
                          flnw_ref, flnb_ref,
                          o_ref, *, num_heads, eps, apply_final_ln):
    b = pl.program_id(0)
    x_bf = x_ref[0]                                      # (L, E) bf16
    x = x_bf.astype(jnp.float32)

    # attention bias built on-chip: (L,S) attn mask + this batch's padding row
    bias = am_ref[...] + kp_ref[pl.ds(b, 1), :]

    sa = _mha(x_bf, x_bf, bias,
              wq_ref[...], wk_ref[...], wv_ref[...],
              bq_ref[...], bk_ref[...], bv_ref[...],
              wo_ref[...], bo_ref[...], num_heads)
    h1 = _layernorm(x + sa, ln1w_ref[...], ln1b_ref[...], eps)

    ff = jnp.dot(h1.astype(jnp.bfloat16), w1_ref[...],
                 preferred_element_type=jnp.float32) + b1_ref[...]
    ff = jnp.maximum(ff, 0.0)
    ff = jnp.dot(ff.astype(jnp.bfloat16), w2_ref[...],
                 preferred_element_type=jnp.float32) + b2_ref[...]
    h2 = _layernorm(h1 + ff, ln2w_ref[...], ln2b_ref[...], eps)

    if apply_final_ln:   # final nn.TransformerEncoder norm fused into last layer
        h2 = _layernorm(h2, flnw_ref[...], flnb_ref[...], eps)

    o_ref[0] = h2.astype(o_ref.dtype)


def _decoder_layer_kernel(y_ref, mem_ref, tm_ref, mm_ref,
                          sa_wq_ref, sa_wk_ref, sa_wv_ref,
                          sa_bq_ref, sa_bk_ref, sa_bv_ref,
                          sa_wo_ref, sa_bo_ref,
                          ln1w_ref, ln1b_ref,
                          ca_wq_ref, ca_wk_ref, ca_wv_ref,
                          ca_bq_ref, ca_bk_ref, ca_bv_ref,
                          ca_wo_ref, ca_bo_ref,
                          ln2w_ref, ln2b_ref,
                          w1_ref, b1_ref, w2_ref, b2_ref,
                          ln3w_ref, ln3b_ref,
                          o_ref, *, num_heads, eps):
    y_bf = y_ref[0]                                      # (T, E) bf16
    m_bf = mem_ref[0]                                    # (S, E) bf16
    y = y_bf.astype(jnp.float32)

    # masked self-attention
    sa = _mha(y_bf, y_bf, tm_ref[...],
              sa_wq_ref[...], sa_wk_ref[...], sa_wv_ref[...],
              sa_bq_ref[...], sa_bk_ref[...], sa_bv_ref[...],
              sa_wo_ref[...], sa_bo_ref[...], num_heads)
    h1 = _layernorm(y + sa, ln1w_ref[...], ln1b_ref[...], eps)

    # cross-attention: Q from decoder state, K/V from encoder memory
    ca = _mha(h1.astype(jnp.bfloat16), m_bf, mm_ref[...],
              ca_wq_ref[...], ca_wk_ref[...], ca_wv_ref[...],
              ca_bq_ref[...], ca_bk_ref[...], ca_bv_ref[...],
              ca_wo_ref[...], ca_bo_ref[...], num_heads)
    h2 = _layernorm(h1 + ca, ln2w_ref[...], ln2b_ref[...], eps)

    # feed-forward
    ff = jnp.dot(h2.astype(jnp.bfloat16), w1_ref[...],
                 preferred_element_type=jnp.float32) + b1_ref[...]
    ff = jnp.maximum(ff, 0.0)
    ff = jnp.dot(ff.astype(jnp.bfloat16), w2_ref[...],
                 preferred_element_type=jnp.float32) + b2_ref[...]
    h3 = _layernorm(h2 + ff, ln3w_ref[...], ln3b_ref[...], eps)

    o_ref[0] = h3.astype(o_ref.dtype)


def _ln_linear_kernel(x_ref, lnw_ref, lnb_ref, w_ref, b_ref, o_ref, xn_ref, *, eps):
    """Fused final LayerNorm + vocab projection.

    Grid = (row tiles [parallel], vocab tiles [arbitrary, inner]).  The
    normalized row tile is computed once per row tile (first vocab tile) into
    a VMEM scratch and reused for every vocab tile.
    """
    @pl.when(pl.program_id(1) == 0)
    def _():
        x = x_ref[...].astype(jnp.float32)
        xn = _layernorm(x, lnw_ref[...], lnb_ref[...], eps)
        xn_ref[...] = xn.astype(xn_ref.dtype)

    o_ref[...] = (jnp.dot(xn_ref[...], w_ref[...],
                          preferred_element_type=jnp.float32)
                  + b_ref[...]).astype(o_ref.dtype)


# --------------------------------------------------------------------------
# pallas_call wrappers
# --------------------------------------------------------------------------

def _const_spec(a):
    """Full-array block, same block for every grid step (weights / masks)."""
    nd = a.ndim
    return pl.BlockSpec(a.shape, lambda b, _nd=nd: (0,) * _nd)


def _pick_tile(dim, target, align):
    """Largest aligned divisor of `dim` that is <= target.

    Never silently falls back to an oversized full dim: callers pad `dim` to a
    multiple of `align` (8 sublanes / 128 lanes) so an aligned divisor exists.
    """
    if dim <= target:
        return dim
    best = align
    t = align
    while t <= target:
        if dim % t == 0:
            best = t
        t += align
    assert dim % best == 0, (dim, target, align)
    return best


def _vmem_limit(args, margin_bytes=16 << 20):
    """Explicit scoped-VMEM budget sized from the operands (x2 for buffering)."""
    total = 0
    for a in args:
        total += int(math.prod(a.shape)) * jnp.dtype(a.dtype).itemsize
    total = 2 * total + margin_bytes
    return int(min(max(total, 32 << 20), 100 << 20))


def encoder_layer(p, x, attn_mask, key_pad, fln_w, fln_b, *,
                  num_heads, apply_final_ln):
    N, L, E = x.shape
    sa = p["self_attn"]
    args = (x, attn_mask, key_pad,
            sa["wq"], sa["wk"], sa["wv"], sa["bq"], sa["bk"], sa["bv"],
            sa["wo"], sa["bo"],
            p["ln1_w"], p["ln1_b"],
            p["w1"], p["b1"], p["w2"], p["b2"],
            p["ln2_w"], p["ln2_b"],
            fln_w, fln_b)
    in_specs = [pl.BlockSpec((1, L, E), lambda b: (b, 0, 0))]
    in_specs += [_const_spec(a) for a in args[1:]]
    return pl.pallas_call(
        functools.partial(_encoder_layer_kernel, num_heads=num_heads,
                          eps=1e-5, apply_final_ln=apply_final_ln),
        grid=(N,),
        in_specs=in_specs,
        out_specs=pl.BlockSpec((1, L, E), lambda b: (b, 0, 0)),
        out_shape=jax.ShapeDtypeStruct((N, L, E), jnp.bfloat16),
        compiler_params=pltpu.CompilerParams(
            dimension_semantics=("parallel",),
            vmem_limit_bytes=_vmem_limit(args)),
    )(*args)


def decoder_layer(p, y, memory, tgt_mask, mem_mask, *, num_heads):
    N, T, E = y.shape
    S = memory.shape[1]
    sa, ca = p["self_attn"], p["cross_attn"]
    args = (y, memory, tgt_mask, mem_mask,
            sa["wq"], sa["wk"], sa["wv"], sa["bq"], sa["bk"], sa["bv"],
            sa["wo"], sa["bo"],
            p["ln1_w"], p["ln1_b"],
            ca["wq"], ca["wk"], ca["wv"], ca["bq"], ca["bk"], ca["bv"],
            ca["wo"], ca["bo"],
            p["ln2_w"], p["ln2_b"],
            p["w1"], p["b1"], p["w2"], p["b2"],
            p["ln3_w"], p["ln3_b"])
    in_specs = [pl.BlockSpec((1, T, E), lambda b: (b, 0, 0)),
                pl.BlockSpec((1, S, E), lambda b: (b, 0, 0))]
    in_specs += [_const_spec(a) for a in args[2:]]
    return pl.pallas_call(
        functools.partial(_decoder_layer_kernel, num_heads=num_heads, eps=1e-5),
        grid=(N,),
        in_specs=in_specs,
        out_specs=pl.BlockSpec((1, T, E), lambda b: (b, 0, 0)),
        out_shape=jax.ShapeDtypeStruct((N, T, E), jnp.bfloat16),
        compiler_params=pltpu.CompilerParams(
            dimension_semantics=("parallel",),
            vmem_limit_bytes=_vmem_limit(args)),
    )(*args)


def ln_linear(x, lnw, lnb, w, b, eps=1e-5):
    """LayerNorm(x) @ w + b, tiled over (rows [parallel], vocab [arbitrary]).

    x:(M,E) bf16 (M multiple of 8); w:(E,Vp) bf16 (Vp multiple of 128); b:(1,Vp).
    """
    M, E = x.shape
    Vp = w.shape[1]
    tm = _pick_tile(M, 256, 8)
    tn = _pick_tile(Vp, 2048, 128)
    args = (x, lnw, lnb, w, b)
    return pl.pallas_call(
        functools.partial(_ln_linear_kernel, eps=eps),
        grid=(M // tm, Vp // tn),
        in_specs=[pl.BlockSpec((tm, E), lambda i, j: (i, 0)),
                  pl.BlockSpec((1, E), lambda i, j: (0, 0)),
                  pl.BlockSpec((1, E), lambda i, j: (0, 0)),
                  pl.BlockSpec((E, tn), lambda i, j: (0, j)),
                  pl.BlockSpec((1, tn), lambda i, j: (0, j))],
        out_specs=pl.BlockSpec((tm, tn), lambda i, j: (i, j)),
        out_shape=jax.ShapeDtypeStruct((M, Vp), jnp.float32),
        scratch_shapes=[pltpu.VMEM((tm, E), jnp.bfloat16)],
        compiler_params=pltpu.CompilerParams(
            dimension_semantics=("parallel", "arbitrary"),
            vmem_limit_bytes=_vmem_limit(args)),
    )(*args)


# --------------------------------------------------------------------------
# model forward
# --------------------------------------------------------------------------

def _to_additive(mask, shape):
    """Convert bool/float/None masks to a clamped additive f32 mask (no -inf NaNs)."""
    if mask is None:
        return jnp.zeros(shape, jnp.float32)
    if mask.dtype == jnp.bool_:
        return jnp.where(mask, jnp.float32(-1e30), jnp.float32(0.0))
    return jnp.maximum(mask.astype(jnp.float32), jnp.float32(-1e30))


def translation_model_forward(params, src, tgt, src_mask, tgt_mask,
                              src_padding_mask, tgt_padding_mask, *,
                              num_heads, vocab_size):
    E = params["src_emb"].shape[1]
    N, S = src.shape
    _, T = tgt.shape

    # Embedding + positional encoding (cheap gather glue, batch-first layout).
    # TODO(synk): dropout is stochastic; modeled as eval-mode identity here.
    src_x = (jnp.take(params["src_emb"], src, axis=0)
             + params["pos_enc"][:S][None]).astype(jnp.bfloat16)
    tgt_x = (jnp.take(params["tgt_emb"], tgt, axis=0)
             + params["pos_enc"][:T][None]).astype(jnp.bfloat16)

    # Literal positional mapping from the torch call site into nn.Transformer.forward:
    #   src_mask -> src_mask, tgt_mask -> tgt_mask,
    #   src_padding_mask -> memory_mask, tgt_padding_mask -> src_key_padding_mask.
    enc_attn_mask = _to_additive(src_mask, (S, S))            # (S, S)
    enc_key_pad = _to_additive(tgt_padding_mask, (N, S))      # src_key_padding_mask
    dec_self_mask = _to_additive(tgt_mask, (T, T))            # (T, T)
    dec_cross_mask = _to_additive(src_padding_mask, (T, S))   # memory_mask (N==T literal)

    # Encoder (post-LN layers; final encoder LayerNorm fused into last layer).
    x = src_x
    n_enc = len(params["encoder_layers"])
    for li, lp in enumerate(params["encoder_layers"]):
        x = encoder_layer(lp, x, enc_attn_mask, enc_key_pad,
                          params["enc_norm_w"], params["enc_norm_b"],
                          num_heads=num_heads,
                          apply_final_ln=(li == n_enc - 1))
    memory = x                                                # (N, S, E) bf16

    # Decoder.
    y = tgt_x
    for lp in params["decoder_layers"]:
        y = decoder_layer(lp, y, memory, dec_self_mask, dec_cross_mask,
                          num_heads=num_heads)

    # Final decoder LayerNorm fused with the (vocab-padded, lane-dense) projection.
    M = N * T
    Mp = ((M + 7) // 8) * 8
    y2 = y.reshape(M, E)
    if Mp != M:
        y2 = jnp.pad(y2, ((0, Mp - M), (0, 0)))
    logits_p = ln_linear(y2, params["dec_norm_w"], params["dec_norm_b"],
                         params["fc_out_w"], params["fc_out_b"])   # (Mp, Vpad)
    logits = logits_p[:M, :vocab_size]
    return jnp.transpose(logits.reshape(N, T, vocab_size), (1, 0, 2))  # (T, N, V)


# --------------------------------------------------------------------------
# parameter creation (per-head / pre-transposed (in,out) weight layouts,
# matmul weights in bf16, LN/bias params in f32, vocab padded to 128 lanes)
# --------------------------------------------------------------------------

def positional_encoding_table(embed_size, max_len=5000):
    pos = jnp.arange(max_len, dtype=jnp.float32)[:, None]
    _2i = jnp.arange(0, embed_size, 2, dtype=jnp.float32)
    angle = pos / jnp.power(10000.0, _2i / embed_size)
    enc = jnp.zeros((max_len, embed_size), jnp.float32)
    enc = enc.at[:, 0::2].set(jnp.sin(angle))
    enc = enc.at[:, 1::2].set(jnp.cos(angle))
    return enc


def init_params(key, src_vocab, tgt_vocab, E, H, ff, num_layers):
    dh = E // H
    keys = iter(jax.random.split(key, 4096))

    def w(shape, scale=0.05, dtype=jnp.bfloat16):
        return (scale * jax.random.normal(next(keys), shape, jnp.float32)).astype(dtype)

    def zeros(shape, dtype=jnp.float32):
        return jnp.zeros(shape, dtype)

    def ones(shape, dtype=jnp.float32):
        return jnp.ones(shape, dtype)

    def mha():
        return {"wq": w((H, E, dh)), "wk": w((H, E, dh)), "wv": w((H, E, dh)),
                "bq": zeros((H, 1, dh)), "bk": zeros((H, 1, dh)), "bv": zeros((H, 1, dh)),
                "wo": w((H, dh, E)), "bo": zeros((1, E))}

    def enc_layer():
        return {"self_attn": mha(),
                "w1": w((E, ff)), "b1": zeros((1, ff)),
                "w2": w((ff, E)), "b2": zeros((1, E)),
                "ln1_w": ones((1, E)), "ln1_b": zeros((1, E)),
                "ln2_w": ones((1, E)), "ln2_b": zeros((1, E))}

    def dec_layer():
        return {"self_attn": mha(), "cross_attn": mha(),
                "w1": w((E, ff)), "b1": zeros((1, ff)),
                "w2": w((ff, E)), "b2": zeros((1, E)),
                "ln1_w": ones((1, E)), "ln1_b": zeros((1, E)),
                "ln2_w": ones((1, E)), "ln2_b": zeros((1, E)),
                "ln3_w": ones((1, E)), "ln3_b": zeros((1, E))}

    v_pad = ((tgt_vocab + 127) // 128) * 128
    fc_w = jnp.zeros((E, v_pad), jnp.float32)
    fc_w = fc_w.at[:, :tgt_vocab].set(
        0.05 * jax.random.normal(next(keys), (E, tgt_vocab), jnp.float32))

    return {
        "src_emb": w((src_vocab, E), 1.0, jnp.float32),
        "tgt_emb": w((tgt_vocab, E), 1.0, jnp.float32),
        "pos_enc": positional_encoding_table(E),
        "encoder_layers": [enc_layer() for _ in range(num_layers)],
        "decoder_layers": [dec_layer() for _ in range(num_layers)],
        "enc_norm_w": ones((1, E)), "enc_norm_b": zeros((1, E)),
        "dec_norm_w": ones((1, E)), "dec_norm_b": zeros((1, E)),
        "fc_out_w": fc_w.astype(jnp.bfloat16),
        "fc_out_b": zeros((1, v_pad)),
    }


# --------------------------------------------------------------------------
# main
# --------------------------------------------------------------------------

if __name__ == "__main__":
    SRC_VOCAB, TGT_VOCAB = 16, 16
    EMBED, HEADS, FF, LAYERS = 32, 4, 64, 2
    N = 4   # batch
    S = 4   # src seq len
    T = 4   # tgt seq len (N == T == S so the literal mask wiring is shape-consistent)

    root = jax.random.PRNGKey(0)
    pkey, skey, tkey = jax.random.split(root, 3)
    params = init_params(pkey, SRC_VOCAB, TGT_VOCAB, EMBED, HEADS, FF, LAYERS)

    src = jax.random.randint(skey, (N, S), 0, SRC_VOCAB)
    tgt = jax.random.randint(tkey, (N, T), 0, TGT_VOCAB)

    src_mask = jnp.zeros((S, S), jnp.float32)
    # like nn.Transformer.generate_square_subsequent_mask
    tgt_mask = jnp.where(jnp.triu(jnp.ones((T, T), bool), k=1),
                         -jnp.inf, 0.0).astype(jnp.float32)
    src_padding_mask = jnp.zeros((N, S), bool)
    tgt_padding_mask = jnp.zeros((N, T), bool)

    fwd = jax.jit(functools.partial(translation_model_forward,
                                    num_heads=HEADS, vocab_size=TGT_VOCAB))
    out = fwd(params, src, tgt, src_mask, tgt_mask, src_padding_mask, tgt_padding_mask)
    jax.block_until_ready(out)

    assert out.shape == (T, N, TGT_VOCAB), out.shape
    assert bool(jnp.all(jnp.isfinite(out)))
    print("KERNEL_OK")
</pallas_src>

<mosaic_0001>
module attributes {stable_mosaic.version = 11 : i64} {
  func.func @_encoder_layer_kernel(%arg0: i32, %arg1: memref<1x4x32xbf16, #tpu.memory_space<vmem>>, %arg2: memref<4x4xf32, #tpu.memory_space<vmem>>, %arg3: memref<4x4xf32, #tpu.memory_space<vmem>>, %arg4: memref<4x32x8xbf16, #tpu.memory_space<vmem>>, %arg5: memref<4x32x8xbf16, #tpu.memory_space<vmem>>, %arg6: memref<4x32x8xbf16, #tpu.memory_space<vmem>>, %arg7: memref<4x1x8xf32, #tpu.memory_space<vmem>>, %arg8: memref<4x1x8xf32, #tpu.memory_space<vmem>>, %arg9: memref<4x1x8xf32, #tpu.memory_space<vmem>>, %arg10: memref<4x8x32xbf16, #tpu.memory_space<vmem>>, %arg11: memref<1x32xf32, #tpu.memory_space<vmem>>, %arg12: memref<1x32xf32, #tpu.memory_space<vmem>>, %arg13: memref<1x32xf32, #tpu.memory_space<vmem>>, %arg14: memref<32x64xbf16, #tpu.memory_space<vmem>>, %arg15: memref<1x64xf32, #tpu.memory_space<vmem>>, %arg16: memref<64x32xbf16, #tpu.memory_space<vmem>>, %arg17: memref<1x32xf32, #tpu.memory_space<vmem>>, %arg18: memref<1x32xf32, #tpu.memory_space<vmem>>, %arg19: memref<1x32xf32, #tpu.memory_space<vmem>>, %arg20: memref<1x32xf32, #tpu.memory_space<vmem>>, %arg21: memref<1x32xf32, #tpu.memory_space<vmem>>, %arg22: memref<1x4x32xbf16, #tpu.memory_space<vmem>>) attributes {dimension_semantics = [#tpu.dimension_semantics<parallel>], iteration_bounds = array<i64: 4>, scalar_prefetch = 0 : i64, scratch_operands = 0 : i64, tpu.core_type = #tpu.core_type<tc>, window_params = [{transform_indices = @transform_0, window_bounds = array<i64: 1, 4, 32>}, {pipeline_mode = #tpu.pipeline_mode<synchronous>, transform_indices = @transform_1, window_bounds = array<i64: 4, 4>}, {pipeline_mode = #tpu.pipeline_mode<synchronous>, transform_indices = @transform_2, window_bounds = array<i64: 4, 4>}, {pipeline_mode = #tpu.pipeline_mode<synchronous>, transform_indices = @transform_3, window_bounds = array<i64: 4, 32, 8>}, {pipeline_mode = #tpu.pipeline_mode<synchronous>, transform_indices = @transform_4, window_bounds = array<i64: 4, 32, 8>}, {pipeline_mode = #tpu.pipeline_mode<synchronous>, transform_indices = @transform_5, window_bounds = array<i64: 4, 32, 8>}, {pipeline_mode = #tpu.pipeline_mode<synchronous>, transform_indices = @transform_6, window_bounds = array<i64: 4, 1, 8>}, {pipeline_mode = #tpu.pipeline_mode<synchronous>, transform_indices = @transform_7, window_bounds = array<i64: 4, 1, 8>}, {pipeline_mode = #tpu.pipeline_mode<synchronous>, transform_indices = @transform_8, window_bounds = array<i64: 4, 1, 8>}, {pipeline_mode = #tpu.pipeline_mode<synchronous>, transform_indices = @transform_9, window_bounds = array<i64: 4, 8, 32>}, {pipeline_mode = #tpu.pipeline_mode<synchronous>, transform_indices = @transform_10, window_bounds = array<i64: 1, 32>}, {pipeline_mode = #tpu.pipeline_mode<synchronous>, transform_indices = @transform_11, window_bounds = array<i64: 1, 32>}, {pipeline_mode = #tpu.pipeline_mode<synchronous>, transform_indices = @transform_12, window_bounds = array<i64: 1, 32>}, {pipeline_mode = #tpu.pipeline_mode<synchronous>, transform_indices = @transform_13, window_bounds = array<i64: 32, 64>}, {pipeline_mode = #tpu.pipeline_mode<synchronous>, transform_indices = @transform_14, window_bounds = array<i64: 1, 64>}, {pipeline_mode = #tpu.pipeline_mode<synchronous>, transform_indices = @transform_15, window_bounds = array<i64: 64, 32>}, {pipeline_mode = #tpu.pipeline_mode<synchronous>, transform_indices = @transform_16, window_bounds = array<i64: 1, 32>}, {pipeline_mode = #tpu.pipeline_mode<synchronous>, transform_indices = @transform_17, window_bounds = array<i64: 1, 32>}, {pipeline_mode = #tpu.pipeline_mode<synchronous>, transform_indices = @transform_18, window_bounds = array<i64: 1, 32>}, {pipeline_mode = #tpu.pipeline_mode<synchronous>, transform_indices = @transform_19, window_bounds = array<i64: 1, 32>}, {pipeline_mode = #tpu.pipeline_mode<synchronous>, transform_indices = @transform_20, window_bounds = array<i64: 1, 32>}, {transform_indices = @transform_21, window_bounds = array<i64: 1, 4, 32>}]} {
    %c0 = arith.constant 0 : index
    %c0_0 = arith.constant 0 : index
    %c0_1 = arith.constant 0 : index
    %0 = vector.load %arg1[%c0, %c0_0, %c0_1] : memref<1x4x32xbf16, #tpu.memory_space<vmem>>, vector<1x4x32xbf16>
    %1 = vector.shape_cast %0 : vector<1x4x32xbf16> to vector<4x32xbf16>
    %2 = arith.extf %1 : vector<4x32xbf16> to vector<4x32xf32>
    %c0_2 = arith.constant 0 : index
    %c0_3 = arith.constant 0 : index
    %3 = vector.load %arg2[%c0_2, %c0_3] : memref<4x4xf32, #tpu.memory_space<vmem>>, vector<4x4xf32>
    %4 = arith.index_cast %arg0 : i32 to index
    %c0_4 = arith.constant 0 : index
    %5 = vector.load %arg3[%4, %c0_4] : memref<4x4xf32, #tpu.memory_space<vmem>>, vector<1x4xf32>
    %6 = vector.broadcast %5 : vector<1x4xf32> to vector<4x4xf32>
    %7 = arith.addf %3, %6 : vector<4x4xf32>
    %c0_5 = arith.constant 0 : index
    %c0_6 = arith.constant 0 : index
    %c0_7 = arith.constant 0 : index
    %8 = vector.load %arg4[%c0_5, %c0_6, %c0_7] : memref<4x32x8xbf16, #tpu.memory_space<vmem>>, vector<4x32x8xbf16>
    %c0_8 = arith.constant 0 : index
    %c0_9 = arith.constant 0 : index
    %c0_10 = arith.constant 0 : index
    %9 = vector.load %arg5[%c0_8, %c0_9, %c0_10] : memref<4x32x8xbf16, #tpu.memory_space<vmem>>, vector<4x32x8xbf16>
    %c0_11 = arith.constant 0 : index
    %c0_12 = arith.constant 0 : index
    %c0_13 = arith.constant 0 : index
    %10 = vector.load %arg6[%c0_11, %c0_12, %c0_13] : memref<4x32x8xbf16, #tpu.memory_space<vmem>>, vector<4x32x8xbf16>
    %c0_14 = arith.constant 0 : index
    %c0_15 = arith.constant 0 : index
    %c0_16 = arith.constant 0 : index
    %11 = vector.load %arg7[%c0_14, %c0_15, %c0_16] : memref<4x1x8xf32, #tpu.memory_space<vmem>>, vector<4x1x8xf32>
    %c0_17 = arith.constant 0 : index
    %c0_18 = arith.constant 0 : index
    %c0_19 = arith.constant 0 : index
    %12 = vector.load %arg8[%c0_17, %c0_18, %c0_19] : memref<4x1x8xf32, #tpu.memory_space<vmem>>, vector<4x1x8xf32>
    %c0_20 = arith.constant 0 : index
    %c0_21 = arith.constant 0 : index
    %c0_22 = arith.constant 0 : index
    %13 = vector.load %arg9[%c0_20, %c0_21, %c0_22] : memref<4x1x8xf32, #tpu.memory_space<vmem>>, vector<4x1x8xf32>
    %c0_23 = arith.constant 0 : index
    %c0_24 = arith.constant 0 : index
    %c0_25 = arith.constant 0 : index
    %14 = vector.load %arg10[%c0_23, %c0_24, %c0_25] : memref<4x8x32xbf16, #tpu.memory_space<vmem>>, vector<4x8x32xbf16>
    %c0_26 = arith.constant 0 : index
    %c0_27 = arith.constant 0 : index
    %15 = vector.load %arg11[%c0_26, %c0_27] : memref<1x32xf32, #tpu.memory_space<vmem>>, vector<1x32xf32>
    %16 = vector.shape_cast %1 : vector<4x32xbf16> to vector<1x4x32xbf16>
    %17 = vector.shape_cast %16 : vector<1x4x32xbf16> to vector<1x4x32xbf16>
    %18 = vector.broadcast %17 : vector<1x4x32xbf16> to vector<4x4x32xbf16>
    %19 = vector.shape_cast %1 : vector<4x32xbf16> to vector<1x4x32xbf16>
    %20 = vector.shape_cast %19 : vector<1x4x32xbf16> to vector<1x4x32xbf16>
    %21 = vector.broadcast %20 : vector<1x4x32xbf16> to vector<4x4x32xbf16>
    "tpu.trace_start"() <{level = 10 : i32, message = "hle,hed->hld"}> : () -> ()
    %cst = arith.constant dense<0.000000e+00> : vector<4x4x8xf32>
    %22 = tpu.matmul %18, %8, %cst {dimension_numbers = #tpu.dot_dimension_numbers<[2], [1], [1], [2], [0, 0, 0, 1, 1, 2], [0], [0]>} : vector<4x4x32xbf16>, vector<4x32x8xbf16>, vector<4x4x8xf32> -> vector<4x4x8xf32>
    "tpu.trace_stop"() : () -> ()
    %23 = vector.broadcast %11 : vector<4x1x8xf32> to vector<4x4x8xf32>
    %24 = arith.addf %22, %23 : vector<4x4x8xf32>
    "tpu.trace_start"() <{level = 10 : i32, message = "hse,hed->hsd"}> : () -> ()
    %cst_28 = arith.constant dense<0.000000e+00> : vector<4x4x8xf32>
    %25 = tpu.matmul %21, %9, %cst_28 {dimension_numbers = #tpu.dot_dimension_numbers<[2], [1], [1], [2], [0, 0, 0, 1, 1, 2], [0], [0]>} : vector<4x4x32xbf16>, vector<4x32x8xbf16>, vector<4x4x8xf32> -> vector<4x4x8xf32>
    "tpu.trace_stop"() : () -> ()
    %26 = vector.broadcast %12 : vector<4x1x8xf32> to vector<4x4x8xf32>
    %27 = arith.addf %25, %26 : vector<4x4x8xf32>
    "tpu.trace_start"() <{level = 10 : i32, message = "hse,hed->hsd"}> : () -> ()
    %cst_29 = arith.constant dense<0.000000e+00> : vector<4x4x8xf32>
    %28 = tpu.matmul %21, %10, %cst_29 {dimension_numbers = #tpu.dot_dimension_numbers<[2], [1], [1], [2], [0, 0, 0, 1, 1, 2], [0], [0]>} : vector<4x4x32xbf16>, vector<4x32x8xbf16>, vector<4x4x8xf32> -> vector<4x4x8xf32>
    "tpu.trace_stop"() : () -> ()
    %29 = vector.broadcast %13 : vector<4x1x8xf32> to vector<4x4x8xf32>
    %30 = arith.addf %28, %29 : vector<4x4x8xf32>
    %31 = arith.truncf %24 : vector<4x4x8xf32> to vector<4x4x8xbf16>
    %32 = arith.truncf %27 : vector<4x4x8xf32> to vector<4x4x8xbf16>
    "tpu.trace_start"() <{level = 10 : i32, message = "hld,hsd->hls"}> : () -> ()
    %cst_30 = arith.constant dense<0.000000e+00> : vector<4x4x4xf32>
    %33 = tpu.matmul %31, %32, %cst_30 {dimension_numbers = #tpu.dot_dimension_numbers<[2], [2], [1], [1], [0, 0, 0, 1, 1, 1], [0], [0]>} : vector<4x4x8xbf16>, vector<4x4x8xbf16>, vector<4x4x4xf32> -> vector<4x4x4xf32>
    "tpu.trace_stop"() : () -> ()
    %cst_31 = arith.constant 0.353553385 : f32
    %34 = vector.broadcast %cst_31 : f32 to vector<4x4x4xf32>
    %35 = arith.mulf %33, %34 : vector<4x4x4xf32>
    %36 = vector.shape_cast %7 : vector<4x4xf32> to vector<1x4x4xf32>
    %37 = vector.broadcast %36 : vector<1x4x4xf32> to vector<4x4x4xf32>
    %38 = arith.addf %35, %37 : vector<4x4x4xf32>
    %cst_32 = arith.constant dense<0xFF800000> : vector<4x4xf32>
    %39 = vector.multi_reduction <maximumf>, %38, %cst_32 [2] : vector<4x4x4xf32> to vector<4x4xf32>
    %40 = vector.shape_cast %39 : vector<4x4xf32> to vector<4x4x1xf32>
    %41 = vector.broadcast %40 : vector<4x4x1xf32> to vector<4x4x4xf32>
    %42 = arith.subf %38, %41 : vector<4x4x4xf32>
    %43 = math.exp %42 : vector<4x4x4xf32>
    %cst_33 = arith.constant dense<0.000000e+00> : vector<4x4xf32>
    %44 = vector.multi_reduction <add>, %43, %cst_33 [2] : vector<4x4x4xf32> to vector<4x4xf32>
    %45 = vector.shape_cast %44 : vector<4x4xf32> to vector<4x4x1xf32>
    %46 = tpu.reciprocal %45 {approx = true} : vector<4x4x1xf32> -> vector<4x4x1xf32>
    %47 = vector.broadcast %46 : vector<4x4x1xf32> to vector<4x4x4xf32>
    %48 = arith.mulf %43, %47 : vector<4x4x4xf32>
    %49 = arith.truncf %48 : vector<4x4x4xf32> to vector<4x4x4xbf16>
    %50 = arith.truncf %30 : vector<4x4x8xf32> to vector<4x4x8xbf16>
    "tpu.trace_start"() <{level = 10 : i32, message = "hls,hsd->hld"}> : () -> ()
    %cst_34 = arith.constant dense<0.000000e+00> : vector<4x4x8xf32>
    %51 = tpu.matmul %49, %50, %cst_34 {dimension_numbers = #tpu.dot_dimension_numbers<[2], [1], [1], [2], [0, 0, 0, 1, 1, 2], [0], [0]>} : vector<4x4x4xbf16>, vector<4x4x8xbf16>, vector<4x4x8xf32> -> vector<4x4x8xf32>
    "tpu.trace_stop"() : () -> ()
    %52 = arith.truncf %51 : vector<4x4x8xf32> to vector<4x4x8xbf16>
    "tpu.trace_start"() <{level = 10 : i32, message = "hld,hde->hle"}> : () -> ()
    %cst_35 = arith.constant dense<0.000000e+00> : vector<4x4x32xf32>
    %53 = tpu.matmul %52, %14, %cst_35 {dimension_numbers = #tpu.dot_dimension_numbers<[2], [1], [1], [2], [0, 0, 0, 1, 1, 2], [0], [0]>} : vector<4x4x8xbf16>, vector<4x8x32xbf16>, vector<4x4x32xf32> -> vector<4x4x32xf32>
    "tpu.trace_stop"() : () -> ()
    %cst_36 = arith.constant dense<0.000000e+00> : vector<4x32xf32>
    %54 = vector.multi_reduction <add>, %53, %cst_36 [0] : vector<4x4x32xf32> to vector<4x32xf32>
    %55 = vector.broadcast %15 : vector<1x32xf32> to vector<4x32xf32>
    %56 = arith.addf %54, %55 : vector<4x32xf32>
    %57 = arith.addf %2, %56 : vector<4x32xf32>
    %c0_37 = arith.constant 0 : index
    %c0_38 = arith.constant 0 : index
    %58 = vector.load %arg12[%c0_37, %c0_38] : memref<1x32xf32, #tpu.memory_space<vmem>>, vector<1x32xf32>
    %c0_39 = arith.constant 0 : index
    %c0_40 = arith.constant 0 : index
    %59 = vector.load %arg13[%c0_39, %c0_40] : memref<1x32xf32, #tpu.memory_space<vmem>>, vector<1x32xf32>
    %cst_41 = arith.constant dense<0.000000e+00> : vector<4xf32>
    %60 = vector.multi_reduction <add>, %57, %cst_41 [1] : vector<4x32xf32> to vector<4xf32>
    %61 = vector.shape_cast %60 : vector<4xf32> to vector<4x1xf32>
    %cst_42 = arith.constant 3.200000e+01 : f32
    %62 = vector.broadcast %cst_42 : f32 to vector<4x1xf32>
    %63 = arith.divf %61, %62 : vector<4x1xf32>
    %64 = vector.broadcast %63 : vector<4x1xf32> to vector<4x32xf32>
    %65 = arith.subf %57, %64 : vector<4x32xf32>
    %66 = arith.mulf %65, %65 : vector<4x32xf32>
    %cst_43 = arith.constant dense<0.000000e+00> : vector<4xf32>
    %67 = vector.multi_reduction <add>, %66, %cst_43 [1] : vector<4x32xf32> to vector<4xf32>
    %68 = vector.shape_cast %67 : vector<4xf32> to vector<4x1xf32>
    %cst_44 = arith.constant 3.200000e+01 : f32
    %69 = vector.broadcast %cst_44 : f32 to vector<4x1xf32>
    %70 = arith.divf %68, %69 : vector<4x1xf32>
    %71 = vector.broadcast %63 : vector<4x1xf32> to vector<4x32xf32>
    %72 = arith.subf %57, %71 : vector<4x32xf32>
    %cst_45 = arith.constant 9.99999974E-6 : f32
    %73 = vector.broadcast %cst_45 : f32 to vector<4x1xf32>
    %74 = arith.addf %70, %73 : vector<4x1xf32>
    %75 = math.rsqrt %74 : vector<4x1xf32>
    %76 = vector.broadcast %75 : vector<4x1xf32> to vector<4x32xf32>
    %77 = arith.mulf %72, %76 : vector<4x32xf32>
    %78 = vector.broadcast %58 : vector<1x32xf32> to vector<4x32xf32>
    %79 = arith.mulf %77, %78 : vector<4x32xf32>
    %80 = vector.broadcast %59 : vector<1x32xf32> to vector<4x32xf32>
    %81 = arith.addf %79, %80 : vector<4x32xf32>
    %82 = arith.truncf %81 : vector<4x32xf32> to vector<4x32xbf16>
    %c0_46 = arith.constant 0 : index
    %c0_47 = arith.constant 0 : index
    %83 = vector.load %arg14[%c0_46, %c0_47] : memref<32x64xbf16, #tpu.memory_space<vmem>>, vector<32x64xbf16>
    %cst_48 = arith.constant dense<0.000000e+00> : vector<4x64xf32>
    %84 = tpu.matmul %82, %83, %cst_48 {dimension_numbers = #tpu.dot_dimension_numbers<[1], [0], [0], [1], [0, 0, 1, 1], [], []>} : vector<4x32xbf16>, vector<32x64xbf16>, vector<4x64xf32> -> vector<4x64xf32>
    %c0_49 = arith.constant 0 : index
    %c0_50 = arith.constant 0 : index
    %85 = vector.load %arg15[%c0_49, %c0_50] : memref<1x64xf32, #tpu.memory_space<vmem>>, vector<1x64xf32>
    %86 = vector.broadcast %85 : vector<1x64xf32> to vector<4x64xf32>
    %87 = arith.addf %84, %86 : vector<4x64xf32>
    %cst_51 = arith.constant 0.000000e+00 : f32
    %88 = vector.broadcast %cst_51 : f32 to vector<4x64xf32>
    %89 = arith.maximumf %87, %88 : vector<4x64xf32>
    %90 = arith.truncf %89 : vector<4x64xf32> to vector<4x64xbf16>
    %c0_52 = arith.constant 0 : index
    %c0_53 = arith.constant 0 : index
    %91 = vector.load %arg16[%c0_52, %c0_53] : memref<64x32xbf16, #tpu.memory_space<vmem>>, vector<64x32xbf16>
    %cst_54 = arith.constant dense<0.000000e+00> : vector<4x32xf32>
    %92 = tpu.matmul %90, %91, %cst_54 {dimension_numbers = #tpu.dot_dimension_numbers<[1], [0], [0], [1], [0, 0, 1, 1], [], []>} : vector<4x64xbf16>, vector<64x32xbf16>, vector<4x32xf32> -> vector<4x32xf32>
    %c0_55 = arith.constant 0 : index
    %c0_56 = arith.constant 0 : index
    %93 = vector.load %arg17[%c0_55, %c0_56] : memref<1x32xf32, #tpu.memory_space<vmem>>, vector<1x32xf32>
    %94 = vector.broadcast %93 : vector<1x32xf32> to vector<4x32xf32>
    %95 = arith.addf %92, %94 : vector<4x32xf32>
    %96 = arith.addf %81, %95 : vector<4x32xf32>
    %c0_57 = arith.constant 0 : index
    %c0_58 = arith.constant 0 : index
    %97 = vector.load %arg18[%c0_57, %c0_58] : memref<1x32xf32, #tpu.memory_space<vmem>>, vector<1x32xf32>
    %c0_59 = arith.constant 0 : index
    %c0_60 = arith.constant 0 : index
    %98 = vector.load %arg19[%c0_59, %c0_60] : memref<1x32xf32, #tpu.memory_space<vmem>>, vector<1x32xf32>
    %cst_61 = arith.constant dense<0.000000e+00> : vector<4xf32>
    %99 = vector.multi_reduction <add>, %96, %cst_61 [1] : vector<4x32xf32> to vector<4xf32>
    %100 = vector.shape_cast %99 : vector<4xf32> to vector<4x1xf32>
    %cst_62 = arith.constant 3.200000e+01 : f32
    %101 = vector.broadcast %cst_62 : f32 to vector<4x1xf32>
    %102 = arith.divf %100, %101 : vector<4x1xf32>
    %103 = vector.broadcast %102 : vector<4x1xf32> to vector<4x32xf32>
    %104 = arith.subf %96, %103 : vector<4x32xf32>
    %105 = arith.mulf %104, %104 : vector<4x32xf32>
    %cst_63 = arith.constant dense<0.000000e+00> : vector<4xf32>
    %106 = vector.multi_reduction <add>, %105, %cst_63 [1] : vector<4x32xf32> to vector<4xf32>
    %107 = vector.shape_cast %106 : vector<4xf32> to vector<4x1xf32>
    %cst_64 = arith.constant 3.200000e+01 : f32
    %108 = vector.broadcast %cst_64 : f32 to vector<4x1xf32>
    %109 = arith.divf %107, %108 : vector<4x1xf32>
    %110 = vector.broadcast %102 : vector<4x1xf32> to vector<4x32xf32>
    %111 = arith.subf %96, %110 : vector<4x32xf32>
    %cst_65 = arith.constant 9.99999974E-6 : f32
    %112 = vector.broadcast %cst_65 : f32 to vector<4x1xf32>
    %113 = arith.addf %109, %112 : vector<4x1xf32>
    %114 = math.rsqrt %113 : vector<4x1xf32>
    %115 = vector.broadcast %114 : vector<4x1xf32> to vector<4x32xf32>
    %116 = arith.mulf %111, %115 : vector<4x32xf32>
    %117 = vector.broadcast %97 : vector<1x32xf32> to vector<4x32xf32>
    %118 = arith.mulf %116, %117 : vector<4x32xf32>
    %119 = vector.broadcast %98 : vector<1x32xf32> to vector<4x32xf32>
    %120 = arith.addf %118, %119 : vector<4x32xf32>
    %121 = arith.truncf %120 : vector<4x32xf32> to vector<4x32xbf16>
    %c0_66 = arith.constant 0 : index
    %c0_67 = arith.constant 0 : index
    %c0_68 = arith.constant 0 : index
    %122 = vector.load %arg22[%c0_66, %c0_67, %c0_68] : memref<1x4x32xbf16, #tpu.memory_space<vmem>>, vector<1x4x32xbf16>
    %123 = vector.shape_cast %122 : vector<1x4x32xbf16> to vector<4x32xbf16>
    %124 = vector.shape_cast %121 : vector<4x32xbf16> to vector<1x4x32xbf16>
    tpu.vector_store %arg22[%c0_66, %c0_67, %c0_68], %124 {strides = array<i32>} : memref<1x4x32xbf16, #tpu.memory_space<vmem>>, vector<1x4x32xbf16>,
    return
  }
  func.func @transform_0(%arg0: i32) -> (i32, i32, i32) {
    %c0_i32 = arith.constant 0 : i32
    %c0_i32_0 = arith.constant 0 : i32
    %c0_i32_1 = arith.constant 0 : i32
    return %arg0, %c0_i32, %c0_i32_0 : i32, i32, i32
  }
  func.func @transform_1(%arg0: i32) -> (i32, i32) {
    %c0_i32 = arith.constant 0 : i32
    %c0_i32_0 = arith.constant 0 : i32
    %c0_i32_1 = arith.constant 0 : i32
    return %c0_i32, %c0_i32_0 : i32, i32
  }
  func.func @transform_2(%arg0: i32) -> (i32, i32) {
    %c0_i32 = arith.constant 0 : i32
    %c0_i32_0 = arith.constant 0 : i32
    %c0_i32_1 = arith.constant 0 : i32
    return %c0_i32, %c0_i32_0 : i32, i32
  }
  func.func @transform_3(%arg0: i32) -> (i32, i32, i32) {
    %c0_i32 = arith.constant 0 : i32
    %c0_i32_0 = arith.constant 0 : i32
    %c0_i32_1 = arith.constant 0 : i32
    %c0_i32_2 = arith.constant 0 : i32
    return %c0_i32, %c0_i32_0, %c0_i32_1 : i32, i32, i32
  }
  func.func @transform_4(%arg0: i32) -> (i32, i32, i32) {
    %c0_i32 = arith.constant 0 : i32
    %c0_i32_0 = arith.constant 0 : i32
    %c0_i32_1 = arith.constant 0 : i32
    %c0_i32_2 = arith.constant 0 : i32
    return %c0_i32, %c0_i32_0, %c0_i32_1 : i32, i32, i32
  }
  func.func @transform_5(%arg0: i32) -> (i32, i32, i32) {
    %c0_i32 = arith.constant 0 : i32
    %c0_i32_0 = arith.constant 0 : i32
    %c0_i32_1 = arith.constant 0 : i32
    %c0_i32_2 = arith.constant 0 : i32
    return %c0_i32, %c0_i32_0, %c0_i32_1 : i32, i32, i32
  }
  func.func @transform_6(%arg0: i32) -> (i32, i32, i32) {
    %c0_i32 = arith.constant 0 : i32
    %c0_i32_0 = arith.constant 0 : i32
    %c0_i32_1 = arith.constant 0 : i32
    %c0_i32_2 = arith.constant 0 : i32
    return %c0_i32, %c0_i32_0, %c0_i32_1 : i32, i32, i32
  }
  func.func @transform_7(%arg0: i32) -> (i32, i32, i32) {
    %c0_i32 = arith.constant 0 : i32
    %c0_i32_0 = arith.constant 0 : i32
    %c0_i32_1 = arith.constant 0 : i32
    %c0_i32_2 = arith.constant 0 : i32
    return %c0_i32, %c0_i32_0, %c0_i32_1 : i32, i32, i32
  }
  func.func @transform_8(%arg0: i32) -> (i32, i32, i32) {
    %c0_i32 = arith.constant 0 : i32
    %c0_i32_0 = arith.constant 0 : i32
    %c0_i32_1 = arith.constant 0 : i32
    %c0_i32_2 = arith.constant 0 : i32
    return %c0_i32, %c0_i32_0, %c0_i32_1 : i32, i32, i32
  }
  func.func @transform_9(%arg0: i32) -> (i32, i32, i32) {
    %c0_i32 = arith.constant 0 : i32
    %c0_i32_0 = arith.constant 0 : i32
    %c0_i32_1 = arith.constant 0 : i32
    %c0_i32_2 = arith.constant 0 : i32
    return %c0_i32, %c0_i32_0, %c0_i32_1 : i32, i32, i32
  }
  func.func @transform_10(%arg0: i32) -> (i32, i32) {
    %c0_i32 = arith.constant 0 : i32
    %c0_i32_0 = arith.constant 0 : i32
    %c0_i32_1 = arith.constant 0 : i32
    return %c0_i32, %c0_i32_0 : i32, i32
  }
  func.func @transform_11(%arg0: i32) -> (i32, i32) {
    %c0_i32 = arith.constant 0 : i32
    %c0_i32_0 = arith.constant 0 : i32
    %c0_i32_1 = arith.constant 0 : i32
    return %c0_i32, %c0_i32_0 : i32, i32
  }
  func.func @transform_12(%arg0: i32) -> (i32, i32) {
    %c0_i32 = arith.constant 0 : i32
    %c0_i32_0 = arith.constant 0 : i32
    %c0_i32_1 = arith.constant 0 : i32
    return %c0_i32, %c0_i32_0 : i32, i32
  }
  func.func @transform_13(%arg0: i32) -> (i32, i32) {
    %c0_i32 = arith.constant 0 : i32
    %c0_i32_0 = arith.constant 0 : i32
    %c0_i32_1 = arith.constant 0 : i32
    return %c0_i32, %c0_i32_0 : i32, i32
  }
  func.func @transform_14(%arg0: i32) -> (i32, i32) {
    %c0_i32 = arith.constant 0 : i32
    %c0_i32_0 = arith.constant 0 : i32
    %c0_i32_1 = arith.constant 0 : i32
    return %c0_i32, %c0_i32_0 : i32, i32
  }
  func.func @transform_15(%arg0: i32) -> (i32, i32) {
    %c0_i32 = arith.constant 0 : i32
    %c0_i32_0 = arith.constant 0 : i32
    %c0_i32_1 = arith.constant 0 : i32
    return %c0_i32, %c0_i32_0 : i32, i32
  }
  func.func @transform_16(%arg0: i32) -> (i32, i32) {
    %c0_i32 = arith.constant 0 : i32
    %c0_i32_0 = arith.constant 0 : i32
    %c0_i32_1 = arith.constant 0 : i32
    return %c0_i32, %c0_i32_0 : i32, i32
  }
  func.func @transform_17(%arg0: i32) -> (i32, i32) {
    %c0_i32 = arith.constant 0 : i32
    %c0_i32_0 = arith.constant 0 : i32
    %c0_i32_1 = arith.constant 0 : i32
    return %c0_i32, %c0_i32_0 : i32, i32
  }
  func.func @transform_18(%arg0: i32) -> (i32, i32) {
    %c0_i32 = arith.constant 0 : i32
    %c0_i32_0 = arith.constant 0 : i32
    %c0_i32_1 = arith.constant 0 : i32
    return %c0_i32, %c0_i32_0 : i32, i32
  }
  func.func @transform_19(%arg0: i32) -> (i32, i32) {
    %c0_i32 = arith.constant 0 : i32
    %c0_i32_0 = arith.constant 0 : i32
    %c0_i32_1 = arith.constant 0 : i32
    return %c0_i32, %c0_i32_0 : i32, i32
  }
  func.func @transform_20(%arg0: i32) -> (i32, i32) {
    %c0_i32 = arith.constant 0 : i32
    %c0_i32_0 = arith.constant 0 : i32
    %c0_i32_1 = arith.constant 0 : i32
    return %c0_i32, %c0_i32_0 : i32, i32
  }
  func.func @transform_21(%arg0: i32) -> (i32, i32, i32) {
    %c0_i32 = arith.constant 0 : i32
    %c0_i32_0 = arith.constant 0 : i32
    %c0_i32_1 = arith.constant 0 : i32
    return %arg0, %c0_i32, %c0_i32_0 : i32, i32, i32
  }
}

module attributes {stable_mosaic.version = 11 : i64} {
  func.func @_encoder_layer_kernel(%arg0: i32, %arg1: memref<1x4x32xbf16, #tpu.memory_space<vmem>>, %arg2: memref<4x4xf32, #tpu.memory_space<vmem>>, %arg3: memref<4x4xf32, #tpu.memory_space<vmem>>, %arg4: memref<4x32x8xbf16, #tpu.memory_space<vmem>>, %arg5: memref<4x32x8xbf16, #tpu.memory_space<vmem>>, %arg6: memref<4x32x8xbf16, #tpu.memory_space<vmem>>, %arg7: memref<4x1x8xf32, #tpu.memory_space<vmem>>, %arg8: memref<4x1x8xf32, #tpu.memory_space<vmem>>, %arg9: memref<4x1x8xf32, #tpu.memory_space<vmem>>, %arg10: memref<4x8x32xbf16, #tpu.memory_space<vmem>>, %arg11: memref<1x32xf32, #tpu.memory_space<vmem>>, %arg12: memref<1x32xf32, #tpu.memory_space<vmem>>, %arg13: memref<1x32xf32, #tpu.memory_space<vmem>>, %arg14: memref<32x64xbf16, #tpu.memory_space<vmem>>, %arg15: memref<1x64xf32, #tpu.memory_space<vmem>>, %arg16: memref<64x32xbf16, #tpu.memory_space<vmem>>, %arg17: memref<1x32xf32, #tpu.memory_space<vmem>>, %arg18: memref<1x32xf32, #tpu.memory_space<vmem>>, %arg19: memref<1x32xf32, #tpu.memory_space<vmem>>, %arg20: memref<1x32xf32, #tpu.memory_space<vmem>>, %arg21: memref<1x32xf32, #tpu.memory_space<vmem>>, %arg22: memref<1x4x32xbf16, #tpu.memory_space<vmem>>) attributes {dimension_semantics = [#tpu.dimension_semantics<parallel>], iteration_bounds = array<i64: 4>, scalar_prefetch = 0 : i64, scratch_operands = 0 : i64, tpu.core_type = #tpu.core_type<tc>, window_params = [{transform_indices = @transform_0, window_bounds = array<i64: 1, 4, 32>}, {pipeline_mode = #tpu.pipeline_mode<synchronous>, transform_indices = @transform_1, window_bounds = array<i64: 4, 4>}, {pipeline_mode = #tpu.pipeline_mode<synchronous>, transform_indices = @transform_2, window_bounds = array<i64: 4, 4>}, {pipeline_mode = #tpu.pipeline_mode<synchronous>, transform_indices = @transform_3, window_bounds = array<i64: 4, 32, 8>}, {pipeline_mode = #tpu.pipeline_mode<synchronous>, transform_indices = @transform_4, window_bounds = array<i64: 4, 32, 8>}, {pipeline_mode = #tpu.pipeline_mode<synchronous>, transform_indices = @transform_5, window_bounds = array<i64: 4, 32, 8>}, {pipeline_mode = #tpu.pipeline_mode<synchronous>, transform_indices = @transform_6, window_bounds = array<i64: 4, 1, 8>}, {pipeline_mode = #tpu.pipeline_mode<synchronous>, transform_indices = @transform_7, window_bounds = array<i64: 4, 1, 8>}, {pipeline_mode = #tpu.pipeline_mode<synchronous>, transform_indices = @transform_8, window_bounds = array<i64: 4, 1, 8>}, {pipeline_mode = #tpu.pipeline_mode<synchronous>, transform_indices = @transform_9, window_bounds = array<i64: 4, 8, 32>}, {pipeline_mode = #tpu.pipeline_mode<synchronous>, transform_indices = @transform_10, window_bounds = array<i64: 1, 32>}, {pipeline_mode = #tpu.pipeline_mode<synchronous>, transform_indices = @transform_11, window_bounds = array<i64: 1, 32>}, {pipeline_mode = #tpu.pipeline_mode<synchronous>, transform_indices = @transform_12, window_bounds = array<i64: 1, 32>}, {pipeline_mode = #tpu.pipeline_mode<synchronous>, transform_indices = @transform_13, window_bounds = array<i64: 32, 64>}, {pipeline_mode = #tpu.pipeline_mode<synchronous>, transform_indices = @transform_14, window_bounds = array<i64: 1, 64>}, {pipeline_mode = #tpu.pipeline_mode<synchronous>, transform_indices = @transform_15, window_bounds = array<i64: 64, 32>}, {pipeline_mode = #tpu.pipeline_mode<synchronous>, transform_indices = @transform_16, window_bounds = array<i64: 1, 32>}, {pipeline_mode = #tpu.pipeline_mode<synchronous>, transform_indices = @transform_17, window_bounds = array<i64: 1, 32>}, {pipeline_mode = #tpu.pipeline_mode<synchronous>, transform_indices = @transform_18, window_bounds = array<i64: 1, 32>}, {pipeline_mode = #tpu.pipeline_mode<synchronous>, transform_indices = @transform_19, window_bounds = array<i64: 1, 32>}, {pipeline_mode = #tpu.pipeline_mode<synchronous>, transform_indices = @transform_20, window_bounds = array<i64: 1, 32>}, {transform_indices = @transform_21, window_bounds = array<i64: 1, 4, 32>}]} {
    %c0 = arith.constant 0 : index
    %c0_0 = arith.constant 0 : index
    %c0_1 = arith.constant 0 : index
    %0 = vector.load %arg1[%c0, %c0_0, %c0_1] : memref<1x4x32xbf16, #tpu.memory_space<vmem>>, vector<1x4x32xbf16>
    %1 = vector.shape_cast %0 : vector<1x4x32xbf16> to vector<4x32xbf16>
    %2 = arith.extf %1 : vector<4x32xbf16> to vector<4x32xf32>
    %c0_2 = arith.constant 0 : index
    %c0_3 = arith.constant 0 : index
    %3 = vector.load %arg2[%c0_2, %c0_3] : memref<4x4xf32, #tpu.memory_space<vmem>>, vector<4x4xf32>
    %4 = arith.index_cast %arg0 : i32 to index
    %c0_4 = arith.constant 0 : index
    %5 = vector.load %arg3[%4, %c0_4] : memref<4x4xf32, #tpu.memory_space<vmem>>, vector<1x4xf32>
    %6 = vector.broadcast %5 : vector<1x4xf32> to vector<4x4xf32>
    %7 = arith.addf %3, %6 : vector<4x4xf32>
    %c0_5 = arith.constant 0 : index
    %c0_6 = arith.constant 0 : index
    %c0_7 = arith.constant 0 : index
    %8 = vector.load %arg4[%c0_5, %c0_6, %c0_7] : memref<4x32x8xbf16, #tpu.memory_space<vmem>>, vector<4x32x8xbf16>
    %c0_8 = arith.constant 0 : index
    %c0_9 = arith.constant 0 : index
    %c0_10 = arith.constant 0 : index
    %9 = vector.load %arg5[%c0_8, %c0_9, %c0_10] : memref<4x32x8xbf16, #tpu.memory_space<vmem>>, vector<4x32x8xbf16>
    %c0_11 = arith.constant 0 : index
    %c0_12 = arith.constant 0 : index
    %c0_13 = arith.constant 0 : index
    %10 = vector.load %arg6[%c0_11, %c0_12, %c0_13] : memref<4x32x8xbf16, #tpu.memory_space<vmem>>, vector<4x32x8xbf16>
    %c0_14 = arith.constant 0 : index
    %c0_15 = arith.constant 0 : index
    %c0_16 = arith.constant 0 : index
    %11 = vector.load %arg7[%c0_14, %c0_15, %c0_16] : memref<4x1x8xf32, #tpu.memory_space<vmem>>, vector<4x1x8xf32>
    %c0_17 = arith.constant 0 : index
    %c0_18 = arith.constant 0 : index
    %c0_19 = arith.constant 0 : index
    %12 = vector.load %arg8[%c0_17, %c0_18, %c0_19] : memref<4x1x8xf32, #tpu.memory_space<vmem>>, vector<4x1x8xf32>
    %c0_20 = arith.constant 0 : index
    %c0_21 = arith.constant 0 : index
    %c0_22 = arith.constant 0 : index
    %13 = vector.load %arg9[%c0_20, %c0_21, %c0_22] : memref<4x1x8xf32, #tpu.memory_space<vmem>>, vector<4x1x8xf32>
    %c0_23 = arith.constant 0 : index
    %c0_24 = arith.constant 0 : index
    %c0_25 = arith.constant 0 : index
    %14 = vector.load %arg10[%c0_23, %c0_24, %c0_25] : memref<4x8x32xbf16, #tpu.memory_space<vmem>>, vector<4x8x32xbf16>
    %c0_26 = arith.constant 0 : index
    %c0_27 = arith.constant 0 : index
    %15 = vector.load %arg11[%c0_26, %c0_27] : memref<1x32xf32, #tpu.memory_space<vmem>>, vector<1x32xf32>
    %16 = vector.shape_cast %1 : vector<4x32xbf16> to vector<1x4x32xbf16>
    %17 = vector.shape_cast %16 : vector<1x4x32xbf16> to vector<1x4x32xbf16>
    %18 = vector.broadcast %17 : vector<1x4x32xbf16> to vector<4x4x32xbf16>
    %19 = vector.shape_cast %1 : vector<4x32xbf16> to vector<1x4x32xbf16>
    %20 = vector.shape_cast %19 : vector<1x4x32xbf16> to vector<1x4x32xbf16>
    %21 = vector.broadcast %20 : vector<1x4x32xbf16> to vector<4x4x32xbf16>
    "tpu.trace_start"() <{level = 10 : i32, message = "hle,hed->hld"}> : () -> ()
    %cst = arith.constant dense<0.000000e+00> : vector<4x4x8xf32>
    %22 = tpu.matmul %18, %8, %cst {dimension_numbers = #tpu.dot_dimension_numbers<[2], [1], [1], [2], [0, 0, 0, 1, 1, 2], [0], [0]>} : vector<4x4x32xbf16>, vector<4x32x8xbf16>, vector<4x4x8xf32> -> vector<4x4x8xf32>
    "tpu.trace_stop"() : () -> ()
    %23 = vector.broadcast %11 : vector<4x1x8xf32> to vector<4x4x8xf32>
    %24 = arith.addf %22, %23 : vector<4x4x8xf32>
    "tpu.trace_start"() <{level = 10 : i32, message = "hse,hed->hsd"}> : () -> ()
    %cst_28 = arith.constant dense<0.000000e+00> : vector<4x4x8xf32>
    %25 = tpu.matmul %21, %9, %cst_28 {dimension_numbers = #tpu.dot_dimension_numbers<[2], [1], [1], [2], [0, 0, 0, 1, 1, 2], [0], [0]>} : vector<4x4x32xbf16>, vector<4x32x8xbf16>, vector<4x4x8xf32> -> vector<4x4x8xf32>
    "tpu.trace_stop"() : () -> ()
    %26 = vector.broadcast %12 : vector<4x1x8xf32> to vector<4x4x8xf32>
    %27 = arith.addf %25, %26 : vector<4x4x8xf32>
    "tpu.trace_start"() <{level = 10 : i32, message = "hse,hed->hsd"}> : () -> ()
    %cst_29 = arith.constant dense<0.000000e+00> : vector<4x4x8xf32>
    %28 = tpu.matmul %21, %10, %cst_29 {dimension_numbers = #tpu.dot_dimension_numbers<[2], [1], [1], [2], [0, 0, 0, 1, 1, 2], [0], [0]>} : vector<4x4x32xbf16>, vector<4x32x8xbf16>, vector<4x4x8xf32> -> vector<4x4x8xf32>
    "tpu.trace_stop"() : () -> ()
    %29 = vector.broadcast %13 : vector<4x1x8xf32> to vector<4x4x8xf32>
    %30 = arith.addf %28, %29 : vector<4x4x8xf32>
    %31 = arith.truncf %24 : vector<4x4x8xf32> to vector<4x4x8xbf16>
    %32 = arith.truncf %27 : vector<4x4x8xf32> to vector<4x4x8xbf16>
    "tpu.trace_start"() <{level = 10 : i32, message = "hld,hsd->hls"}> : () -> ()
    %cst_30 = arith.constant dense<0.000000e+00> : vector<4x4x4xf32>
    %33 = tpu.matmul %31, %32, %cst_30 {dimension_numbers = #tpu.dot_dimension_numbers<[2], [2], [1], [1], [0, 0, 0, 1, 1, 1], [0], [0]>} : vector<4x4x8xbf16>, vector<4x4x8xbf16>, vector<4x4x4xf32> -> vector<4x4x4xf32>
    "tpu.trace_stop"() : () -> ()
    %cst_31 = arith.constant 0.353553385 : f32
    %34 = vector.broadcast %cst_31 : f32 to vector<4x4x4xf32>
    %35 = arith.mulf %33, %34 : vector<4x4x4xf32>
    %36 = vector.shape_cast %7 : vector<4x4xf32> to vector<1x4x4xf32>
    %37 = vector.broadcast %36 : vector<1x4x4xf32> to vector<4x4x4xf32>
    %38 = arith.addf %35, %37 : vector<4x4x4xf32>
    %cst_32 = arith.constant dense<0xFF800000> : vector<4x4xf32>
    %39 = vector.multi_reduction <maximumf>, %38, %cst_32 [2] : vector<4x4x4xf32> to vector<4x4xf32>
    %40 = vector.shape_cast %39 : vector<4x4xf32> to vector<4x4x1xf32>
    %41 = vector.broadcast %40 : vector<4x4x1xf32> to vector<4x4x4xf32>
    %42 = arith.subf %38, %41 : vector<4x4x4xf32>
    %43 = math.exp %42 : vector<4x4x4xf32>
    %cst_33 = arith.constant dense<0.000000e+00> : vector<4x4xf32>
    %44 = vector.multi_reduction <add>, %43, %cst_33 [2] : vector<4x4x4xf32> to vector<4x4xf32>
    %45 = vector.shape_cast %44 : vector<4x4xf32> to vector<4x4x1xf32>
    %46 = tpu.reciprocal %45 {approx = true} : vector<4x4x1xf32> -> vector<4x4x1xf32>
    %47 = vector.broadcast %46 : vector<4x4x1xf32> to vector<4x4x4xf32>
    %48 = arith.mulf %43, %47 : vector<4x4x4xf32>
    %49 = arith.truncf %48 : vector<4x4x4xf32> to vector<4x4x4xbf16>
    %50 = arith.truncf %30 : vector<4x4x8xf32> to vector<4x4x8xbf16>
    "tpu.trace_start"() <{level = 10 : i32, message = "hls,hsd->hld"}> : () -> ()
    %cst_34 = arith.constant dense<0.000000e+00> : vector<4x4x8xf32>
    %51 = tpu.matmul %49, %50, %cst_34 {dimension_numbers = #tpu.dot_dimension_numbers<[2], [1], [1], [2], [0, 0, 0, 1, 1, 2], [0], [0]>} : vector<4x4x4xbf16>, vector<4x4x8xbf16>, vector<4x4x8xf32> -> vector<4x4x8xf32>
    "tpu.trace_stop"() : () -> ()
    %52 = arith.truncf %51 : vector<4x4x8xf32> to vector<4x4x8xbf16>
    "tpu.trace_start"() <{level = 10 : i32, message = "hld,hde->hle"}> : () -> ()
    %cst_35 = arith.constant dense<0.000000e+00> : vector<4x4x32xf32>
    %53 = tpu.matmul %52, %14, %cst_35 {dimension_numbers = #tpu.dot_dimension_numbers<[2], [1], [1], [2], [0, 0, 0, 1, 1, 2], [0], [0]>} : vector<4x4x8xbf16>, vector<4x8x32xbf16>, vector<4x4x32xf32> -> vector<4x4x32xf32>
    "tpu.trace_stop"() : () -> ()
    %cst_36 = arith.constant dense<0.000000e+00> : vector<4x32xf32>
    %54 = vector.multi_reduction <add>, %53, %cst_36 [0] : vector<4x4x32xf32> to vector<4x32xf32>
    %55 = vector.broadcast %15 : vector<1x32xf32> to vector<4x32xf32>
    %56 = arith.addf %54, %55 : vector<4x32xf32>
    %57 = arith.addf %2, %56 : vector<4x32xf32>
    %c0_37 = arith.constant 0 : index
    %c0_38 = arith.constant 0 : index
    %58 = vector.load %arg12[%c0_37, %c0_38] : memref<1x32xf32, #tpu.memory_space<vmem>>, vector<1x32xf32>
    %c0_39 = arith.constant 0 : index
    %c0_40 = arith.constant 0 : index
    %59 = vector.load %arg13[%c0_39, %c0_40] : memref<1x32xf32, #tpu.memory_space<vmem>>, vector<1x32xf32>
    %cst_41 = arith.constant dense<0.000000e+00> : vector<4xf32>
    %60 = vector.multi_reduction <add>, %57, %cst_41 [1] : vector<4x32xf32> to vector<4xf32>
    %61 = vector.shape_cast %60 : vector<4xf32> to vector<4x1xf32>
    %cst_42 = arith.constant 3.200000e+01 : f32
    %62 = vector.broadcast %cst_42 : f32 to vector<4x1xf32>
    %63 = arith.divf %61, %62 : vector<4x1xf32>
    %64 = vector.broadcast %63 : vector<4x1xf32> to vector<4x32xf32>
    %65 = arith.subf %57, %64 : vector<4x32xf32>
    %66 = arith.mulf %65, %65 : vector<4x32xf32>
    %cst_43 = arith.constant dense<0.000000e+00> : vector<4xf32>
    %67 = vector.multi_reduction <add>, %66, %cst_43 [1] : vector<4x32xf32> to vector<4xf32>
    %68 = vector.shape_cast %67 : vector<4xf32> to vector<4x1xf32>
    %cst_44 = arith.constant 3.200000e+01 : f32
    %69 = vector.broadcast %cst_44 : f32 to vector<4x1xf32>
    %70 = arith.divf %68, %69 : vector<4x1xf32>
    %71 = vector.broadcast %63 : vector<4x1xf32> to vector<4x32xf32>
    %72 = arith.subf %57, %71 : vector<4x32xf32>
    %cst_45 = arith.constant 9.99999974E-6 : f32
    %73 = vector.broadcast %cst_45 : f32 to vector<4x1xf32>
    %74 = arith.addf %70, %73 : vector<4x1xf32>
    %75 = math.rsqrt %74 : vector<4x1xf32>
    %76 = vector.broadcast %75 : vector<4x1xf32> to vector<4x32xf32>
    %77 = arith.mulf %72, %76 : vector<4x32xf32>
    %78 = vector.broadcast %58 : vector<1x32xf32> to vector<4x32xf32>
    %79 = arith.mulf %77, %78 : vector<4x32xf32>
    %80 = vector.broadcast %59 : vector<1x32xf32> to vector<4x32xf32>
    %81 = arith.addf %79, %80 : vector<4x32xf32>
    %82 = arith.truncf %81 : vector<4x32xf32> to vector<4x32xbf16>
    %c0_46 = arith.constant 0 : index
    %c0_47 = arith.constant 0 : index
    %83 = vector.load %arg14[%c0_46, %c0_47] : memref<32x64xbf16, #tpu.memory_space<vmem>>, vector<32x64xbf16>
    %cst_48 = arith.constant dense<0.000000e+00> : vector<4x64xf32>
    %84 = tpu.matmul %82, %83, %cst_48 {dimension_numbers = #tpu.dot_dimension_numbers<[1], [0], [0], [1], [0, 0, 1, 1], [], []>} : vector<4x32xbf16>, vector<32x64xbf16>, vector<4x64xf32> -> vector<4x64xf32>
    %c0_49 = arith.constant 0 : index
    %c0_50 = arith.constant 0 : index
    %85 = vector.load %arg15[%c0_49, %c0_50] : memref<1x64xf32, #tpu.memory_space<vmem>>, vector<1x64xf32>
    %86 = vector.broadcast %85 : vector<1x64xf32> to vector<4x64xf32>
    %87 = arith.addf %84, %86 : vector<4x64xf32>
    %cst_51 = arith.constant 0.000000e+00 : f32
    %88 = vector.broadcast %cst_51 : f32 to vector<4x64xf32>
    %89 = arith.maximumf %87, %88 : vector<4x64xf32>
    %90 = arith.truncf %89 : vector<4x64xf32> to vector<4x64xbf16>
    %c0_52 = arith.constant 0 : index
    %c0_53 = arith.constant 0 : index
    %91 = vector.load %arg16[%c0_52, %c0_53] : memref<64x32xbf16, #tpu.memory_space<vmem>>, vector<64x32xbf16>
    %cst_54 = arith.constant dense<0.000000e+00> : vector<4x32xf32>
    %92 = tpu.matmul %90, %91, %cst_54 {dimension_numbers = #tpu.dot_dimension_numbers<[1], [0], [0], [1], [0, 0, 1, 1], [], []>} : vector<4x64xbf16>, vector<64x32xbf16>, vector<4x32xf32> -> vector<4x32xf32>
    %c0_55 = arith.constant 0 : index
    %c0_56 = arith.constant 0 : index
    %93 = vector.load %arg17[%c0_55, %c0_56] : memref<1x32xf32, #tpu.memory_space<vmem>>, vector<1x32xf32>
    %94 = vector.broadcast %93 : vector<1x32xf32> to vector<4x32xf32>
    %95 = arith.addf %92, %94 : vector<4x32xf32>
    %96 = arith.addf %81, %95 : vector<4x32xf32>
    %c0_57 = arith.constant 0 : index
    %c0_58 = arith.constant 0 : index
    %97 = vector.load %arg18[%c0_57, %c0_58] : memref<1x32xf32, #tpu.memory_space<vmem>>, vector<1x32xf32>
    %c0_59 = arith.constant 0 : index
    %c0_60 = arith.constant 0 : index
    %98 = vector.load %arg19[%c0_59, %c0_60] : memref<1x32xf32, #tpu.memory_space<vmem>>, vector<1x32xf32>
    %cst_61 = arith.constant dense<0.000000e+00> : vector<4xf32>
    %99 = vector.multi_reduction <add>, %96, %cst_61 [1] : vector<4x32xf32> to vector<4xf32>
    %100 = vector.shape_cast %99 : vector<4xf32> to vector<4x1xf32>
    %cst_62 = arith.constant 3.200000e+01 : f32
    %101 = vector.broadcast %cst_62 : f32 to vector<4x1xf32>
    %102 = arith.divf %100, %101 : vector<4x1xf32>
    %103 = vector.broadcast %102 : vector<4x1xf32> to vector<4x32xf32>
    %104 = arith.subf %96, %103 : vector<4x32xf32>
    %105 = arith.mulf %104, %104 : vector<4x32xf32>
    %cst_63 = arith.constant dense<0.000000e+00> : vector<4xf32>
    %106 = vector.multi_reduction <add>, %105, %cst_63 [1] : vector<4x32xf32> to vector<4xf32>
    %107 = vector.shape_cast %106 : vector<4xf32> to vector<4x1xf32>
    %cst_64 = arith.constant 3.200000e+01 : f32
    %108 = vector.broadcast %cst_64 : f32 to vector<4x1xf32>
    %109 = arith.divf %107, %108 : vector<4x1xf32>
    %110 = vector.broadcast %102 : vector<4x1xf32> to vector<4x32xf32>
    %111 = arith.subf %96, %110 : vector<4x32xf32>
    %cst_65 = arith.constant 9.99999974E-6 : f32
    %112 = vector.broadcast %cst_65 : f32 to vector<4x1xf32>
    %113 = arith.addf %109, %112 : vector<4x1xf32>
    %114 = math.rsqrt %113 : vector<4x1xf32>
    %115 = vector.broadcast %114 : vector<4x1xf32> to vector<4x32xf32>
    %116 = arith.mulf %111, %115 : vector<4x32xf32>
    %117 = vector.broadcast %97 : vector<1x32xf32> to vector<4x32xf32>
    %118 = arith.mulf %116, %117 : vector<4x32xf32>
    %119 = vector.broadcast %98 : vector<1x32xf32> to vector<4x32xf32>
    %120 = arith.addf %118, %119 : vector<4x32xf32>
    %c0_66 = arith.constant 0 : index
    %c0_67 = arith.constant 0 : index
    %121 = vector.load %arg20[%c0_66, %c0_67] : memref<1x32xf32, #tpu.memory_space<vmem>>, vector<1x32xf32>
    %c0_68 = arith.constant 0 : index
    %c0_69 = arith.constant 0 : index
    %122 = vector.load %arg21[%c0_68, %c0_69] : memref<1x32xf32, #tpu.memory_space<vmem>>, vector<1x32xf32>
    %cst_70 = arith.constant dense<0.000000e+00> : vector<4xf32>
    %123 = vector.multi_reduction <add>, %120, %cst_70 [1] : vector<4x32xf32> to vector<4xf32>
    %124 = vector.shape_cast %123 : vector<4xf32> to vector<4x1xf32>
    %cst_71 = arith.constant 3.200000e+01 : f32
    %125 = vector.broadcast %cst_71 : f32 to vector<4x1xf32>
    %126 = arith.divf %124, %125 : vector<4x1xf32>
    %127 = vector.broadcast %126 : vector<4x1xf32> to vector<4x32xf32>
    %128 = arith.subf %120, %127 : vector<4x32xf32>
    %129 = arith.mulf %128, %128 : vector<4x32xf32>
    %cst_72 = arith.constant dense<0.000000e+00> : vector<4xf32>
    %130 = vector.multi_reduction <add>, %129, %cst_72 [1] : vector<4x32xf32> to vector<4xf32>
    %131 = vector.shape_cast %130 : vector<4xf32> to vector<4x1xf32>
    %cst_73 = arith.constant 3.200000e+01 : f32
    %132 = vector.broadcast %cst_73 : f32 to vector<4x1xf32>
    %133 = arith.divf %131, %132 : vector<4x1xf32>
    %134 = vector.broadcast %126 : vector<4x1xf32> to vector<4x32xf32>
    %135 = arith.subf %120, %134 : vector<4x32xf32>
    %cst_74 = arith.constant 9.99999974E-6 : f32
    %136 = vector.broadcast %cst_74 : f32 to vector<4x1xf32>
    %137 = arith.addf %133, %136 : vector<4x1xf32>
    %138 = math.rsqrt %137 : vector<4x1xf32>
    %139 = vector.broadcast %138 : vector<4x1xf32> to vector<4x32xf32>
    %140 = arith.mulf %135, %139 : vector<4x32xf32>
    %141 = vector.broadcast %121 : vector<1x32xf32> to vector<4x32xf32>
    %142 = arith.mulf %140, %141 : vector<4x32xf32>
    %143 = vector.broadcast %122 : vector<1x32xf32> to vector<4x32xf32>
    %144 = arith.addf %142, %143 : vector<4x32xf32>
    %145 = arith.truncf %144 : vector<4x32xf32> to vector<4x32xbf16>
    %c0_75 = arith.constant 0 : index
    %c0_76 = arith.constant 0 : index
    %c0_77 = arith.constant 0 : index
    %146 = vector.load %arg22[%c0_75, %c0_76, %c0_77] : memref<1x4x32xbf16, #tpu.memory_space<vmem>>, vector<1x4x32xbf16>
    %147 = vector.shape_cast %146 : vector<1x4x32xbf16> to vector<4x32xbf16>
    %148 = vector.shape_cast %145 : vector<4x32xbf16> to vector<1x4x32xbf16>
    tpu.vector_store %arg22[%c0_75, %c0_76, %c0_77], %148 {strides = array<i32>} : memref<1x4x32xbf16, #tpu.memory_space<vmem>>, vector<1x4x32xbf16>,
    return
  }
  func.func @transform_0(%arg0: i32) -> (i32, i32, i32) {
    %c0_i32 = arith.constant 0 : i32
    %c0_i32_0 = arith.constant 0 : i32
    %c0_i32_1 = arith.constant 0 : i32
    return %arg0, %c0_i32, %c0_i32_0 : i32, i32, i32
  }
  func.func @transform_1(%arg0: i32) -> (i32, i32) {
    %c0_i32 = arith.constant 0 : i32
    %c0_i32_0 = arith.constant 0 : i32
    %c0_i32_1 = arith.constant 0 : i32
    return %c0_i32, %c0_i32_0 : i32, i32
  }
  func.func @transform_2(%arg0: i32) -> (i32, i32) {
    %c0_i32 = arith.constant 0 : i32
    %c0_i32_0 = arith.constant 0 : i32
    %c0_i32_1 = arith.constant 0 : i32
    return %c0_i32, %c0_i32_0 : i32, i32
  }
  func.func @transform_3(%arg0: i32) -> (i32, i32, i32) {
    %c0_i32 = arith.constant 0 : i32
    %c0_i32_0 = arith.constant 0 : i32
    %c0_i32_1 = arith.constant 0 : i32
    %c0_i32_2 = arith.constant 0 : i32
    return %c0_i32, %c0_i32_0, %c0_i32_1 : i32, i32, i32
  }
  func.func @transform_4(%arg0: i32) -> (i32, i32, i32) {
    %c0_i32 = arith.constant 0 : i32
    %c0_i32_0 = arith.constant 0 : i32
    %c0_i32_1 = arith.constant 0 : i32
    %c0_i32_2 = arith.constant 0 : i32
    return %c0_i32, %c0_i32_0, %c0_i32_1 : i32, i32, i32
  }
  func.func @transform_5(%arg0: i32) -> (i32, i32, i32) {
    %c0_i32 = arith.constant 0 : i32
    %c0_i32_0 = arith.constant 0 : i32
    %c0_i32_1 = arith.constant 0 : i32
    %c0_i32_2 = arith.constant 0 : i32
    return %c0_i32, %c0_i32_0, %c0_i32_1 : i32, i32, i32
  }
  func.func @transform_6(%arg0: i32) -> (i32, i32, i32) {
    %c0_i32 = arith.constant 0 : i32
    %c0_i32_0 = arith.constant 0 : i32
    %c0_i32_1 = arith.constant 0 : i32
    %c0_i32_2 = arith.constant 0 : i32
    return %c0_i32, %c0_i32_0, %c0_i32_1 : i32, i32, i32
  }
  func.func @transform_7(%arg0: i32) -> (i32, i32, i32) {
    %c0_i32 = arith.constant 0 : i32
    %c0_i32_0 = arith.constant 0 : i32
    %c0_i32_1 = arith.constant 0 : i32
    %c0_i32_2 = arith.constant 0 : i32
    return %c0_i32, %c0_i32_0, %c0_i32_1 : i32, i32, i32
  }
  func.func @transform_8(%arg0: i32) -> (i32, i32, i32) {
    %c0_i32 = arith.constant 0 : i32
    %c0_i32_0 = arith.constant 0 : i32
    %c0_i32_1 = arith.constant 0 : i32
    %c0_i32_2 = arith.constant 0 : i32
    return %c0_i32, %c0_i32_0, %c0_i32_1 : i32, i32, i32
  }
  func.func @transform_9(%arg0: i32) -> (i32, i32, i32) {
    %c0_i32 = arith.constant 0 : i32
    %c0_i32_0 = arith.constant 0 : i32
    %c0_i32_1 = arith.constant 0 : i32
    %c0_i32_2 = arith.constant 0 : i32
    return %c0_i32, %c0_i32_0, %c0_i32_1 : i32, i32, i32
  }
  func.func @transform_10(%arg0: i32) -> (i32, i32) {
    %c0_i32 = arith.constant 0 : i32
    %c0_i32_0 = arith.constant 0 : i32
    %c0_i32_1 = arith.constant 0 : i32
    return %c0_i32, %c0_i32_0 : i32, i32
  }
  func.func @transform_11(%arg0: i32) -> (i32, i32) {
    %c0_i32 = arith.constant 0 : i32
    %c0_i32_0 = arith.constant 0 : i32
    %c0_i32_1 = arith.constant 0 : i32
    return %c0_i32, %c0_i32_0 : i32, i32
  }
  func.func @transform_12(%arg0: i32) -> (i32, i32) {
    %c0_i32 = arith.constant 0 : i32
    %c0_i32_0 = arith.constant 0 : i32
    %c0_i32_1 = arith.constant 0 : i32
    return %c0_i32, %c0_i32_0 : i32, i32
  }
  func.func @transform_13(%arg0: i32) -> (i32, i32) {
    %c0_i32 = arith.constant 0 : i32
    %c0_i32_0 = arith.constant 0 : i32
    %c0_i32_1 = arith.constant 0 : i32
    return %c0_i32, %c0_i32_0 : i32, i32
  }
  func.func @transform_14(%arg0: i32) -> (i32, i32) {
    %c0_i32 = arith.constant 0 : i32
    %c0_i32_0 = arith.constant 0 : i32
    %c0_i32_1 = arith.constant 0 : i32
    return %c0_i32, %c0_i32_0 : i32, i32
  }
  func.func @transform_15(%arg0: i32) -> (i32, i32) {
    %c0_i32 = arith.constant 0 : i32
    %c0_i32_0 = arith.constant 0 : i32
    %c0_i32_1 = arith.constant 0 : i32
    return %c0_i32, %c0_i32_0 : i32, i32
  }
  func.func @transform_16(%arg0: i32) -> (i32, i32) {
    %c0_i32 = arith.constant 0 : i32
    %c0_i32_0 = arith.constant 0 : i32
    %c0_i32_1 = arith.constant 0 : i32
    return %c0_i32, %c0_i32_0 : i32, i32
  }
  func.func @transform_17(%arg0: i32) -> (i32, i32) {
    %c0_i32 = arith.constant 0 : i32
    %c0_i32_0 = arith.constant 0 : i32
    %c0_i32_1 = arith.constant 0 : i32
    return %c0_i32, %c0_i32_0 : i32, i32
  }
  func.func @transform_18(%arg0: i32) -> (i32, i32) {
    %c0_i32 = arith.constant 0 : i32
    %c0_i32_0 = arith.constant 0 : i32
    %c0_i32_1 = arith.constant 0 : i32
    return %c0_i32, %c0_i32_0 : i32, i32
  }
  func.func @transform_19(%arg0: i32) -> (i32, i32) {
    %c0_i32 = arith.constant 0 : i32
    %c0_i32_0 = arith.constant 0 : i32
    %c0_i32_1 = arith.constant 0 : i32
    return %c0_i32, %c0_i32_0 : i32, i32
  }
  func.func @transform_20(%arg0: i32) -> (i32, i32) {
    %c0_i32 = arith.constant 0 : i32
    %c0_i32_0 = arith.constant 0 : i32
    %c0_i32_1 = arith.constant 0 : i32
    return %c0_i32, %c0_i32_0 : i32, i32
  }
  func.func @transform_21(%arg0: i32) -> (i32, i32, i32) {
    %c0_i32 = arith.constant 0 : i32
    %c0_i32_0 = arith.constant 0 : i32
    %c0_i32_1 = arith.constant 0 : i32
    return %arg0, %c0_i32, %c0_i32_0 : i32, i32, i32
  }
}

module attributes {stable_mosaic.version = 11 : i64} {
  func.func @_ln_linear_kernel(%arg0: i32, %arg1: i32, %arg2: memref<16x32xbf16, #tpu.memory_space<vmem>>, %arg3: memref<1x32xf32, #tpu.memory_space<vmem>>, %arg4: memref<1x32xf32, #tpu.memory_space<vmem>>, %arg5: memref<32x128xbf16, #tpu.memory_space<vmem>>, %arg6: memref<1x128xf32, #tpu.memory_space<vmem>>, %arg7: memref<16x128xf32, #tpu.memory_space<vmem>>, %arg8: memref<16x32xbf16, #tpu.memory_space<vmem>>) attributes {dimension_semantics = [#tpu.dimension_semantics<parallel>, #tpu.dimension_semantics<arbitrary>], iteration_bounds = array<i64: 1, 1>, scalar_prefetch = 0 : i64, scratch_operands = 1 : i64, tpu.core_type = #tpu.core_type<tc>, window_params = [{transform_indices = @transform_0, window_bounds = array<i64: 16, 32>}, {pipeline_mode = #tpu.pipeline_mode<synchronous>, transform_indices = @transform_1, window_bounds = array<i64: 1, 32>}, {pipeline_mode = #tpu.pipeline_mode<synchronous>, transform_indices = @transform_2, window_bounds = array<i64: 1, 32>}, {transform_indices = @transform_3, window_bounds = array<i64: 32, 128>}, {transform_indices = @transform_4, window_bounds = array<i64: 1, 128>}, {transform_indices = @transform_5, window_bounds = array<i64: 16, 128>}]} {
    %c0_i32 = arith.constant 0 : i32
    %0 = arith.cmpi eq, %arg1, %c0_i32 : i32
    %1 = arith.extui %0 : i1 to i32
    %c0_i32_0 = arith.constant 0 : i32
    %2 = arith.cmpi ne, %1, %c0_i32_0 : i32
    scf.if %2 {
      %c0_8 = arith.constant 0 : index
      %c0_9 = arith.constant 0 : index
      %10 = vector.load %arg2[%c0_8, %c0_9] : memref<16x32xbf16, #tpu.memory_space<vmem>>, vector<16x32xbf16>
      %11 = arith.extf %10 : vector<16x32xbf16> to vector<16x32xf32>
      %c0_10 = arith.constant 0 : index
      %c0_11 = arith.constant 0 : index
      %12 = vector.load %arg3[%c0_10, %c0_11] : memref<1x32xf32, #tpu.memory_space<vmem>>, vector<1x32xf32>
      %c0_12 = arith.constant 0 : index
      %c0_13 = arith.constant 0 : index
      %13 = vector.load %arg4[%c0_12, %c0_13] : memref<1x32xf32, #tpu.memory_space<vmem>>, vector<1x32xf32>
      %cst_14 = arith.constant dense<0.000000e+00> : vector<16xf32>
      %14 = vector.multi_reduction <add>, %11, %cst_14 [1] : vector<16x32xf32> to vector<16xf32>
      %15 = vector.shape_cast %14 : vector<16xf32> to vector<16x1xf32>
      %cst_15 = arith.constant 3.200000e+01 : f32
      %16 = vector.broadcast %cst_15 : f32 to vector<16x1xf32>
      %17 = arith.divf %15, %16 : vector<16x1xf32>
      %18 = vector.broadcast %17 : vector<16x1xf32> to vector<16x32xf32>
      %19 = arith.subf %11, %18 : vector<16x32xf32>
      %20 = arith.mulf %19, %19 : vector<16x32xf32>
      %cst_16 = arith.constant dense<0.000000e+00> : vector<16xf32>
      %21 = vector.multi_reduction <add>, %20, %cst_16 [1] : vector<16x32xf32> to vector<16xf32>
      %22 = vector.shape_cast %21 : vector<16xf32> to vector<16x1xf32>
      %cst_17 = arith.constant 3.200000e+01 : f32
      %23 = vector.broadcast %cst_17 : f32 to vector<16x1xf32>
      %24 = arith.divf %22, %23 : vector<16x1xf32>
      %25 = vector.broadcast %17 : vector<16x1xf32> to vector<16x32xf32>
      %26 = arith.subf %11, %25 : vector<16x32xf32>
      %cst_18 = arith.constant 9.99999974E-6 : f32
      %27 = vector.broadcast %cst_18 : f32 to vector<16x1xf32>
      %28 = arith.addf %24, %27 : vector<16x1xf32>
      %29 = math.rsqrt %28 : vector<16x1xf32>
      %30 = vector.broadcast %29 : vector<16x1xf32> to vector<16x32xf32>
      %31 = arith.mulf %26, %30 : vector<16x32xf32>
      %32 = vector.broadcast %12 : vector<1x32xf32> to vector<16x32xf32>
      %33 = arith.mulf %31, %32 : vector<16x32xf32>
      %34 = vector.broadcast %13 : vector<1x32xf32> to vector<16x32xf32>
      %35 = arith.addf %33, %34 : vector<16x32xf32>
      %36 = arith.truncf %35 : vector<16x32xf32> to vector<16x32xbf16>
      %c0_19 = arith.constant 0 : index
      %c0_20 = arith.constant 0 : index
      %37 = vector.load %arg8[%c0_19, %c0_20] : memref<16x32xbf16, #tpu.memory_space<vmem>>, vector<16x32xbf16>
      tpu.vector_store %arg8[%c0_19, %c0_20], %36 {strides = array<i32>} : memref<16x32xbf16, #tpu.memory_space<vmem>>, vector<16x32xbf16>,
    } else {
    }
    %c0 = arith.constant 0 : index
    %c0_1 = arith.constant 0 : index
    %3 = vector.load %arg8[%c0, %c0_1] : memref<16x32xbf16, #tpu.memory_space<vmem>>, vector<16x32xbf16>
    %c0_2 = arith.constant 0 : index
    %c0_3 = arith.constant 0 : index
    %4 = vector.load %arg5[%c0_2, %c0_3] : memref<32x128xbf16, #tpu.memory_space<vmem>>, vector<32x128xbf16>
    %cst = arith.constant dense<0.000000e+00> : vector<16x128xf32>
    %5 = tpu.matmul %3, %4, %cst {dimension_numbers = #tpu.dot_dimension_numbers<[1], [0], [0], [1], [0, 0, 1, 1], [], []>} : vector<16x32xbf16>, vector<32x128xbf16>, vector<16x128xf32> -> vector<16x128xf32>
    %c0_4 = arith.constant 0 : index
    %c0_5 = arith.constant 0 : index
    %6 = vector.load %arg6[%c0_4, %c0_5] : memref<1x128xf32, #tpu.memory_space<vmem>>, vector<1x128xf32>
    %7 = vector.broadcast %6 : vector<1x128xf32> to vector<16x128xf32>
    %8 = arith.addf %5, %7 : vector<16x128xf32>
    %c0_6 = arith.constant 0 : index
    %c0_7 = arith.constant 0 : index
    %9 = vector.load %arg7[%c0_6, %c0_7] : memref<16x128xf32, #tpu.memory_space<vmem>>, vector<16x128xf32>
    tpu.vector_store %arg7[%c0_6, %c0_7], %8 {strides = array<i32>} : memref<16x128xf32, #tpu.memory_space<vmem>>, vector<16x128xf32>,
    return
  }
  func.func @transform_0(%arg0: i32, %arg1: i32) -> (i32, i32) {
    %c0_i32 = arith.constant 0 : i32
    %c0_i32_0 = arith.constant 0 : i32
    return %arg0, %c0_i32 : i32, i32
  }
  func.func @transform_1(%arg0: i32, %arg1: i32) -> (i32, i32) {
    %c0_i32 = arith.constant 0 : i32
    %c0_i32_0 = arith.constant 0 : i32
    %c0_i32_1 = arith.constant 0 : i32
    return %c0_i32, %c0_i32_0 : i32, i32
  }
  func.func @transform_2(%arg0: i32, %arg1: i32) -> (i32, i32) {
    %c0_i32 = arith.constant 0 : i32
    %c0_i32_0 = arith.constant 0 : i32
    %c0_i32_1 = arith.constant 0 : i32
    return %c0_i32, %c0_i32_0 : i32, i32
  }
  func.func @transform_3(%arg0: i32, %arg1: i32) -> (i32, i32) {
    %c0_i32 = arith.constant 0 : i32
    %c0_i32_0 = arith.constant 0 : i32
    return %c0_i32, %arg1 : i32, i32
  }
  func.func @transform_4(%arg0: i32, %arg1: i32) -> (i32, i32) {
    %c0_i32 = arith.constant 0 : i32
    %c0_i32_0 = arith.constant 0 : i32
    return %c0_i32, %arg1 : i32, i32
  }
  func.func @transform_5(%arg0: i32, %arg1: i32) -> (i32, i32) {
    %c0_i32 = arith.constant 0 : i32
    return %arg0, %arg1 : i32, i32
  }
}

module attributes {stable_mosaic.version = 11 : i64} {
  func.func @_decoder_layer_kernel(%arg0: i32, %arg1: memref<1x4x32xbf16, #tpu.memory_space<vmem>>, %arg2: memref<1x4x32xbf16, #tpu.memory_space<vmem>>, %arg3: memref<4x4xf32, #tpu.memory_space<vmem>>, %arg4: memref<4x4xf32, #tpu.memory_space<vmem>>, %arg5: memref<4x32x8xbf16, #tpu.memory_space<vmem>>, %arg6: memref<4x32x8xbf16, #tpu.memory_space<vmem>>, %arg7: memref<4x32x8xbf16, #tpu.memory_space<vmem>>, %arg8: memref<4x1x8xf32, #tpu.memory_space<vmem>>, %arg9: memref<4x1x8xf32, #tpu.memory_space<vmem>>, %arg10: memref<4x1x8xf32, #tpu.memory_space<vmem>>, %arg11: memref<4x8x32xbf16, #tpu.memory_space<vmem>>, %arg12: memref<1x32xf32, #tpu.memory_space<vmem>>, %arg13: memref<1x32xf32, #tpu.memory_space<vmem>>, %arg14: memref<1x32xf32, #tpu.memory_space<vmem>>, %arg15: memref<4x32x8xbf16, #tpu.memory_space<vmem>>, %arg16: memref<4x32x8xbf16, #tpu.memory_space<vmem>>, %arg17: memref<4x32x8xbf16, #tpu.memory_space<vmem>>, %arg18: memref<4x1x8xf32, #tpu.memory_space<vmem>>, %arg19: memref<4x1x8xf32, #tpu.memory_space<vmem>>, %arg20: memref<4x1x8xf32, #tpu.memory_space<vmem>>, %arg21: memref<4x8x32xbf16, #tpu.memory_space<vmem>>, %arg22: memref<1x32xf32, #tpu.memory_space<vmem>>, %arg23: memref<1x32xf32, #tpu.memory_space<vmem>>, %arg24: memref<1x32xf32, #tpu.memory_space<vmem>>, %arg25: memref<32x64xbf16, #tpu.memory_space<vmem>>, %arg26: memref<1x64xf32, #tpu.memory_space<vmem>>, %arg27: memref<64x32xbf16, #tpu.memory_space<vmem>>, %arg28: memref<1x32xf32, #tpu.memory_space<vmem>>, %arg29: memref<1x32xf32, #tpu.memory_space<vmem>>, %arg30: memref<1x32xf32, #tpu.memory_space<vmem>>, %arg31: memref<1x4x32xbf16, #tpu.memory_space<vmem>>) attributes {dimension_semantics = [#tpu.dimension_semantics<parallel>], iteration_bounds = array<i64: 4>, scalar_prefetch = 0 : i64, scratch_operands = 0 : i64, tpu.core_type = #tpu.core_type<tc>, window_params = [{transform_indices = @transform_0, window_bounds = array<i64: 1, 4, 32>}, {transform_indices = @transform_1, window_bounds = array<i64: 1, 4, 32>}, {pipeline_mode = #tpu.pipeline_mode<synchronous>, transform_indices = @transform_2, window_bounds = array<i64: 4, 4>}, {pipeline_mode = #tpu.pipeline_mode<synchronous>, transform_indices = @transform_3, window_bounds = array<i64: 4, 4>}, {pipeline_mode = #tpu.pipeline_mode<synchronous>, transform_indices = @transform_4, window_bounds = array<i64: 4, 32, 8>}, {pipeline_mode = #tpu.pipeline_mode<synchronous>, transform_indices = @transform_5, window_bounds = array<i64: 4, 32, 8>}, {pipeline_mode = #tpu.pipeline_mode<synchronous>, transform_indices = @transform_6, window_bounds = array<i64: 4, 32, 8>}, {pipeline_mode = #tpu.pipeline_mode<synchronous>, transform_indices = @transform_7, window_bounds = array<i64: 4, 1, 8>}, {pipeline_mode = #tpu.pipeline_mode<synchronous>, transform_indices = @transform_8, window_bounds = array<i64: 4, 1, 8>}, {pipeline_mode = #tpu.pipeline_mode<synchronous>, transform_indices = @transform_9, window_bounds = array<i64: 4, 1, 8>}, {pipeline_mode = #tpu.pipeline_mode<synchronous>, transform_indices = @transform_10, window_bounds = array<i64: 4, 8, 32>}, {pipeline_mode = #tpu.pipeline_mode<synchronous>, transform_indices = @transform_11, window_bounds = array<i64: 1, 32>}, {pipeline_mode = #tpu.pipeline_mode<synchronous>, transform_indices = @transform_12, window_bounds = array<i64: 1, 32>}, {pipeline_mode = #tpu.pipeline_mode<synchronous>, transform_indices = @transform_13, window_bounds = array<i64: 1, 32>}, {pipeline_mode = #tpu.pipeline_mode<synchronous>, transform_indices = @transform_14, window_bounds = array<i64: 4, 32, 8>}, {pipeline_mode = #tpu.pipeline_mode<synchronous>, transform_indices = @transform_15, window_bounds = array<i64: 4, 32, 8>}, {pipeline_mode = #tpu.pipeline_mode<synchronous>, transform_indices = @transform_16, window_bounds = array<i64: 4, 32, 8>}, {pipeline_mode = #tpu.pipeline_mode<synchronous>, transform_indices = @transform_17, window_bounds = array<i64: 4, 1, 8>}, {pipeline_mode = #tpu.pipeline_mode<synchronous>, transform_indices = @transform_18, window_bounds = array<i64: 4, 1, 8>}, {pipeline_mode = #tpu.pipeline_mode<synchronous>, transform_indices = @transform_19, window_bounds = array<i64: 4, 1, 8>}, {pipeline_mode = #tpu.pipeline_mode<synchronous>, transform_indices = @transform_20, window_bounds = array<i64: 4, 8, 32>}, {pipeline_mode = #tpu.pipeline_mode<synchronous>, transform_indices = @transform_21, window_bounds = array<i64: 1, 32>}, {pipeline_mode = #tpu.pipeline_mode<synchronous>, transform_indices = @transform_22, window_bounds = array<i64: 1, 32>}, {pipeline_mode = #tpu.pipeline_mode<synchronous>, transform_indices = @transform_23, window_bounds = array<i64: 1, 32>}, {pipeline_mode = #tpu.pipeline_mode<synchronous>, transform_indices = @transform_24, window_bounds = array<i64: 32, 64>}, {pipeline_mode = #tpu.pipeline_mode<synchronous>, transform_indices = @transform_25, window_bounds = array<i64: 1, 64>}, {pipeline_mode = #tpu.pipeline_mode<synchronous>, transform_indices = @transform_26, window_bounds = array<i64: 64, 32>}, {pipeline_mode = #tpu.pipeline_mode<synchronous>, transform_indices = @transform_27, window_bounds = array<i64: 1, 32>}, {pipeline_mode = #tpu.pipeline_mode<synchronous>, transform_indices = @transform_28, window_bounds = array<i64: 1, 32>}, {pipeline_mode = #tpu.pipeline_mode<synchronous>, transform_indices = @transform_29, window_bounds = array<i64: 1, 32>}, {transform_indices = @transform_30, window_bounds = array<i64: 1, 4, 32>}]} {
    %c0 = arith.constant 0 : index
    %c0_0 = arith.constant 0 : index
    %c0_1 = arith.constant 0 : index
    %0 = vector.load %arg1[%c0, %c0_0, %c0_1] : memref<1x4x32xbf16, #tpu.memory_space<vmem>>, vector<1x4x32xbf16>
    %1 = vector.shape_cast %0 : vector<1x4x32xbf16> to vector<4x32xbf16>
    %c0_2 = arith.constant 0 : index
    %c0_3 = arith.constant 0 : index
    %c0_4 = arith.constant 0 : index
    %2 = vector.load %arg2[%c0_2, %c0_3, %c0_4] : memref<1x4x32xbf16, #tpu.memory_space<vmem>>, vector<1x4x32xbf16>
    %3 = vector.shape_cast %2 : vector<1x4x32xbf16> to vector<4x32xbf16>
    %4 = arith.extf %1 : vector<4x32xbf16> to vector<4x32xf32>
    %c0_5 = arith.constant 0 : index
    %c0_6 = arith.constant 0 : index
    %5 = vector.load %arg3[%c0_5, %c0_6] : memref<4x4xf32, #tpu.memory_space<vmem>>, vector<4x4xf32>
    %c0_7 = arith.constant 0 : index
    %c0_8 = arith.constant 0 : index
    %c0_9 = arith.constant 0 : index
    %6 = vector.load %arg5[%c0_7, %c0_8, %c0_9] : memref<4x32x8xbf16, #tpu.memory_space<vmem>>, vector<4x32x8xbf16>
    %c0_10 = arith.constant 0 : index
    %c0_11 = arith.constant 0 : index
    %c0_12 = arith.constant 0 : index
    %7 = vector.load %arg6[%c0_10, %c0_11, %c0_12] : memref<4x32x8xbf16, #tpu.memory_space<vmem>>, vector<4x32x8xbf16>
    %c0_13 = arith.constant 0 : index
    %c0_14 = arith.constant 0 : index
    %c0_15 = arith.constant 0 : index
    %8 = vector.load %arg7[%c0_13, %c0_14, %c0_15] : memref<4x32x8xbf16, #tpu.memory_space<vmem>>, vector<4x32x8xbf16>
    %c0_16 = arith.constant 0 : index
    %c0_17 = arith.constant 0 : index
    %c0_18 = arith.constant 0 : index
    %9 = vector.load %arg8[%c0_16, %c0_17, %c0_18] : memref<4x1x8xf32, #tpu.memory_space<vmem>>, vector<4x1x8xf32>
    %c0_19 = arith.constant 0 : index
    %c0_20 = arith.constant 0 : index
    %c0_21 = arith.constant 0 : index
    %10 = vector.load %arg9[%c0_19, %c0_20, %c0_21] : memref<4x1x8xf32, #tpu.memory_space<vmem>>, vector<4x1x8xf32>
    %c0_22 = arith.constant 0 : index
    %c0_23 = arith.constant 0 : index
    %c0_24 = arith.constant 0 : index
    %11 = vector.load %arg10[%c0_22, %c0_23, %c0_24] : memref<4x1x8xf32, #tpu.memory_space<vmem>>, vector<4x1x8xf32>
    %c0_25 = arith.constant 0 : index
    %c0_26 = arith.constant 0 : index
    %c0_27 = arith.constant 0 : index
    %12 = vector.load %arg11[%c0_25, %c0_26, %c0_27] : memref<4x8x32xbf16, #tpu.memory_space<vmem>>, vector<4x8x32xbf16>
    %c0_28 = arith.constant 0 : index
    %c0_29 = arith.constant 0 : index
    %13 = vector.load %arg12[%c0_28, %c0_29] : memref<1x32xf32, #tpu.memory_space<vmem>>, vector<1x32xf32>
    %14 = vector.shape_cast %1 : vector<4x32xbf16> to vector<1x4x32xbf16>
    %15 = vector.shape_cast %14 : vector<1x4x32xbf16> to vector<1x4x32xbf16>
    %16 = vector.broadcast %15 : vector<1x4x32xbf16> to vector<4x4x32xbf16>
    %17 = vector.shape_cast %1 : vector<4x32xbf16> to vector<1x4x32xbf16>
    %18 = vector.shape_cast %17 : vector<1x4x32xbf16> to vector<1x4x32xbf16>
    %19 = vector.broadcast %18 : vector<1x4x32xbf16> to vector<4x4x32xbf16>
    "tpu.trace_start"() <{level = 10 : i32, message = "hle,hed->hld"}> : () -> ()
    %cst = arith.constant dense<0.000000e+00> : vector<4x4x8xf32>
    %20 = tpu.matmul %16, %6, %cst {dimension_numbers = #tpu.dot_dimension_numbers<[2], [1], [1], [2], [0, 0, 0, 1, 1, 2], [0], [0]>} : vector<4x4x32xbf16>, vector<4x32x8xbf16>, vector<4x4x8xf32> -> vector<4x4x8xf32>
    "tpu.trace_stop"() : () -> ()
    %21 = vector.broadcast %9 : vector<4x1x8xf32> to vector<4x4x8xf32>
    %22 = arith.addf %20, %21 : vector<4x4x8xf32>
    "tpu.trace_start"() <{level = 10 : i32, message = "hse,hed->hsd"}> : () -> ()
    %cst_30 = arith.constant dense<0.000000e+00> : vector<4x4x8xf32>
    %23 = tpu.matmul %19, %7, %cst_30 {dimension_numbers = #tpu.dot_dimension_numbers<[2], [1], [1], [2], [0, 0, 0, 1, 1, 2], [0], [0]>} : vector<4x4x32xbf16>, vector<4x32x8xbf16>, vector<4x4x8xf32> -> vector<4x4x8xf32>
    "tpu.trace_stop"() : () -> ()
    %24 = vector.broadcast %10 : vector<4x1x8xf32> to vector<4x4x8xf32>
    %25 = arith.addf %23, %24 : vector<4x4x8xf32>
    "tpu.trace_start"() <{level = 10 : i32, message = "hse,hed->hsd"}> : () -> ()
    %cst_31 = arith.constant dense<0.000000e+00> : vector<4x4x8xf32>
    %26 = tpu.matmul %19, %8, %cst_31 {dimension_numbers = #tpu.dot_dimension_numbers<[2], [1], [1], [2], [0, 0, 0, 1, 1, 2], [0], [0]>} : vector<4x4x32xbf16>, vector<4x32x8xbf16>, vector<4x4x8xf32> -> vector<4x4x8xf32>
    "tpu.trace_stop"() : () -> ()
    %27 = vector.broadcast %11 : vector<4x1x8xf32> to vector<4x4x8xf32>
    %28 = arith.addf %26, %27 : vector<4x4x8xf32>
    %29 = arith.truncf %22 : vector<4x4x8xf32> to vector<4x4x8xbf16>
    %30 = arith.truncf %25 : vector<4x4x8xf32> to vector<4x4x8xbf16>
    "tpu.trace_start"() <{level = 10 : i32, message = "hld,hsd->hls"}> : () -> ()
    %cst_32 = arith.constant dense<0.000000e+00> : vector<4x4x4xf32>
    %31 = tpu.matmul %29, %30, %cst_32 {dimension_numbers = #tpu.dot_dimension_numbers<[2], [2], [1], [1], [0, 0, 0, 1, 1, 1], [0], [0]>} : vector<4x4x8xbf16>, vector<4x4x8xbf16>, vector<4x4x4xf32> -> vector<4x4x4xf32>
    "tpu.trace_stop"() : () -> ()
    %cst_33 = arith.constant 0.353553385 : f32
    %32 = vector.broadcast %cst_33 : f32 to vector<4x4x4xf32>
    %33 = arith.mulf %31, %32 : vector<4x4x4xf32>
    %34 = vector.shape_cast %5 : vector<4x4xf32> to vector<1x4x4xf32>
    %35 = vector.broadcast %34 : vector<1x4x4xf32> to vector<4x4x4xf32>
    %36 = arith.addf %33, %35 : vector<4x4x4xf32>
    %cst_34 = arith.constant dense<0xFF800000> : vector<4x4xf32>
    %37 = vector.multi_reduction <maximumf>, %36, %cst_34 [2] : vector<4x4x4xf32> to vector<4x4xf32>
    %38 = vector.shape_cast %37 : vector<4x4xf32> to vector<4x4x1xf32>
    %39 = vector.broadcast %38 : vector<4x4x1xf32> to vector<4x4x4xf32>
    %40 = arith.subf %36, %39 : vector<4x4x4xf32>
    %41 = math.exp %40 : vector<4x4x4xf32>
    %cst_35 = arith.constant dense<0.000000e+00> : vector<4x4xf32>
    %42 = vector.multi_reduction <add>, %41, %cst_35 [2] : vector<4x4x4xf32> to vector<4x4xf32>
    %43 = vector.shape_cast %42 : vector<4x4xf32> to vector<4x4x1xf32>
    %44 = tpu.reciprocal %43 {approx = true} : vector<4x4x1xf32> -> vector<4x4x1xf32>
    %45 = vector.broadcast %44 : vector<4x4x1xf32> to vector<4x4x4xf32>
    %46 = arith.mulf %41, %45 : vector<4x4x4xf32>
    %47 = arith.truncf %46 : vector<4x4x4xf32> to vector<4x4x4xbf16>
    %48 = arith.truncf %28 : vector<4x4x8xf32> to vector<4x4x8xbf16>
    "tpu.trace_start"() <{level = 10 : i32, message = "hls,hsd->hld"}> : () -> ()
    %cst_36 = arith.constant dense<0.000000e+00> : vector<4x4x8xf32>
    %49 = tpu.matmul %47, %48, %cst_36 {dimension_numbers = #tpu.dot_dimension_numbers<[2], [1], [1], [2], [0, 0, 0, 1, 1, 2], [0], [0]>} : vector<4x4x4xbf16>, vector<4x4x8xbf16>, vector<4x4x8xf32> -> vector<4x4x8xf32>
    "tpu.trace_stop"() : () -> ()
    %50 = arith.truncf %49 : vector<4x4x8xf32> to vector<4x4x8xbf16>
    "tpu.trace_start"() <{level = 10 : i32, message = "hld,hde->hle"}> : () -> ()
    %cst_37 = arith.constant dense<0.000000e+00> : vector<4x4x32xf32>
    %51 = tpu.matmul %50, %12, %cst_37 {dimension_numbers = #tpu.dot_dimension_numbers<[2], [1], [1], [2], [0, 0, 0, 1, 1, 2], [0], [0]>} : vector<4x4x8xbf16>, vector<4x8x32xbf16>, vector<4x4x32xf32> -> vector<4x4x32xf32>
    "tpu.trace_stop"() : () -> ()
    %cst_38 = arith.constant dense<0.000000e+00> : vector<4x32xf32>
    %52 = vector.multi_reduction <add>, %51, %cst_38 [0] : vector<4x4x32xf32> to vector<4x32xf32>
    %53 = vector.broadcast %13 : vector<1x32xf32> to vector<4x32xf32>
    %54 = arith.addf %52, %53 : vector<4x32xf32>
    %55 = arith.addf %4, %54 : vector<4x32xf32>
    %c0_39 = arith.constant 0 : index
    %c0_40 = arith.constant 0 : index
    %56 = vector.load %arg13[%c0_39, %c0_40] : memref<1x32xf32, #tpu.memory_space<vmem>>, vector<1x32xf32>
    %c0_41 = arith.constant 0 : index
    %c0_42 = arith.constant 0 : index
    %57 = vector.load %arg14[%c0_41, %c0_42] : memref<1x32xf32, #tpu.memory_space<vmem>>, vector<1x32xf32>
    %cst_43 = arith.constant dense<0.000000e+00> : vector<4xf32>
    %58 = vector.multi_reduction <add>, %55, %cst_43 [1] : vector<4x32xf32> to vector<4xf32>
    %59 = vector.shape_cast %58 : vector<4xf32> to vector<4x1xf32>
    %cst_44 = arith.constant 3.200000e+01 : f32
    %60 = vector.broadcast %cst_44 : f32 to vector<4x1xf32>
    %61 = arith.divf %59, %60 : vector<4x1xf32>
    %62 = vector.broadcast %61 : vector<4x1xf32> to vector<4x32xf32>
    %63 = arith.subf %55, %62 : vector<4x32xf32>
    %64 = arith.mulf %63, %63 : vector<4x32xf32>
    %cst_45 = arith.constant dense<0.000000e+00> : vector<4xf32>
    %65 = vector.multi_reduction <add>, %64, %cst_45 [1] : vector<4x32xf32> to vector<4xf32>
    %66 = vector.shape_cast %65 : vector<4xf32> to vector<4x1xf32>
    %cst_46 = arith.constant 3.200000e+01 : f32
    %67 = vector.broadcast %cst_46 : f32 to vector<4x1xf32>
    %68 = arith.divf %66, %67 : vector<4x1xf32>
    %69 = vector.broadcast %61 : vector<4x1xf32> to vector<4x32xf32>
    %70 = arith.subf %55, %69 : vector<4x32xf32>
    %cst_47 = arith.constant 9.99999974E-6 : f32
    %71 = vector.broadcast %cst_47 : f32 to vector<4x1xf32>
    %72 = arith.addf %68, %71 : vector<4x1xf32>
    %73 = math.rsqrt %72 : vector<4x1xf32>
    %74 = vector.broadcast %73 : vector<4x1xf32> to vector<4x32xf32>
    %75 = arith.mulf %70, %74 : vector<4x32xf32>
    %76 = vector.broadcast %56 : vector<1x32xf32> to vector<4x32xf32>
    %77 = arith.mulf %75, %76 : vector<4x32xf32>
    %78 = vector.broadcast %57 : vector<1x32xf32> to vector<4x32xf32>
    %79 = arith.addf %77, %78 : vector<4x32xf32>
    %80 = arith.truncf %79 : vector<4x32xf32> to vector<4x32xbf16>
    %c0_48 = arith.constant 0 : index
    %c0_49 = arith.constant 0 : index
    %81 = vector.load %arg4[%c0_48, %c0_49] : memref<4x4xf32, #tpu.memory_space<vmem>>, vector<4x4xf32>
    %c0_50 = arith.constant 0 : index
    %c0_51 = arith.constant 0 : index
    %c0_52 = arith.constant 0 : index
    %82 = vector.load %arg15[%c0_50, %c0_51, %c0_52] : memref<4x32x8xbf16, #tpu.memory_space<vmem>>, vector<4x32x8xbf16>
    %c0_53 = arith.constant 0 : index
    %c0_54 = arith.constant 0 : index
    %c0_55 = arith.constant 0 : index
    %83 = vector.load %arg16[%c0_53, %c0_54, %c0_55] : memref<4x32x8xbf16, #tpu.memory_space<vmem>>, vector<4x32x8xbf16>
    %c0_56 = arith.constant 0 : index
    %c0_57 = arith.constant 0 : index
    %c0_58 = arith.constant 0 : index
    %84 = vector.load %arg17[%c0_56, %c0_57, %c0_58] : memref<4x32x8xbf16, #tpu.memory_space<vmem>>, vector<4x32x8xbf16>
    %c0_59 = arith.constant 0 : index
    %c0_60 = arith.constant 0 : index
    %c0_61 = arith.constant 0 : index
    %85 = vector.load %arg18[%c0_59, %c0_60, %c0_61] : memref<4x1x8xf32, #tpu.memory_space<vmem>>, vector<4x1x8xf32>
    %c0_62 = arith.constant 0 : index
    %c0_63 = arith.constant 0 : index
    %c0_64 = arith.constant 0 : index
    %86 = vector.load %arg19[%c0_62, %c0_63, %c0_64] : memref<4x1x8xf32, #tpu.memory_space<vmem>>, vector<4x1x8xf32>
    %c0_65 = arith.constant 0 : index
    %c0_66 = arith.constant 0 : index
    %c0_67 = arith.constant 0 : index
    %87 = vector.load %arg20[%c0_65, %c0_66, %c0_67] : memref<4x1x8xf32, #tpu.memory_space<vmem>>, vector<4x1x8xf32>
    %c0_68 = arith.constant 0 : index
    %c0_69 = arith.constant 0 : index
    %c0_70 = arith.constant 0 : index
    %88 = vector.load %arg21[%c0_68, %c0_69, %c0_70] : memref<4x8x32xbf16, #tpu.memory_space<vmem>>, vector<4x8x32xbf16>
    %c0_71 = arith.constant 0 : index
    %c0_72 = arith.constant 0 : index
    %89 = vector.load %arg22[%c0_71, %c0_72] : memref<1x32xf32, #tpu.memory_space<vmem>>, vector<1x32xf32>
    %90 = vector.shape_cast %80 : vector<4x32xbf16> to vector<1x4x32xbf16>
    %91 = vector.shape_cast %90 : vector<1x4x32xbf16> to vector<1x4x32xbf16>
    %92 = vector.broadcast %91 : vector<1x4x32xbf16> to vector<4x4x32xbf16>
    %93 = vector.shape_cast %3 : vector<4x32xbf16> to vector<1x4x32xbf16>
    %94 = vector.shape_cast %93 : vector<1x4x32xbf16> to vector<1x4x32xbf16>
    %95 = vector.broadcast %94 : vector<1x4x32xbf16> to vector<4x4x32xbf16>
    "tpu.trace_start"() <{level = 10 : i32, message = "hle,hed->hld"}> : () -> ()
    %cst_73 = arith.constant dense<0.000000e+00> : vector<4x4x8xf32>
    %96 = tpu.matmul %92, %82, %cst_73 {dimension_numbers = #tpu.dot_dimension_numbers<[2], [1], [1], [2], [0, 0, 0, 1, 1, 2], [0], [0]>} : vector<4x4x32xbf16>, vector<4x32x8xbf16>, vector<4x4x8xf32> -> vector<4x4x8xf32>
    "tpu.trace_stop"() : () -> ()
    %97 = vector.broadcast %85 : vector<4x1x8xf32> to vector<4x4x8xf32>
    %98 = arith.addf %96, %97 : vector<4x4x8xf32>
    "tpu.trace_start"() <{level = 10 : i32, message = "hse,hed->hsd"}> : () -> ()
    %cst_74 = arith.constant dense<0.000000e+00> : vector<4x4x8xf32>
    %99 = tpu.matmul %95, %83, %cst_74 {dimension_numbers = #tpu.dot_dimension_numbers<[2], [1], [1], [2], [0, 0, 0, 1, 1, 2], [0], [0]>} : vector<4x4x32xbf16>, vector<4x32x8xbf16>, vector<4x4x8xf32> -> vector<4x4x8xf32>
    "tpu.trace_stop"() : () -> ()
    %100 = vector.broadcast %86 : vector<4x1x8xf32> to vector<4x4x8xf32>
    %101 = arith.addf %99, %100 : vector<4x4x8xf32>
    "tpu.trace_start"() <{level = 10 : i32, message = "hse,hed->hsd"}> : () -> ()
    %cst_75 = arith.constant dense<0.000000e+00> : vector<4x4x8xf32>
    %102 = tpu.matmul %95, %84, %cst_75 {dimension_numbers = #tpu.dot_dimension_numbers<[2], [1], [1], [2], [0, 0, 0, 1, 1, 2], [0], [0]>} : vector<4x4x32xbf16>, vector<4x32x8xbf16>, vector<4x4x8xf32> -> vector<4x4x8xf32>
    "tpu.trace_stop"() : () -> ()
    %103 = vector.broadcast %87 : vector<4x1x8xf32> to vector<4x4x8xf32>
    %104 = arith.addf %102, %103 : vector<4x4x8xf32>
    %105 = arith.truncf %98 : vector<4x4x8xf32> to vector<4x4x8xbf16>
    %106 = arith.truncf %101 : vector<4x4x8xf32> to vector<4x4x8xbf16>
    "tpu.trace_start"() <{level = 10 : i32, message = "hld,hsd->hls"}> : () -> ()
    %cst_76 = arith.constant dense<0.000000e+00> : vector<4x4x4xf32>
    %107 = tpu.matmul %105, %106, %cst_76 {dimension_numbers = #tpu.dot_dimension_numbers<[2], [2], [1], [1], [0, 0, 0, 1, 1, 1], [0], [0]>} : vector<4x4x8xbf16>, vector<4x4x8xbf16>, vector<4x4x4xf32> -> vector<4x4x4xf32>
    "tpu.trace_stop"() : () -> ()
    %cst_77 = arith.constant 0.353553385 : f32
    %108 = vector.broadcast %cst_77 : f32 to vector<4x4x4xf32>
    %109 = arith.mulf %107, %108 : vector<4x4x4xf32>
    %110 = vector.shape_cast %81 : vector<4x4xf32> to vector<1x4x4xf32>
    %111 = vector.broadcast %110 : vector<1x4x4xf32> to vector<4x4x4xf32>
    %112 = arith.addf %109, %111 : vector<4x4x4xf32>
    %cst_78 = arith.constant dense<0xFF800000> : vector<4x4xf32>
    %113 = vector.multi_reduction <maximumf>, %112, %cst_78 [2] : vector<4x4x4xf32> to vector<4x4xf32>
    %114 = vector.shape_cast %113 : vector<4x4xf32> to vector<4x4x1xf32>
    %115 = vector.broadcast %114 : vector<4x4x1xf32> to vector<4x4x4xf32>
    %116 = arith.subf %112, %115 : vector<4x4x4xf32>
    %117 = math.exp %116 : vector<4x4x4xf32>
    %cst_79 = arith.constant dense<0.000000e+00> : vector<4x4xf32>
    %118 = vector.multi_reduction <add>, %117, %cst_79 [2] : vector<4x4x4xf32> to vector<4x4xf32>
    %119 = vector.shape_cast %118 : vector<4x4xf32> to vector<4x4x1xf32>
    %120 = tpu.reciprocal %119 {approx = true} : vector<4x4x1xf32> -> vector<4x4x1xf32>
    %121 = vector.broadcast %120 : vector<4x4x1xf32> to vector<4x4x4xf32>
    %122 = arith.mulf %117, %121 : vector<4x4x4xf32>
    %123 = arith.truncf %122 : vector<4x4x4xf32> to vector<4x4x4xbf16>
    %124 = arith.truncf %104 : vector<4x4x8xf32> to vector<4x4x8xbf16>
    "tpu.trace_start"() <{level = 10 : i32, message = "hls,hsd->hld"}> : () -> ()
    %cst_80 = arith.constant dense<0.000000e+00> : vector<4x4x8xf32>
    %125 = tpu.matmul %123, %124, %cst_80 {dimension_numbers = #tpu.dot_dimension_numbers<[2], [1], [1], [2], [0, 0, 0, 1, 1, 2], [0], [0]>} : vector<4x4x4xbf16>, vector<4x4x8xbf16>, vector<4x4x8xf32> -> vector<4x4x8xf32>
    "tpu.trace_stop"() : () -> ()
    %126 = arith.truncf %125 : vector<4x4x8xf32> to vector<4x4x8xbf16>
    "tpu.trace_start"() <{level = 10 : i32, message = "hld,hde->hle"}> : () -> ()
    %cst_81 = arith.constant dense<0.000000e+00> : vector<4x4x32xf32>
    %127 = tpu.matmul %126, %88, %cst_81 {dimension_numbers = #tpu.dot_dimension_numbers<[2], [1], [1], [2], [0, 0, 0, 1, 1, 2], [0], [0]>} : vector<4x4x8xbf16>, vector<4x8x32xbf16>, vector<4x4x32xf32> -> vector<4x4x32xf32>
    "tpu.trace_stop"() : () -> ()
    %cst_82 = arith.constant dense<0.000000e+00> : vector<4x32xf32>
    %128 = vector.multi_reduction <add>, %127, %cst_82 [0] : vector<4x4x32xf32> to vector<4x32xf32>
    %129 = vector.broadcast %89 : vector<1x32xf32> to vector<4x32xf32>
    %130 = arith.addf %128, %129 : vector<4x32xf32>
    %131 = arith.addf %79, %130 : vector<4x32xf32>
    %c0_83 = arith.constant 0 : index
    %c0_84 = arith.constant 0 : index
    %132 = vector.load %arg23[%c0_83, %c0_84] : memref<1x32xf32, #tpu.memory_space<vmem>>, vector<1x32xf32>
    %c0_85 = arith.constant 0 : index
    %c0_86 = arith.constant 0 : index
    %133 = vector.load %arg24[%c0_85, %c0_86] : memref<1x32xf32, #tpu.memory_space<vmem>>, vector<1x32xf32>
    %cst_87 = arith.constant dense<0.000000e+00> : vector<4xf32>
    %134 = vector.multi_reduction <add>, %131, %cst_87 [1] : vector<4x32xf32> to vector<4xf32>
    %135 = vector.shape_cast %134 : vector<4xf32> to vector<4x1xf32>
    %cst_88 = arith.constant 3.200000e+01 : f32
    %136 = vector.broadcast %cst_88 : f32 to vector<4x1xf32>
    %137 = arith.divf %135, %136 : vector<4x1xf32>
    %138 = vector.broadcast %137 : vector<4x1xf32> to vector<4x32xf32>
    %139 = arith.subf %131, %138 : vector<4x32xf32>
    %140 = arith.mulf %139, %139 : vector<4x32xf32>
    %cst_89 = arith.constant dense<0.000000e+00> : vector<4xf32>
    %141 = vector.multi_reduction <add>, %140, %cst_89 [1] : vector<4x32xf32> to vector<4xf32>
    %142 = vector.shape_cast %141 : vector<4xf32> to vector<4x1xf32>
    %cst_90 = arith.constant 3.200000e+01 : f32
    %143 = vector.broadcast %cst_90 : f32 to vector<4x1xf32>
    %144 = arith.divf %142, %143 : vector<4x1xf32>
    %145 = vector.broadcast %137 : vector<4x1xf32> to vector<4x32xf32>
    %146 = arith.subf %131, %145 : vector<4x32xf32>
    %cst_91 = arith.constant 9.99999974E-6 : f32
    %147 = vector.broadcast %cst_91 : f32 to vector<4x1xf32>
    %148 = arith.addf %144, %147 : vector<4x1xf32>
    %149 = math.rsqrt %148 : vector<4x1xf32>
    %150 = vector.broadcast %149 : vector<4x1xf32> to vector<4x32xf32>
    %151 = arith.mulf %146, %150 : vector<4x32xf32>
    %152 = vector.broadcast %132 : vector<1x32xf32> to vector<4x32xf32>
    %153 = arith.mulf %151, %152 : vector<4x32xf32>
    %154 = vector.broadcast %133 : vector<1x32xf32> to vector<4x32xf32>
    %155 = arith.addf %153, %154 : vector<4x32xf32>
    %156 = arith.truncf %155 : vector<4x32xf32> to vector<4x32xbf16>
    %c0_92 = arith.constant 0 : index
    %c0_93 = arith.constant 0 : index
    %157 = vector.load %arg25[%c0_92, %c0_93] : memref<32x64xbf16, #tpu.memory_space<vmem>>, vector<32x64xbf16>
    %cst_94 = arith.constant dense<0.000000e+00> : vector<4x64xf32>
    %158 = tpu.matmul %156, %157, %cst_94 {dimension_numbers = #tpu.dot_dimension_numbers<[1], [0], [0], [1], [0, 0, 1, 1], [], []>} : vector<4x32xbf16>, vector<32x64xbf16>, vector<4x64xf32> -> vector<4x64xf32>
    %c0_95 = arith.constant 0 : index
    %c0_96 = arith.constant 0 : index
    %159 = vector.load %arg26[%c0_95, %c0_96] : memref<1x64xf32, #tpu.memory_space<vmem>>, vector<1x64xf32>
    %160 = vector.broadcast %159 : vector<1x64xf32> to vector<4x64xf32>
    %161 = arith.addf %158, %160 : vector<4x64xf32>
    %cst_97 = arith.constant 0.000000e+00 : f32
    %162 = vector.broadcast %cst_97 : f32 to vector<4x64xf32>
    %163 = arith.maximumf %161, %162 : vector<4x64xf32>
    %164 = arith.truncf %163 : vector<4x64xf32> to vector<4x64xbf16>
    %c0_98 = arith.constant 0 : index
    %c0_99 = arith.constant 0 : index
    %165 = vector.load %arg27[%c0_98, %c0_99] : memref<64x32xbf16, #tpu.memory_space<vmem>>, vector<64x32xbf16>
    %cst_100 = arith.constant dense<0.000000e+00> : vector<4x32xf32>
    %166 = tpu.matmul %164, %165, %cst_100 {dimension_numbers = #tpu.dot_dimension_numbers<[1], [0], [0], [1], [0, 0, 1, 1], [], []>} : vector<4x64xbf16>, vector<64x32xbf16>, vector<4x32xf32> -> vector<4x32xf32>
    %c0_101 = arith.constant 0 : index
    %c0_102 = arith.constant 0 : index
    %167 = vector.load %arg28[%c0_101, %c0_102] : memref<1x32xf32, #tpu.memory_space<vmem>>, vector<1x32xf32>
    %168 = vector.broadcast %167 : vector<1x32xf32> to vector<4x32xf32>
    %169 = arith.addf %166, %168 : vector<4x32xf32>
    %170 = arith.addf %155, %169 : vector<4x32xf32>
    %c0_103 = arith.constant 0 : index
    %c0_104 = arith.constant 0 : index
    %171 = vector.load %arg29[%c0_103, %c0_104] : memref<1x32xf32, #tpu.memory_space<vmem>>, vector<1x32xf32>
    %c0_105 = arith.constant 0 : index
    %c0_106 = arith.constant 0 : index
    %172 = vector.load %arg30[%c0_105, %c0_106] : memref<1x32xf32, #tpu.memory_space<vmem>>, vector<1x32xf32>
    %cst_107 = arith.constant dense<0.000000e+00> : vector<4xf32>
    %173 = vector.multi_reduction <add>, %170, %cst_107 [1] : vector<4x32xf32> to vector<4xf32>
    %174 = vector.shape_cast %173 : vector<4xf32> to vector<4x1xf32>
    %cst_108 = arith.constant 3.200000e+01 : f32
    %175 = vector.broadcast %cst_108 : f32 to vector<4x1xf32>
    %176 = arith.divf %174, %175 : vector<4x1xf32>
    %177 = vector.broadcast %176 : vector<4x1xf32> to vector<4x32xf32>
    %178 = arith.subf %170, %177 : vector<4x32xf32>
    %179 = arith.mulf %178, %178 : vector<4x32xf32>
    %cst_109 = arith.constant dense<0.000000e+00> : vector<4xf32>
    %180 = vector.multi_reduction <add>, %179, %cst_109 [1] : vector<4x32xf32> to vector<4xf32>
    %181 = vector.shape_cast %180 : vector<4xf32> to vector<4x1xf32>
    %cst_110 = arith.constant 3.200000e+01 : f32
    %182 = vector.broadcast %cst_110 : f32 to vector<4x1xf32>
    %183 = arith.divf %181, %182 : vector<4x1xf32>
    %184 = vector.broadcast %176 : vector<4x1xf32> to vector<4x32xf32>
    %185 = arith.subf %170, %184 : vector<4x32xf32>
    %cst_111 = arith.constant 9.99999974E-6 : f32
    %186 = vector.broadcast %cst_111 : f32 to vector<4x1xf32>
    %187 = arith.addf %183, %186 : vector<4x1xf32>
    %188 = math.rsqrt %187 : vector<4x1xf32>
    %189 = vector.broadcast %188 : vector<4x1xf32> to vector<4x32xf32>
    %190 = arith.mulf %185, %189 : vector<4x32xf32>
    %191 = vector.broadcast %171 : vector<1x32xf32> to vector<4x32xf32>
    %192 = arith.mulf %190, %191 : vector<4x32xf32>
    %193 = vector.broadcast %172 : vector<1x32xf32> to vector<4x32xf32>
    %194 = arith.addf %192, %193 : vector<4x32xf32>
    %195 = arith.truncf %194 : vector<4x32xf32> to vector<4x32xbf16>
    %c0_112 = arith.constant 0 : index
    %c0_113 = arith.constant 0 : index
    %c0_114 = arith.constant 0 : index
    %196 = vector.load %arg31[%c0_112, %c0_113, %c0_114] : memref<1x4x32xbf16, #tpu.memory_space<vmem>>, vector<1x4x32xbf16>
    %197 = vector.shape_cast %196 : vector<1x4x32xbf16> to vector<4x32xbf16>
    %198 = vector.shape_cast %195 : vector<4x32xbf16> to vector<1x4x32xbf16>
    tpu.vector_store %arg31[%c0_112, %c0_113, %c0_114], %198 {strides = array<i32>} : memref<1x4x32xbf16, #tpu.memory_space<vmem>>, vector<1x4x32xbf16>,
    return
  }
  func.func @transform_0(%arg0: i32) -> (i32, i32, i32) {
    %c0_i32 = arith.constant 0 : i32
    %c0_i32_0 = arith.constant 0 : i32
    %c0_i32_1 = arith.constant 0 : i32
    return %arg0, %c0_i32, %c0_i32_0 : i32, i32, i32
  }
  func.func @transform_1(%arg0: i32) -> (i32, i32, i32) {
    %c0_i32 = arith.constant 0 : i32
    %c0_i32_0 = arith.constant 0 : i32
    %c0_i32_1 = arith.constant 0 : i32
    return %arg0, %c0_i32, %c0_i32_0 : i32, i32, i32
  }
  func.func @transform_2(%arg0: i32) -> (i32, i32) {
    %c0_i32 = arith.constant 0 : i32
    %c0_i32_0 = arith.constant 0 : i32
    %c0_i32_1 = arith.constant 0 : i32
    return %c0_i32, %c0_i32_0 : i32, i32
  }
  func.func @transform_3(%arg0: i32) -> (i32, i32) {
    %c0_i32 = arith.constant 0 : i32
    %c0_i32_0 = arith.constant 0 : i32
    %c0_i32_1 = arith.constant 0 : i32
    return %c0_i32, %c0_i32_0 : i32, i32
  }
  func.func @transform_4(%arg0: i32) -> (i32, i32, i32) {
    %c0_i32 = arith.constant 0 : i32
    %c0_i32_0 = arith.constant 0 : i32
    %c0_i32_1 = arith.constant 0 : i32
    %c0_i32_2 = arith.constant 0 : i32
    return %c0_i32, %c0_i32_0, %c0_i32_1 : i32, i32, i32
  }
  func.func @transform_5(%arg0: i32) -> (i32, i32, i32) {
    %c0_i32 = arith.constant 0 : i32
    %c0_i32_0 = arith.constant 0 : i32
    %c0_i32_1 = arith.constant 0 : i32
    %c0_i32_2 = arith.constant 0 : i32
    return %c0_i32, %c0_i32_0, %c0_i32_1 : i32, i32, i32
  }
  func.func @transform_6(%arg0: i32) -> (i32, i32, i32) {
    %c0_i32 = arith.constant 0 : i32
    %c0_i32_0 = arith.constant 0 : i32
    %c0_i32_1 = arith.constant 0 : i32
    %c0_i32_2 = arith.constant 0 : i32
    return %c0_i32, %c0_i32_0, %c0_i32_1 : i32, i32, i32
  }
  func.func @transform_7(%arg0: i32) -> (i32, i32, i32) {
    %c0_i32 = arith.constant 0 : i32
    %c0_i32_0 = arith.constant 0 : i32
    %c0_i32_1 = arith.constant 0 : i32
    %c0_i32_2 = arith.constant 0 : i32
    return %c0_i32, %c0_i32_0, %c0_i32_1 : i32, i32, i32
  }
  func.func @transform_8(%arg0: i32) -> (i32, i32, i32) {
    %c0_i32 = arith.constant 0 : i32
    %c0_i32_0 = arith.constant 0 : i32
    %c0_i32_1 = arith.constant 0 : i32
    %c0_i32_2 = arith.constant 0 : i32
    return %c0_i32, %c0_i32_0, %c0_i32_1 : i32, i32, i32
  }
  func.func @transform_9(%arg0: i32) -> (i32, i32, i32) {
    %c0_i32 = arith.constant 0 : i32
    %c0_i32_0 = arith.constant 0 : i32
    %c0_i32_1 = arith.constant 0 : i32
    %c0_i32_2 = arith.constant 0 : i32
    return %c0_i32, %c0_i32_0, %c0_i32_1 : i32, i32, i32
  }
  func.func @transform_10(%arg0: i32) -> (i32, i32, i32) {
    %c0_i32 = arith.constant 0 : i32
    %c0_i32_0 = arith.constant 0 : i32
    %c0_i32_1 = arith.constant 0 : i32
    %c0_i32_2 = arith.constant 0 : i32
    return %c0_i32, %c0_i32_0, %c0_i32_1 : i32, i32, i32
  }
  func.func @transform_11(%arg0: i32) -> (i32, i32) {
    %c0_i32 = arith.constant 0 : i32
    %c0_i32_0 = arith.constant 0 : i32
    %c0_i32_1 = arith.constant 0 : i32
    return %c0_i32, %c0_i32_0 : i32, i32
  }
  func.func @transform_12(%arg0: i32) -> (i32, i32) {
    %c0_i32 = arith.constant 0 : i32
    %c0_i32_0 = arith.constant 0 : i32
    %c0_i32_1 = arith.constant 0 : i32
    return %c0_i32, %c0_i32_0 : i32, i32
  }
  func.func @transform_13(%arg0: i32) -> (i32, i32) {
    %c0_i32 = arith.constant 0 : i32
    %c0_i32_0 = arith.constant 0 : i32
    %c0_i32_1 = arith.constant 0 : i32
    return %c0_i32, %c0_i32_0 : i32, i32
  }
  func.func @transform_14(%arg0: i32) -> (i32, i32, i32) {
    %c0_i32 = arith.constant 0 : i32
    %c0_i32_0 = arith.constant 0 : i32
    %c0_i32_1 = arith.constant 0 : i32
    %c0_i32_2 = arith.constant 0 : i32
    return %c0_i32, %c0_i32_0, %c0_i32_1 : i32, i32, i32
  }
  func.func @transform_15(%arg0: i32) -> (i32, i32, i32) {
    %c0_i32 = arith.constant 0 : i32
    %c0_i32_0 = arith.constant 0 : i32
    %c0_i32_1 = arith.constant 0 : i32
    %c0_i32_2 = arith.constant 0 : i32
    return %c0_i32, %c0_i32_0, %c0_i32_1 : i32, i32, i32
  }
  func.func @transform_16(%arg0: i32) -> (i32, i32, i32) {
    %c0_i32 = arith.constant 0 : i32
    %c0_i32_0 = arith.constant 0 : i32
    %c0_i32_1 = arith.constant 0 : i32
    %c0_i32_2 = arith.constant 0 : i32
    return %c0_i32, %c0_i32_0, %c0_i32_1 : i32, i32, i32
  }
  func.func @transform_17(%arg0: i32) -> (i32, i32, i32) {
    %c0_i32 = arith.constant 0 : i32
    %c0_i32_0 = arith.constant 0 : i32
    %c0_i32_1 = arith.constant 0 : i32
    %c0_i32_2 = arith.constant 0 : i32
    return %c0_i32, %c0_i32_0, %c0_i32_1 : i32, i32, i32
  }
  func.func @transform_18(%arg0: i32) -> (i32, i32, i32) {
    %c0_i32 = arith.constant 0 : i32
    %c0_i32_0 = arith.constant 0 : i32
    %c0_i32_1 = arith.constant 0 : i32
    %c0_i32_2 = arith.constant 0 : i32
    return %c0_i32, %c0_i32_0, %c0_i32_1 : i32, i32, i32
  }
  func.func @transform_19(%arg0: i32) -> (i32, i32, i32) {
    %c0_i32 = arith.constant 0 : i32
    %c0_i32_0 = arith.constant 0 : i32
    %c0_i32_1 = arith.constant 0 : i32
    %c0_i32_2 = arith.constant 0 : i32
    return %c0_i32, %c0_i32_0, %c0_i32_1 : i32, i32, i32
  }
  func.func @transform_20(%arg0: i32) -> (i32, i32, i32) {
    %c0_i32 = arith.constant 0 : i32
    %c0_i32_0 = arith.constant 0 : i32
    %c0_i32_1 = arith.constant 0 : i32
    %c0_i32_2 = arith.constant 0 : i32
    return %c0_i32, %c0_i32_0, %c0_i32_1 : i32, i32, i32
  }
  func.func @transform_21(%arg0: i32) -> (i32, i32) {
    %c0_i32 = arith.constant 0 : i32
    %c0_i32_0 = arith.constant 0 : i32
    %c0_i32_1 = arith.constant 0 : i32
    return %c0_i32, %c0_i32_0 : i32, i32
  }
  func.func @transform_22(%arg0: i32) -> (i32, i32) {
    %c0_i32 = arith.constant 0 : i32
    %c0_i32_0 = arith.constant 0 : i32
    %c0_i32_1 = arith.constant 0 : i32
    return %c0_i32, %c0_i32_0 : i32, i32
  }
  func.func @transform_23(%arg0: i32) -> (i32, i32) {
    %c0_i32 = arith.constant 0 : i32
    %c0_i32_0 = arith.constant 0 : i32
    %c0_i32_1 = arith.constant 0 : i32
    return %c0_i32, %c0_i32_0 : i32, i32
  }
  func.func @transform_24(%arg0: i32) -> (i32, i32) {
    %c0_i32 = arith.constant 0 : i32
    %c0_i32_0 = arith.constant 0 : i32
    %c0_i32_1 = arith.constant 0 : i32
    return %c0_i32, %c0_i32_0 : i32, i32
  }
  func.func @transform_25(%arg0: i32) -> (i32, i32) {
    %c0_i32 = arith.constant 0 : i32
    %c0_i32_0 = arith.constant 0 : i32
    %c0_i32_1 = arith.constant 0 : i32
    return %c0_i32, %c0_i32_0 : i32, i32
  }
  func.func @transform_26(%arg0: i32) -> (i32, i32) {
    %c0_i32 = arith.constant 0 : i32
    %c0_i32_0 = arith.constant 0 : i32
    %c0_i32_1 = arith.constant 0 : i32
    return %c0_i32, %c0_i32_0 : i32, i32
  }
  func.func @transform_27(%arg0: i32) -> (i32, i32) {
    %c0_i32 = arith.constant 0 : i32
    %c0_i32_0 = arith.constant 0 : i32
    %c0_i32_1 = arith.constant 0 : i32
    return %c0_i32, %c0_i32_0 : i32, i32
  }
  func.func @transform_28(%arg0: i32) -> (i32, i32) {
    %c0_i32 = arith.constant 0 : i32
    %c0_i32_0 = arith.constant 0 : i32
    %c0_i32_1 = arith.constant 0 : i32
    return %c0_i32, %c0_i32_0 : i32, i32
  }
  func.func @transform_29(%arg0: i32) -> (i32, i32) {
    %c0_i32 = arith.constant 0 : i32
    %c0_i32_0 = arith.constant 0 : i32
    %c0_i32_1 = arith.constant 0 : i32
    return %c0_i32, %c0_i32_0 : i32, i32
  }
  func.func @transform_30(%arg0: i32) -> (i32, i32, i32) {
    %c0_i32 = arith.constant 0 : i32
    %c0_i32_0 = arith.constant 0 : i32
    %c0_i32_1 = arith.constant 0 : i32
    return %arg0, %c0_i32, %c0_i32_0 : i32, i32, i32
  }
}

</mosaic_0001>

<bundles_post_ra>
// kernel: translation_model_forward.9
= control target key start
LH: loop header
LB: loop body
LE: loop exit
PB: predicated region body
PF: predicated region fallthrough
CT: control target
= control target key end

     0   :  { %vm31_vm0 = vcmask 261120   ;;  %v179_v5 = vmov 32.0   ;;  %vm95_vm6 = vcmask 257024   ;;  %s239_s0 = inlined_call_operand.vmem [shape: bf16[16,32], index: 0, kind: input, shape index: {}]   ;;  %s240_s1 = inlined_call_operand.vmem [shape: f32[1,32], index: 1, kind: input, shape index: {}]   ;;  %s241_s2 = inlined_call_operand.vmem [shape: f32[1,32], index: 2, kind: input, shape index: {}]   ;;  %s242_s4 = inlined_call_operand.vmem [shape: f32[1,128], index: 4, kind: input, shape index: {}]   ;;  %s243_s3 = inlined_call_operand.vmem [shape: bf16[32,128], index: 3, kind: input, shape index: {}]   ;;  %s244_s5 = inlined_call_operand.vmem [shape: f32[16,128], index: 5, kind: output, shape index: {}]  }
   0x1   :  { %v166_v0 = vld [vmem:[%s239_s0] sm:$0xff]   ;;  %173 = vrcp.f32 %v179_v5  ;;  %v164_v25 = vld [vmem:[%s243_s3 + $0x8] sm:$0xff] }
   0x2   :  { %v167_v1 = vunpack.c.l.bf16 %v166_v0  ;;  %v168_v3 = vunpack.c.h.bf16 %v166_v0  ;;  %135 = vmatpush.bf16.msra.mxu0 %v164_v25  ;;  %v163_v28 = vld [vmem:[%s243_s3] sm:$0xff] }
   0x3   :  { %v170_v38 = vld [vmem:[%s240_s1] ss:$0 sm:$0xff] }
   0x4   :  { %v32_v2 = vsel %vm31_vm0, %v167_v1, 0.0  ;;  %v35_v4 = vsel %vm31_vm0, %v168_v3, 0.0  ;;  %v171_v41 = vld [vmem:[%s241_s2] ss:$0 sm:$0xff] }
   0x5   :  { %33 = vadd.xlane.f32.xlu0 %v32_v2  ;;  %v172_v55 = vld [vmem:[%s242_s4] ss:$0 sm:$0xff] }
   0x6   :  { %136 = vmatpush.bf16.msra.mxu0 %v163_v28 }
   0x7   :  { %v174_v6 = vpop.eup %173 }
   0x8   :  { %v39_v7 = vmul.f32 32.0, %v174_v6  ;;  %vm43_vm1 = vweird.f32 %v174_v6 }
   0xa   :  { %v40_v8 = vsub.f32 1.0, %v39_v7 }
   0xc   :  { %v41_v9 = vmul.f32 %v174_v6, %v40_v8 }
   0xd   :  { %36 = vadd.xlane.f32.xlu0 %v35_v4 }
   0xe   :  { %v42_v10 = vadd.f32 %v174_v6, %v41_v9 }
  0x10   :  { %v44_v11 = vsel %vm43_vm1, %v174_v6, %v42_v10 }
  0x78   :  { %v34_v12 = vpop.xlane.xlu0 %33 }
  0x79   :  { %v45_v13 = vmul.f32 %v44_v11, %v34_v12 }
  0x7b   :  { %v47_v14 = vsub.f32 %v167_v1, %v45_v13 }
  0x7d   :  { %v49_v15 = vmul.f32 %v47_v14, %v47_v14 }
  0x7f   :  { %v51_v16 = vsel %vm31_vm0, %v49_v15, 0.0 }
  0x80   :  { %52 = vadd.xlane.f32.xlu1 %v51_v16  ;;  %v37_v17 = vpop.xlane.xlu0 %36 }
  0x81   :  { %v46_v18 = vmul.f32 %v44_v11, %v37_v17 }
  0x83   :  { %v48_v19 = vsub.f32 %v168_v3, %v46_v18 }
  0x85   :  { %v50_v20 = vmul.f32 %v48_v19, %v48_v19 }
  0x87   :  { %v54_v21 = vsel %vm31_vm0, %v50_v20, 0.0 }
  0x88   :  { %55 = vadd.xlane.f32.xlu1 %v54_v21 }
  0xf3   :  { %v53_v22 = vpop.xlane.xlu1 %52 }
  0xf4   :  { %v57_v23 = vmul.f32 %v53_v22, %v44_v11 }
  0xf6   :  { %v59_v24 = vadd.f32 1e-05, %v57_v23 }
  0xf8   :  { %175 = vrsqrt.f32 %v59_v24  ;;  %vm67_vm3 = vweird.f32 %v59_v24 }
  0xfb   :  { %v56_v26 = vpop.xlane.xlu1 %55 }
  0xfc   :  { %v58_v27 = vmul.f32 %v56_v26, %v44_v11 }
  0xfe   :  { %v176_v29 = vpop.eup %175  ;;  %v60_v30 = vadd.f32 1e-05, %v58_v27 }
  0xff   :  { %v62_v31 = vmul.f32 %v176_v29, %v59_v24  ;;  %vm68_vm2 = vweird.f32 %v176_v29 }
 0x100   :  { %177 = vrsqrt.f32 %v60_v30  ;;  %vm69_vm4 = vmor %vm67_vm3, %vm68_vm2  ;;  %vm77_vm7 = vweird.f32 %v60_v30 }
 0x101   :  { %v63_v32 = vmul.f32 %v176_v29, %v62_v31 }
 0x103   :  { %v64_v33 = vmul.f32 0.5, %v63_v32 }
 0x105   :  { %v65_v34 = vsub.f32 1.5, %v64_v33 }
 0x106   :  { %v178_v35 = vpop.eup %177 }
 0x107   :  { %v66_v36 = vmul.f32 %v176_v29, %v65_v34  ;;  %v72_v37 = vmul.f32 %v178_v35, %v60_v30  ;;  %vm78_vm5 = vweird.f32 %v178_v35 }
 0x108   :  { %vm79_vm8 = vmor %vm77_vm7, %vm78_vm5 }
 0x109   :  { %v70_v39 = vsel %vm69_vm4, %v176_v29, %v66_v36  ;;  %v73_v40 = vmul.f32 %v178_v35, %v72_v37 }
 0x10a   :  { %v81_v42 = vmul.f32 %v70_v39, %v47_v14 }
 0x10b   :  { %v74_v43 = vmul.f32 0.5, %v73_v40 }
 0x10c   :  { %v86_v44 = vmul.f32 %v170_v38, %v81_v42 }
 0x10d   :  { %v75_v45 = vsub.f32 1.5, %v74_v43 }
 0x10e   :  { %v91_v46 = vadd.f32 %v171_v41, %v86_v44 }
 0x10f   :  { %v76_v47 = vmul.f32 %v178_v35, %v75_v45 }
 0x110   :  { %v93_v48 = vpack.c.bf16 %v91_v46, %v91_v46 }
 0x111   :  { %v80_v49 = vsel %vm79_vm8, %v178_v35, %v76_v47 }
 0x112   :  { %96 = vst.msk [vmem:[#allocation2] sm:$0xf] %vm95_vm6, %v93_v48  ;;  %v82_v50 = vmul.f32 %v80_v49, %v48_v19 }
 0x114   :  { %v87_v51 = vmul.f32 %v170_v38, %v82_v50 }
 0x116   :  { %v92_v52 = vadd.f32 %v171_v41, %v87_v51 }
 0x118   :  { %v94_v53 = vpack.c.bf16 %v92_v52, %v92_v52 }
 0x11a   :  { %97 = vst.msk [vmem:[#allocation2 + $0x4] sm:$0xf] %vm95_vm6, %v94_v53 }
 0x121   :  { %v162_v54 = vld [vmem:[#allocation2] sm:$0xff] }
 0x122   :  { %161 = vmatmul.msk.bf16.vlgmr.msra.gmra.mxu0 %vm31_vm0, %v162_v54 }
 0x19f   :  { %v138_v56 = vpop.f32.mrf.mxu0 }
 0x1a0   :  { %v139_v57 = vadd.f32 %v172_v55, %v138_v56 }
 0x1a2   :  { %143 = vst [vmem:[%s244_s5] sm:$0xff] %v139_v57 }
 0x1a7   :  { %v140_v58 = vpop.f32.mrf.mxu0 }
 0x1a8   :  { %v141_v59 = vadd.f32 %v172_v55, %v140_v58 }
 0x1aa   :  { %144 = vst [vmem:[%s244_s5 + $0x8] sm:$0xff] %v141_v59 }

// kernel: translation_model_forward.5
= control target key start
LH: loop header
LB: loop body
LE: loop exit
PB: predicated region body
PF: predicated region fallthrough
CT: control target
= control target key end

     0   :  { %s2222_s0 = inlined_call_operand.vmem [shape: bf16[4,4,32], index: 0, kind: input, shape index: {}]   ;;  %s2223_s1 = inlined_call_operand.vmem [shape: f32[4,4], index: 1, kind: input, shape index: {}]   ;;  %s2224_s2 = inlined_call_operand.vmem [shape: f32[4,4], index: 2, kind: input, shape index: {}]   ;;  %s2225_s3 = inlined_call_operand.vmem [shape: bf16[4,32,8], index: 3, kind: input, shape index: {}]   ;;  %s2226_s4 = inlined_call_operand.vmem [shape: bf16[4,32,8], index: 4, kind: input, shape index: {}]   ;;  %s2227_s5 = inlined_call_operand.vmem [shape: bf16[4,32,8], index: 5, kind: input, shape index: {}]   ;;  %s2228_s6 = inlined_call_operand.vmem [shape: f32[4,1,8], index: 6, kind: input, shape index: {}]   ;;  %s2229_s7 = inlined_call_operand.vmem [shape: f32[4,1,8], index: 7, kind: input, shape index: {}]   ;;  %s2230_s8 = inlined_call_operand.vmem [shape: f32[4,1,8], index: 8, kind: input, shape index: {}]   ;;  %s2231_s9 = inlined_call_operand.vmem [shape: bf16[4,8,32], index: 9, kind: input, shape index: {}]   ;;  %s2232_s10 = inlined_call_operand.vmem [shape: f32[1,32], index: 10, kind: input, shape index: {}]   ;;  %s2233_s11 = inlined_call_operand.vmem [shape: f32[1,32], index: 11, kind: input, shape index: {}]   ;;  %s2234_s12 = inlined_call_operand.vmem [shape: f32[1,32], index: 12, kind: input, shape index: {}]   ;;  %s2235_s13 = inlined_call_operand.vmem [shape: bf16[32,64], index: 13, kind: input, shape index: {}]   ;;  %s2236_s14 = inlined_call_operand.vmem [shape: f32[1,64], index: 14, kind: input, shape index: {}]   ;;  %s2237_s15 = inlined_call_operand.vmem [shape: bf16[64,32], index: 15, kind: input, shape index: {}]   ;;  %s2238_s16 = inlined_call_operand.vmem [shape: f32[1,32], index: 16, kind: input, shape index: {}]   ;;  %s2239_s17 = inlined_call_operand.vmem [shape: f32[1,32], index: 17, kind: input, shape index: {}]   ;;  %s2240_s18 = inlined_call_operand.vmem [shape: f32[1,32], index: 18, kind: input, shape index: {}]   ;;  %s2241_s19 = inlined_call_operand.vmem [shape: f32[1,32], index: 19, kind: input, shape index: {}]   ;;  %s2242_s20 = inlined_call_operand.vmem [shape: f32[1,32], index: 20, kind: input, shape index: {}]   ;;  %s2243_s21 = inlined_call_operand.vmem [shape: bf16[4,4,32], index: 21, kind: output, shape index: {}]  }
   0x1   :  { %2249 = sst [smem:[#allocation3_spill]] %s2222_s0 }
   0x2   :  { %2250 = sst [smem:[#allocation4_spill]] %s2223_s1 }
   0x3   :  { %2251 = sst [smem:[#allocation5_spill]] %s2224_s2  ;;  %s1959_s2 = smov 0  }
   0x4   :  { %2252 = sst [smem:[#allocation6_spill]] %s2225_s3 }
   0x5   :  { %2253 = sst [smem:[#allocation7_spill]] %s2226_s4 }
   0x6   :  { %2254 = sst [smem:[#allocation8_spill]] %s2227_s5 }
   0x7 LB: > { %2255 = sst [smem:[#allocation2_spill]] %s1846_s2  ;;  %s1965_s25 = sadd.s32 4294967295, %s1846_s2   ;;  %s1846_s2 = sphi %s1959_s2, %s31_s2  }
   0x8   : > { %p1608_p0 = scmp.ge.s32.totalorder %s1846_s2, 1  ;;  %p586_p1 = scmp.lt.s32.totalorder %s1846_s2, 5 }
   0xa   : > { %p587_p2 = pnand %p1608_p0, %p586_p1 }
   0xb   : > { %s2256_s26 = sld [smem:[#allocation6_spill]] (!%p587_p2)  ;;  %p644_p3 = scmp.lt.s32.totalorder (!%p587_p2), %s1965_s25, 3 }
   0xc   : > { %590 = sbr.rel (%p587_p2) target bundleno = 1663 (0x67f), region = 104  ;;  %s2257_s0 = sld [smem:[#allocation7_spill]] (!%p587_p2) }
   0xd   : > { %s2258_s23 = sld [smem:[#allocation3_spill]] (!%p587_p2) }
   0xe   : > { %s2259_s20 = sld [smem:[#allocation8_spill]] (!%p587_p2) }
   0xf   : > { %s2260_s5 = sld [smem:[#allocation5_spill]] (!%p587_p2) }
  0x10   : > { %s2261_s30 = sld [smem:[#allocation4_spill]] (!%p587_p2) }
  0x11   : > { %v1760_v0 = vld [vmem:[%s2256_s26 + $0x8] sm:$0xff]  ;;  %v1762_v1 = vld [vmem:[%s2256_s26 + $0x18] sm:$0xff]  ;;  %v1759_v4 = vld [vmem:[%s2256_s26] sm:$0xff]  ;;  %s1989_s1 = scalar_select %p644_p3, %s1965_s25, 3  ;;  %vm749_vm0 = vcmask 261120   ;;  %vm1073_vm1 = vcmask 64512  }
  0x12   : > { %v1764_v2 = vld [vmem:[%s2256_s26 + $0x28] sm:$0xff]  ;;  %v1766_v3 = vld [vmem:[%s2256_s26 + $0x38] sm:$0xff]  ;;  %759 = vmatpush.bf16.msra.mxu0 %v1760_v0  ;;  %784 = vmatpush.bf16.msra.mxu1 %v1762_v1  ;;  %v1761_v5 = vld [vmem:[%s2256_s26 + $0x10] sm:$0xff]  ;;  %vm1215_vm2 = vcmask 1041408   ;;  %vm1158_vm3 = vcmask 27648   ;;  %vm1211_vm4 = vcmask 31744  }
  0x13   : > { %809 = vmatpush.bf16.msra.mxu2 %v1764_v2  ;;  %834 = vmatpush.bf16.msra.mxu3 %v1766_v3  ;;  %v1763_v6 = vld [vmem:[%s2256_s26 + $0x20] sm:$0xff]  ;;  %v1765_v7 = vld [vmem:[%s2256_s26 + $0x30] sm:$0xff]  ;;  %s1609_s3 = sshll.u32 %s1989_s1, 1  ;;  %v1768_v8 = vld [vmem:[%s2257_s0 + $0x8] sm:$0xff]  ;;  %vm1296_vm5 = vcmask 1043456   ;;  %vm1370_vm6 = vcmask 257024  }
  0x14   : > { %v1770_v9 = vld [vmem:[%s2257_s0 + $0x18] sm:$0xff]  ;;  %s647_s2 = scalar_lea.vmem %s2258_s23, %s1609_s3  ;;  %v1772_v10 = vld [vmem:[%s2257_s0 + $0x28] sm:$0xff]  ;;  %v1767_v13 = vld [vmem:[%s2257_s0] sm:$0xff]  ;;  %vm1497_vm11 = vcmask 523264   ;;  %s651_s23 = scalar_lea.vmem %s2243_s21, %s1609_s3  ;;  %vm1548_vm15 = vcmask 254976  }
  0x15   : > { %v1774_v11 = vld [vmem:[%s2257_s0 + $0x38] sm:$0xff]  ;;  %v2015_v12 = vld [vmem:[%s647_s2] sm:$0x3]  ;;  %v1769_v14 = vld [vmem:[%s2257_s0 + $0x10] sm:$0xff]  ;;  %s656_s22 = scalar_lea.vmem %s2260_s5, %s1965_s25 }
  0x16   : > { %760 = vmatpush.bf16.msra.mxu0 %v1759_v4  ;;  %785 = vmatpush.bf16.msra.mxu1 %v1761_v5  ;;  %v1771_v15 = vld [vmem:[%s2257_s0 + $0x20] sm:$0xff]  ;;  %v1773_v16 = vld [vmem:[%s2257_s0 + $0x30] sm:$0xff]  ;;  %v1780_v17 = vld [vmem:[%s2259_s20 + $0x28] sm:$0xff] }
  0x17   : > { %810 = vmatpush.bf16.msra.mxu2 %v1763_v6  ;;  %835 = vmatpush.bf16.msra.mxu3 %v1765_v7  ;;  %v1776_v18 = vld [vmem:[%s2259_s20 + $0x8] sm:$0xff]  ;;  %v1778_v19 = vld [vmem:[%s2259_s20 + $0x18] sm:$0xff]  ;;  %v1779_v20 = vld [vmem:[%s2259_s20 + $0x20] sm:$0xff] }
  0x18   : > { %v1775_v21 = vld [vmem:[%s2259_s20] sm:$0xff]  ;;  %v1777_v22 = vld [vmem:[%s2259_s20 + $0x10] sm:$0xff]  ;;  %v1782_v23 = vld [vmem:[%s2259_s20 + $0x38] sm:$0xff] }
  0x19   : > { %1619 = vmatmul.msk.bf16.vlgmr.msra.gmra.mxu0 %vm749_vm0, %v2015_v12  ;;  %1628 = vmatmul.msk.bf16.vlgmr.msra.gmra.mxu1 %vm749_vm0, %v2015_v12  ;;  %v1781_v24 = vld [vmem:[%s2259_s20 + $0x30] sm:$0xff]  ;;  %v1802_v31 = vld [vmem:[%s2229_s7] ss:$0 sm:$0xff]  ;;  %v1803_v32 = vld [vmem:[%s2229_s7 + $0x1] ss:$0 sm:$0xff] }
  0x1a   : > { %871 = vmatpush.bf16.msrb.mxu0 %v1768_v8  ;;  %896 = vmatpush.bf16.msrb.mxu1 %v1770_v9  ;;  %v1799_v39 = vld [vmem:[%s2228_s6 + $0x1] ss:$0 sm:$0xff]  ;;  %v1798_v42 = vld [vmem:[%s2228_s6] ss:$0 sm:$0xff]  ;;  %v1804_v43 = vld [vmem:[%s2229_s7 + $0x2] ss:$0 sm:$0xff] }
  0x1b   : > { %1637 = vmatmul.msk.bf16.vlgmr.msra.gmra.mxu2 %vm749_vm0, %v2015_v12  ;;  %1646 = vmatmul.msk.bf16.vlgmr.msra.gmra.mxu3 %vm749_vm0, %v2015_v12  ;;  %v1805_v44 = vld [vmem:[%s2229_s7 + $0x3] ss:$0 sm:$0xff]  ;;  %v1800_v56 = vld [vmem:[%s2228_s6 + $0x2] ss:$0 sm:$0xff]  ;;  %v1806_v5 = vld [vmem:[%s2230_s8] ss:$0 sm:$0xff] }
  0x1c   : > { %921 = vmatpush.bf16.msrb.mxu2 %v1772_v10  ;;  %946 = vmatpush.bf16.msrb.mxu3 %v1774_v11  ;;  %v1801_v57 = vld [vmem:[%s2228_s6 + $0x3] ss:$0 sm:$0xff]  ;;  %v1807_v6 = vld [vmem:[%s2230_s8 + $0x1] ss:$0 sm:$0xff]  ;;  %v1808_v11 = vld [vmem:[%s2230_s8 + $0x2] ss:$0 sm:$0xff] }
  0x1e   : > { %872 = vmatpush.bf16.msrb.mxu0 %v1767_v13  ;;  %897 = vmatpush.bf16.msrb.mxu1 %v1769_v14 }
  0x20   : > { %922 = vmatpush.bf16.msrb.mxu2 %v1771_v15  ;;  %947 = vmatpush.bf16.msrb.mxu3 %v1773_v16 }
  0x22   : > { %983 = vmatpush.bf16.msra.mxu0 %v1776_v18  ;;  %1008 = vmatpush.bf16.msra.mxu1 %v1778_v19 }
  0x24   : > { %1033 = vmatpush.bf16.msra.mxu2 %v1780_v17  ;;  %1058 = vmatpush.bf16.msra.mxu3 %v1782_v23  ;;  %v1809_v23 = vld [vmem:[%s2230_s8 + $0x3] ss:$0 sm:$0xff] }
  0x26   : > { %984 = vmatpush.bf16.msra.mxu0 %v1775_v21  ;;  %1009 = vmatpush.bf16.msra.mxu1 %v1777_v22 }
  0x28   : > { %1034 = vmatpush.bf16.msra.mxu2 %v1779_v20  ;;  %1059 = vmatpush.bf16.msra.mxu3 %v1781_v24 }
  0x29   : > { %1655 = vmatmul.msk.bf16.vlgmr.msrb.gmra.mxu0 %vm749_vm0, %v2015_v12  ;;  %1664 = vmatmul.msk.bf16.vlgmr.msrb.gmra.mxu1 %vm749_vm0, %v2015_v12 }
  0x2b   : > { %1673 = vmatmul.msk.bf16.vlgmr.msrb.gmra.mxu2 %vm749_vm0, %v2015_v12  ;;  %1682 = vmatmul.msk.bf16.vlgmr.msrb.gmra.mxu3 %vm749_vm0, %v2015_v12 }
  0x39   : > { %1691 = vmatmul.msk.bf16.vlgmr.msra.gmra.mxu0 %vm749_vm0, %v2015_v12  ;;  %1700 = vmatmul.msk.bf16.vlgmr.msra.gmra.mxu1 %vm749_vm0, %v2015_v12 }
  0x3b   : > { %1709 = vmatmul.msk.bf16.vlgmr.msra.gmra.mxu2 %vm749_vm0, %v2015_v12  ;;  %1718 = vmatmul.msk.bf16.vlgmr.msra.gmra.mxu3 %vm749_vm0, %v2015_v12 }
  0x96   : > { %v762_v25 = vpop.f32.mrf.mxu0  ;;  %v787_v26 = vpop.f32.mrf.mxu1 }
  0x97   : > { %v788_v47 = vadd.f32 %v1799_v39, %v787_v26  ;;  %v763_v50 = vadd.f32 %v1798_v42, %v762_v25 }
  0x99   : > { %v1066_v55 = vpack.c.bf16 %v788_v47, %v788_v47  ;;  %v1065_v60 = vpack.c.bf16 %v763_v50, %v763_v50 }
  0x9e   : > { %v812_v27 = vpop.f32.mrf.mxu2  ;;  %v837_v28 = vpop.f32.mrf.mxu3 }
  0x9f   : > { %v764_v29 = vpop.f32.mrf.mxu0  ;;  %v789_v30 = vpop.f32.mrf.mxu1  ;;  %v813_v63 = vadd.f32 %v1800_v56, %v812_v27  ;;  %v838_v0 = vadd.f32 %v1801_v57, %v837_v28 }
  0xa0   : > { %v1810_v30 = vld [vmem:[%s656_s22] ss:$0 sm:$0xff] }
  0xa1   : > { %v1067_v3 = vpack.c.bf16 %v813_v63, %v813_v63  ;;  %v1068_v4 = vpack.c.bf16 %v838_v0, %v838_v0 }
  0xa6   : > { %v814_v33 = vpop.f32.mrf.mxu2  ;;  %v839_v34 = vpop.f32.mrf.mxu3 }
  0xa7   : > { %v874_v35 = vpop.f32.mrf.mxu0  ;;  %v899_v36 = vpop.f32.mrf.mxu1 }
  0xa8   : > { %v875_v37 = vadd.f32 %v1802_v31, %v874_v35  ;;  %v900_v38 = vadd.f32 %v1803_v32, %v899_v36  ;;  %v655_v31 = vld [vmem:[%s2261_s30] sm:$0xf] }
  0xa9   : > { %v659_v32 = vadd.f32 %v1810_v30, %v655_v31  ;;  %v722_v30 = vld [vmem:[%s2231_s9 + $0x8] sm:$0xf] }
  0xaa   : > { %v1069_v40 = vpack.c.bf16 %v875_v37, %v875_v37  ;;  %v1070_v41 = vpack.c.bf16 %v900_v38, %v900_v38  ;;  %v1336_v31 = vsel %vm1296_vm5, %v722_v30, 0 }
  0xac   : > { %v1078_v45 = vsel %vm1073_vm1, %v1069_v40, 0  ;;  %v1097_v46 = vsel %vm1073_vm1, %v1070_v41, 0 }
  0xad   : > { %1087 = vmatpush.bf16.xpose.msrb.mxu0 %v1078_v45  ;;  %1106 = vmatpush.bf16.xpose.msrb.mxu1 %v1097_v46 }
  0xae   : > { %v924_v48 = vpop.f32.mrf.mxu2  ;;  %v949_v49 = vpop.f32.mrf.mxu3 }
  0xaf   : > { %v925_v51 = vadd.f32 %v1804_v43, %v924_v48  ;;  %v950_v52 = vadd.f32 %v1805_v44, %v949_v49  ;;  %v876_v53 = vpop.f32.mrf.mxu0  ;;  %v901_v54 = vpop.f32.mrf.mxu1 }
  0xb1   : > { %v1071_v58 = vpack.c.bf16 %v925_v51, %v925_v51  ;;  %v1072_v59 = vpack.c.bf16 %v950_v52, %v950_v52 }
  0xb3   : > { %v1116_v61 = vsel %vm1073_vm1, %v1071_v58, 0  ;;  %v1135_v62 = vsel %vm1073_vm1, %v1072_v59, 0 }
  0xb4   : > { %1125 = vmatpush.bf16.xpose.msrb.mxu2 %v1116_v61  ;;  %1144 = vmatpush.bf16.xpose.msrb.mxu3 %v1135_v62 }
  0xb5   : > { %1719 = vmatmul.msk.bf16.vlgmr.msrb.gmra.mxu0 %vm1073_vm1, %v1065_v60  ;;  %1720 = vmatmul.msk.bf16.vlgmr.msrb.gmra.mxu1 %vm1073_vm1, %v1066_v55 }
  0xb6   : > { %v926_v1 = vpop.f32.mrf.mxu2  ;;  %v951_v2 = vpop.f32.mrf.mxu3 }
  0xb7   : > { %v986_v7 = vpop.f32.mrf.mxu0  ;;  %v1011_v8 = vpop.f32.mrf.mxu1 }
  0xb8   : > { %v987_v9 = vadd.f32 %v1806_v5, %v986_v7  ;;  %v1012_v10 = vadd.f32 %v1807_v6, %v1011_v8 }
  0xba   : > { %v1207_v13 = vpack.c.bf16 %v987_v9, %v987_v9  ;;  %v1208_v14 = vpack.c.bf16 %v1012_v10, %v1012_v10 }
  0xbb   : > { %1721 = vmatmul.msk.bf16.vlgmr.msrb.gmra.mxu2 %vm1073_vm1, %v1067_v3  ;;  %1722 = vmatmul.msk.bf16.vlgmr.msrb.gmra.mxu3 %vm1073_vm1, %v1068_v4 }
  0xbc   : > { %v1217_v16 = vsel %vm1215_vm2, %v1207_v13, 0  ;;  %v1236_v17 = vsel %vm1215_vm2, %v1208_v14, 0 }
  0xbd   : > { %1226 = vmatpush.bf16.msra.mxu0 %v1217_v16  ;;  %1245 = vmatpush.bf16.msra.mxu1 %v1236_v17 }
  0xbe   : > { %v1036_v15 = vpop.f32.mrf.mxu2  ;;  %v1061_v24 = vpop.f32.mrf.mxu3 }
  0xbf   : > { %v1037_v18 = vadd.f32 %v1808_v11, %v1036_v15  ;;  %v988_v20 = vpop.f32.mrf.mxu0  ;;  %v1013_v21 = vpop.f32.mrf.mxu1  ;;  %v1062_v26 = vadd.f32 %v1809_v23, %v1061_v24 }
  0xc1   : > { %v1209_v19 = vpack.c.bf16 %v1037_v18, %v1037_v18  ;;  %v1210_v27 = vpack.c.bf16 %v1062_v26, %v1062_v26  ;;  %v720_v26 = vld [vmem:[%s2231_s9] sm:$0xf] }
  0xc3   : > { %v1255_v22 = vsel %vm1215_vm2, %v1209_v19, 0  ;;  %v1274_v28 = vsel %vm1215_vm2, %v1210_v27, 0  ;;  %v1298_v27 = vsel %vm1296_vm5, %v720_v26, 0 }
  0xc4   : > { %1264 = vmatpush.bf16.msra.mxu2 %v1255_v22  ;;  %1283 = vmatpush.bf16.msra.mxu3 %v1274_v28  ;;  %v721_v28 = vld [vmem:[%s2231_s9 + $0x4] sm:$0xf] }
  0xc5   : > { %1307 = vmatpush.bf16.msrb.mxu0 %v1298_v27  ;;  %v1812_v27 = vld [vmem:[%s2233_s11] ss:$0 sm:$0xff] }
  0xc6   : > { %v1038_v25 = vpop.f32.mrf.mxu2  ;;  %v1063_v29 = vpop.f32.mrf.mxu3 }
  0xc7   : > { %v1317_v29 = vsel %vm1296_vm5, %v721_v28, 0 }
  0xc8   : > { %1326 = vmatpush.bf16.msrb.mxu1 %v1317_v29  ;;  %1345 = vmatpush.bf16.msrb.mxu2 %v1336_v31  ;;  %v1813_v29 = vld [vmem:[%s2234_s12] ss:$0 sm:$0xff] }
 0x132   : > { %v1089_v33 = vpop.f32.mrf.mxu0  ;;  %v1108_v34 = vpop.f32.mrf.mxu1 }
 0x133   : > { %v1150_v35 = vmul.f32 0.35355338, %v1089_v33  ;;  %v1151_v37 = vmul.f32 0.35355338, %v1108_v34 }
 0x135   : > { %v1154_v36 = vadd.f32 %v1150_v35, %v659_v32  ;;  %v1155_v41 = vadd.f32 %v1151_v37, %v659_v32 }
 0x137   : > { %v1159_v38 = vsel %vm1158_vm3, %v1154_v36, -inf  ;;  %v1162_v45 = vsel %vm1158_vm3, %v1155_v41, -inf }
 0x138   : > { %1160 = vmax.xlane.f32.xlu1 %v1159_v38 }
 0x13a   : > { %v1091_v39 = vpop.f32.mrf.mxu0  ;;  %v1110_v40 = vpop.f32.mrf.mxu1 }
 0x13e   : > { %v1127_v42 = vpop.f32.mrf.mxu2  ;;  %v1146_v43 = vpop.f32.mrf.mxu3 }
 0x13f   : > { %v1152_v44 = vmul.f32 0.35355338, %v1127_v42  ;;  %v1153_v47 = vmul.f32 0.35355338, %v1146_v43 }
 0x140   : > { %1163 = vmax.xlane.f32.xlu1 %v1162_v45 }
 0x141   : > { %v1156_v46 = vadd.f32 %v1152_v44, %v659_v32  ;;  %v1157_v51 = vadd.f32 %v1153_v47, %v659_v32  ;;  %v723_v32 = vld [vmem:[%s2231_s9 + $0xc] sm:$0xf] }
 0x142   : > { %v1355_v33 = vsel %vm1296_vm5, %v723_v32, 0 }
 0x143   : > { %v1165_v48 = vsel %vm1158_vm3, %v1156_v46, -inf  ;;  %v1168_v52 = vsel %vm1158_vm3, %v1157_v51, -inf  ;;  %1364 = vmatpush.bf16.msrb.mxu3 %v1355_v33 }
 0x144   : > { %1166 = vmax.xlane.f32.xlu0 %v1165_v48 }
 0x146   : > { %v1129_v49 = vpop.f32.mrf.mxu2  ;;  %v1148_v50 = vpop.f32.mrf.mxu3 }
 0x14c   : > { %1169 = vmax.xlane.f32.xlu0 %v1168_v52 }
 0x1ab   : > { %v1161_v53 = vpop.xlane.xlu1 %1160 }
 0x1ac   : > { %v1171_v54 = vsub.f32 %v1154_v36, %v1161_v53 }
 0x1ae   : > { %v1175_v55 = vmul.f32 1.442695, %v1171_v54 }
 0x1b0   : > { %1818 = vpow2.f32 %v1175_v55 }
 0x1b3   : > { %v1164_v56 = vpop.xlane.xlu1 %1163 }
 0x1b4   : > { %v1172_v57 = vsub.f32 %v1155_v41, %v1164_v56 }
 0x1b6   : > { %v1819_v58 = vpop.eup %1818  ;;  %v1177_v59 = vmul.f32 1.442695, %v1172_v57 }
 0x1b7   : > { %v1167_v60 = vpop.xlane.xlu0 %1166  ;;  %v1183_v61 = vsel %vm1158_vm3, %v1819_v58, 0.0 }
 0x1b8   : > { %1820 = vpow2.f32 %v1177_v59  ;;  %v1173_v62 = vsub.f32 %v1156_v46, %v1167_v60  ;;  %1184 = vadd.xlane.f32.xlu0 %v1183_v61  ;;  %v654_v61 = vunpack.c.l.bf16 %v2015_v12 }
 0x1ba   : > { %v1179_v63 = vmul.f32 1.442695, %v1173_v62 }
 0x1bc   : > { %1822 = vpow2.f32 %v1179_v63 }
 0x1be   : > { %v1821_v0 = vpop.eup %1820 }
 0x1bf   : > { %v1170_v1 = vpop.xlane.xlu0 %1169  ;;  %v1186_v2 = vsel %vm1158_vm3, %v1821_v0, 0.0 }
 0x1c0   : > { %v1174_v3 = vsub.f32 %v1157_v51, %v1170_v1  ;;  %1187 = vadd.xlane.f32.xlu1 %v1186_v2  ;;  %v1848_v2 = vmov 32.0  }
 0x1c2   : > { %v1823_v4 = vpop.eup %1822  ;;  %v1181_v5 = vmul.f32 1.442695, %v1174_v3 }
 0x1c3   : > { %v1189_v6 = vsel %vm1158_vm3, %v1823_v4, 0.0 }
 0x1c4   : > { %1824 = vpow2.f32 %v1181_v5  ;;  %1190 = vadd.xlane.f32.xlu2 %v1189_v6 }
 0x1ca   : > { %v1825_v7 = vpop.eup %1824 }
 0x1cb   : > { %v1192_v8 = vsel %vm1158_vm3, %v1825_v7, 0.0 }
 0x1cc   : > { %1193 = vadd.xlane.f32.xlu2 %v1192_v8 }
 0x22b   : > { %v1185_v9 = vpop.xlane.xlu0 %1184 }
 0x22c   : > { %1826 = vrcp.f32 %v1185_v9 }
 0x232   : > { %v1827_v10 = vpop.eup %1826 }
 0x233   : > { %v1199_v11 = vmul.f32 %v1827_v10, %v1819_v58  ;;  %v1188_v13 = vpop.xlane.xlu1 %1187  ;;  %v1811_v58 = vld [vmem:[%s2232_s10] ss:$0 sm:$0xff] }
 0x234   : > { %1828 = vrcp.f32 %v1188_v13 }
 0x235   : > { %v1203_v14 = vpack.c.bf16 %v1199_v11, %v1199_v11 }
 0x237   : > { %v1191_v15 = vpop.xlane.xlu2 %1190  ;;  %1723 = vmatmul.msk.bf16.vlgmr.msra.gmra.mxu0 %vm1211_vm4, %v1203_v14  ;;  %v1784_v14 = vld [vmem:[%s2235_s13 + $0x8] sm:$0xff] }
 0x238   : > { %1830 = vrcp.f32 %v1191_v15  ;;  %1452 = vmatpush.bf16.msra.mxu0 %v1784_v14  ;;  %v1783_v15 = vld [vmem:[%s2235_s13] sm:$0xff] }
 0x23a   : > { %v1829_v16 = vpop.eup %1828 }
 0x23b   : > { %v1200_v17 = vmul.f32 %v1829_v16, %v1821_v0  ;;  %v1788_v16 = vld [vmem:[%s2237_s15 + $0x18] sm:$0xff] }
 0x23c   : > { %1453 = vmatpush.bf16.msra.mxu0 %v1783_v15 }
 0x23d   : > { %v1204_v18 = vpack.c.bf16 %v1200_v17, %v1200_v17 }
 0x23e   : > { %v1831_v19 = vpop.eup %1830 }
 0x23f   : > { %v1201_v20 = vmul.f32 %v1831_v19, %v1823_v4  ;;  %v1194_v21 = vpop.xlane.xlu2 %1193  ;;  %1724 = vmatmul.msk.bf16.vlgmr.msra.gmra.mxu1 %vm1211_vm4, %v1204_v18  ;;  %v1787_v19 = vld [vmem:[%s2237_s15 + $0x10] sm:$0xff] }
 0x240   : > { %1832 = vrcp.f32 %v1194_v21  ;;  %1505 = vmatpush.bf16.msra.mxu1 %v1788_v16 }
 0x241   : > { %v1205_v22 = vpack.c.bf16 %v1201_v20, %v1201_v20  ;;  %1834 = vrcp.f32 %v1848_v2 }
 0x243   : > { %1725 = vmatmul.msk.bf16.vlgmr.msra.gmra.mxu2 %vm1211_vm4, %v1205_v22 }
 0x244   : > { %1506 = vmatpush.bf16.msra.mxu1 %v1787_v19 }
 0x246   : > { %v1833_v23 = vpop.eup %1832 }
 0x247   : > { %v1202_v24 = vmul.f32 %v1833_v23, %v1825_v7  ;;  %v1835_v3 = vpop.eup %1834 }
 0x248   : > { %v1389_v4 = vmul.f32 32.0, %v1835_v3  ;;  %vm1393_vm7 = vweird.f32 %v1835_v3 }
 0x249   : > { %v1206_v25 = vpack.c.bf16 %v1202_v24, %v1202_v24 }
 0x24a   : > { %v1390_v5 = vsub.f32 1.0, %v1389_v4 }
 0x24b   : > { %1726 = vmatmul.msk.bf16.vlgmr.msra.gmra.mxu3 %vm1211_vm4, %v1206_v25 }
 0x24c   : > { %v1391_v6 = vmul.f32 %v1835_v3, %v1390_v5 }
 0x24e   : > { %v1392_v7 = vadd.f32 %v1835_v3, %v1391_v6 }
 0x250   : > { %v1394_v8 = vsel %vm1393_vm7, %v1835_v3, %v1392_v7 }
 0x2b4   : > { %v1228_v34 = vpop.f32.mrf.mxu0 }
 0x2b5   : > { %v1289_v35 = vpack.c.bf16 %v1228_v34, %v1228_v34  ;;  %v1786_v34 = vld [vmem:[%s2237_s15 + $0x8] sm:$0xff] }
 0x2b6   : > { %1507 = vmatpush.bf16.msra.mxu1 %v1786_v34 }
 0x2b7   : > { %1727 = vmatmul.msk.bf16.vlgmr.msrb.gmra.mxu0 %vm1073_vm1, %v1289_v35  ;;  %v1785_v35 = vld [vmem:[%s2237_s15] sm:$0xff] }
 0x2ba   : > { %1508 = vmatpush.bf16.msra.mxu1 %v1785_v35 }
 0x2bc   : > { %v1230_v36 = vpop.f32.mrf.mxu0  ;;  %v1247_v37 = vpop.f32.mrf.mxu1 }
 0x2bd   : > { %v1290_v38 = vpack.c.bf16 %v1247_v37, %v1247_v37  ;;  %v1814_v36 = vld [vmem:[%s2236_s14] ss:$0 sm:$0xff] }
 0x2bf   : > { %1728 = vmatmul.msk.bf16.vlgmr.msrb.gmra.mxu1 %vm1073_vm1, %v1290_v38 }
 0x2c4   : > { %v1249_v39 = vpop.f32.mrf.mxu1 }
 0x2c6   : > { %v1266_v40 = vpop.f32.mrf.mxu2 }
 0x2c7   : > { %v1291_v41 = vpack.c.bf16 %v1266_v40, %v1266_v40 }
 0x2c9   : > { %1729 = vmatmul.msk.bf16.vlgmr.msrb.gmra.mxu2 %vm1073_vm1, %v1291_v41 }
 0x2ce   : > { %v1268_v42 = vpop.f32.mrf.mxu2  ;;  %v1285_v43 = vpop.f32.mrf.mxu3 }
 0x2cf   : > { %v1292_v44 = vpack.c.bf16 %v1285_v43, %v1285_v43  ;;  %v1815_v42 = vld [vmem:[%s2238_s16] ss:$0 sm:$0xff] }
 0x2d1   : > { %1730 = vmatmul.msk.bf16.vlgmr.msrb.gmra.mxu3 %vm1073_vm1, %v1292_v44 }
 0x2d6   : > { %v1287_v45 = vpop.f32.mrf.mxu3 }
 0x334   : > { %v1309_v46 = vpop.f32.mrf.mxu0 }
 0x335   : > { %v1371_v52 = vsel %vm1370_vm6, %v1309_v46, 0.0 }
 0x33c   : > { %v1311_v47 = vpop.f32.mrf.mxu0  ;;  %v1328_v48 = vpop.f32.mrf.mxu1 }
 0x33d   : > { %v1372_v51 = vsel %vm1370_vm6, %v1328_v48, 0.0 }
 0x33e   : > { %v1373_v54 = vadd.f32 %v1372_v51, %v1371_v52 }
 0x344   : > { %v1330_v49 = vpop.f32.mrf.mxu1 }
 0x34c   : > { %v1347_v50 = vpop.f32.mrf.mxu2 }
 0x34d   : > { %v1374_v53 = vsel %vm1370_vm6, %v1347_v50, 0.0 }
 0x34e   : > { %v1375_v55 = vadd.f32 %v1374_v53, %v1373_v54 }
 0x354   : > { %v1349_v56 = vpop.f32.mrf.mxu2  ;;  %v1366_v57 = vpop.f32.mrf.mxu3 }
 0x355   : > { %v1376_v59 = vsel %vm1370_vm6, %v1366_v57, 0.0 }
 0x356   : > { %v1377_v60 = vadd.f32 %v1376_v59, %v1375_v55 }
 0x358   : > { %v1381_v62 = vadd.f32 %v1811_v58, %v1377_v60 }
 0x35a   : > { %v1382_v63 = vadd.f32 %v1381_v62, %v654_v61  ;;  %v1816_v62 = vld [vmem:[%s2239_s17] ss:$0 sm:$0xff] }
 0x35c   : > { %v1368_v0 = vpop.f32.mrf.mxu3  ;;  %v1385_v1 = vsel %vm1370_vm6, %v1382_v63, 0.0 }
 0x35d   : > { %1386 = vadd.xlane.f32.xlu2 %v1385_v1  ;;  %v1817_v0 = vld [vmem:[%s2240_s18] ss:$0 sm:$0xff] }
 0x3d0   : > { %v1387_v9 = vpop.xlane.xlu2 %1386 }
 0x3d1   : > { %v1395_v10 = vmul.f32 %v1394_v8, %v1387_v9 }
 0x3d3   : > { %v1396_v11 = vsub.f32 %v1382_v63, %v1395_v10 }
 0x3d5   : > { %v1397_v13 = vmul.f32 %v1396_v11, %v1396_v11 }
 0x3d7   : > { %v1398_v12 = vsel %vm1370_vm6, %v1397_v13, 0.0 }
 0x3d8   : > { %1399 = vadd.xlane.f32.xlu0 %v1398_v12 }
 0x44b   : > { %v1400_v17 = vpop.xlane.xlu0 %1399 }
 0x44c   : > { %v1401_v18 = vmul.f32 %v1400_v17, %v1394_v8 }
 0x44e   : > { %v1402_v20 = vadd.f32 1e-05, %v1401_v18 }
 0x450   : > { %1836 = vrsqrt.f32 %v1402_v20  ;;  %vm1409_vm9 = vweird.f32 %v1402_v20 }
 0x456   : > { %v1837_v21 = vpop.eup %1836 }
 0x457   : > { %v1404_v22 = vmul.f32 %v1837_v21, %v1402_v20  ;;  %vm1410_vm8 = vweird.f32 %v1837_v21 }
 0x458   : > { %vm1411_vm10 = vmor %vm1409_vm9, %vm1410_vm8 }
 0x459   : > { %v1405_v23 = vmul.f32 %v1837_v21, %v1404_v22 }
 0x45b   : > { %v1406_v24 = vmul.f32 0.5, %v1405_v23 }
 0x45d   : > { %v1407_v25 = vsub.f32 1.5, %v1406_v24 }
 0x45f   : > { %v1408_v26 = vmul.f32 %v1837_v21, %v1407_v25 }
 0x461   : > { %v1412_v28 = vsel %vm1411_vm10, %v1837_v21, %v1408_v26 }
 0x462   : > { %v1413_v30 = vmul.f32 %v1412_v28, %v1396_v11 }
 0x464   : > { %v1417_v31 = vmul.f32 %v1812_v27, %v1413_v30 }
 0x466   : > { %v1421_v32 = vadd.f32 %v1813_v29, %v1417_v31 }
 0x468   : > { %v1422_v33 = vpack.c.bf16 %v1421_v32, %v1421_v32 }
 0x46a   : > { %1739 = vmatmul.msk.bf16.vlgmr.msra.gmra.mxu0 %vm749_vm0, %v1422_v33 }
 0x4e7   : > { %v1455_v37 = vpop.f32.mrf.mxu0 }
 0x4e8   : > { %v1456_v38 = vadd.f32 %v1814_v36, %v1455_v37 }
 0x4ea   : > { %v1459_v39 = vmax.f32 %v1456_v38, 0.0 }
 0x4ec   : > { %v1460_v40 = vpack.c.bf16 %v1459_v39, %v1459_v39 }
 0x4ee   : > { %1756 = vmatmul.msk.bf16.vlgmr.msra.gmra.mxu1 %vm1497_vm11, %v1460_v40 }
 0x4ef   : > { %v1457_v41 = vpop.f32.mrf.mxu0 }
 0x56b   : > { %v1510_v43 = vpop.f32.mrf.mxu1 }
 0x56c   : > { %v1511_v44 = vadd.f32 %v1815_v42, %v1510_v43 }
 0x56e   : > { %v1514_v45 = vadd.f32 %v1511_v44, %v1421_v32 }
 0x570   : > { %v1517_v46 = vsel %vm1370_vm6, %v1514_v45, 0.0 }
 0x571   : > { %1518 = vadd.xlane.f32.xlu1 %v1517_v46 }
 0x573   : > { %v1512_v47 = vpop.f32.mrf.mxu1 }
 0x5e4   : > { %v1519_v48 = vpop.xlane.xlu1 %1518 }
 0x5e5   : > { %v1520_v49 = vmul.f32 %v1519_v48, %v1394_v8 }
 0x5e7   : > { %v1521_v50 = vsub.f32 %v1514_v45, %v1520_v49 }
 0x5e9   : > { %v1522_v51 = vmul.f32 %v1521_v50, %v1521_v50 }
 0x5eb   : > { %v1523_v52 = vsel %vm1370_vm6, %v1522_v51, 0.0 }
 0x5ec   : > { %1524 = vadd.xlane.f32.xlu2 %v1523_v52 }
 0x65f   : > { %v1525_v53 = vpop.xlane.xlu2 %1524 }
 0x660   : > { %v1526_v54 = vmul.f32 %v1525_v53, %v1394_v8 }
 0x662   : > { %v1527_v55 = vadd.f32 1e-05, %v1526_v54 }
 0x664   : > { %1838 = vrsqrt.f32 %v1527_v55  ;;  %vm1534_vm13 = vweird.f32 %v1527_v55 }
 0x66a   : > { %v1839_v56 = vpop.eup %1838 }
 0x66b   : > { %v1529_v57 = vmul.f32 %v1839_v56, %v1527_v55  ;;  %vm1535_vm12 = vweird.f32 %v1839_v56 }
 0x66c   : > { %vm1536_vm14 = vmor %vm1534_vm13, %vm1535_vm12 }
 0x66d   : > { %v1530_v58 = vmul.f32 %v1839_v56, %v1529_v57 }
 0x66f   : > { %v1531_v59 = vmul.f32 0.5, %v1530_v58 }
 0x671   : > { %v1532_v60 = vsub.f32 1.5, %v1531_v59 }
 0x673   : > { %v1533_v61 = vmul.f32 %v1839_v56, %v1532_v60 }
 0x675   : > { %v1537_v63 = vsel %vm1536_vm14, %v1839_v56, %v1533_v61 }
 0x676   : > { %v1538_v1 = vmul.f32 %v1537_v63, %v1521_v50 }
 0x678   : > { %v1542_v2 = vmul.f32 %v1816_v62, %v1538_v1 }
 0x67a   : > { %v1546_v3 = vadd.f32 %v1817_v0, %v1542_v2 }
 0x67c   : > { %v1547_v4 = vpack.c.bf16 %v1546_v3, %v1546_v3 }
 0x67e   : > { %1549 = vst.msk [vmem:[%s651_s23] sm:$0x3] %vm1548_vm15, %v1547_v4 }
 0x67f PF: > { %s2262_s24 = sld [smem:[#allocation2_spill]] }
 0x685   : > { %s31_s2 = sadd.s32 1, %s2262_s24  }
 0x686   : > { %p28_p4 = scmp.ge.s32.totalorder %s31_s2, 6  }
 0x688   :  { %30 = sbr.rel (!%p28_p4) target bundleno = 7 (0x7), region = 135 }

// kernel: translation_model_forward.6
= control target key start
LH: loop header
LB: loop body
LE: loop exit
PB: predicated region body
PF: predicated region fallthrough
CT: control target
= control target key end

     0   :  { %s2274_s0 = inlined_call_operand.vmem [shape: bf16[4,4,32], index: 0, kind: input, shape index: {}]   ;;  %s2275_s1 = inlined_call_operand.vmem [shape: f32[4,4], index: 1, kind: input, shape index: {}]   ;;  %s2276_s2 = inlined_call_operand.vmem [shape: f32[4,4], index: 2, kind: input, shape index: {}]   ;;  %s2277_s3 = inlined_call_operand.vmem [shape: bf16[4,32,8], index: 3, kind: input, shape index: {}]   ;;  %s2278_s4 = inlined_call_operand.vmem [shape: bf16[4,32,8], index: 4, kind: input, shape index: {}]   ;;  %s2279_s5 = inlined_call_operand.vmem [shape: bf16[4,32,8], index: 5, kind: input, shape index: {}]   ;;  %s2280_s6 = inlined_call_operand.vmem [shape: f32[4,1,8], index: 6, kind: input, shape index: {}]   ;;  %s2281_s7 = inlined_call_operand.vmem [shape: f32[4,1,8], index: 7, kind: input, shape index: {}]   ;;  %s2282_s8 = inlined_call_operand.vmem [shape: f32[4,1,8], index: 8, kind: input, shape index: {}]   ;;  %s2283_s9 = inlined_call_operand.vmem [shape: bf16[4,8,32], index: 9, kind: input, shape index: {}]   ;;  %s2284_s10 = inlined_call_operand.vmem [shape: f32[1,32], index: 10, kind: input, shape index: {}]   ;;  %s2285_s11 = inlined_call_operand.vmem [shape: f32[1,32], index: 11, kind: input, shape index: {}]   ;;  %s2286_s12 = inlined_call_operand.vmem [shape: f32[1,32], index: 12, kind: input, shape index: {}]   ;;  %s2287_s13 = inlined_call_operand.vmem [shape: bf16[32,64], index: 13, kind: input, shape index: {}]   ;;  %s2288_s14 = inlined_call_operand.vmem [shape: f32[1,64], index: 14, kind: input, shape index: {}]   ;;  %s2289_s15 = inlined_call_operand.vmem [shape: bf16[64,32], index: 15, kind: input, shape index: {}]   ;;  %s2290_s16 = inlined_call_operand.vmem [shape: f32[1,32], index: 16, kind: input, shape index: {}]   ;;  %s2291_s17 = inlined_call_operand.vmem [shape: f32[1,32], index: 17, kind: input, shape index: {}]   ;;  %s2292_s18 = inlined_call_operand.vmem [shape: f32[1,32], index: 18, kind: input, shape index: {}]   ;;  %s2293_s19 = inlined_call_operand.vmem [shape: f32[1,32], index: 19, kind: input, shape index: {}]   ;;  %s2294_s20 = inlined_call_operand.vmem [shape: f32[1,32], index: 20, kind: input, shape index: {}]   ;;  %s2295_s21 = inlined_call_operand.vmem [shape: bf16[4,4,32], index: 21, kind: output, shape index: {}]  }
   0x1   :  { %2301 = sst [smem:[#allocation3_spill]] %s2274_s0 }
   0x2   :  { %2302 = sst [smem:[#allocation4_spill]] %s2275_s1 }
   0x3   :  { %2303 = sst [smem:[#allocation5_spill]] %s2276_s2  ;;  %s1995_s2 = smov 0  }
   0x4   :  { %2304 = sst [smem:[#allocation6_spill]] %s2277_s3 }
   0x5   :  { %2305 = sst [smem:[#allocation7_spill]] %s2278_s4 }
   0x6   :  { %2306 = sst [smem:[#allocation8_spill]] %s2279_s5 }
   0x7   :  { %2307 = sst [smem:[#allocation9_spill]] %s2294_s20 }
   0x8   :  { %2308 = sst [smem:[#allocation10_spill]] %s2295_s21 }
   0x9 LB: > { %2309 = sst [smem:[#allocation2_spill]] %s1882_s2  ;;  %s2001_s25 = sadd.s32 4294967295, %s1882_s2   ;;  %s1882_s2 = sphi %s1995_s2, %s31_s2  }
   0xa   : > { %p1640_p0 = scmp.ge.s32.totalorder %s1882_s2, 1  ;;  %p586_p1 = scmp.lt.s32.totalorder %s1882_s2, 5 }
   0xc   : > { %p587_p2 = pnand %p1640_p0, %p586_p1 }
   0xd   : > { %s2310_s3 = sld [smem:[#allocation6_spill]] (!%p587_p2)  ;;  %p644_p3 = scmp.lt.s32.totalorder (!%p587_p2), %s2001_s25, 3 }
   0xe   : > { %590 = sbr.rel (%p587_p2) target bundleno = 1933 (0x78d), region = 104  ;;  %s2311_s22 = sld [smem:[#allocation7_spill]] (!%p587_p2) }
   0xf   : > { %s2312_s21 = sld [smem:[#allocation3_spill]] (!%p587_p2) }
  0x10   : > { %s2313_s29 = sld [smem:[#allocation8_spill]] (!%p587_p2) }
  0x11   : > { %s2315_s2 = sld [smem:[#allocation4_spill]] (!%p587_p2) }
  0x12   : > { %s2316_s28 = sld [smem:[#allocation9_spill]] (!%p587_p2) }
  0x13   : > { %v1792_v0 = vld [vmem:[%s2310_s3 + $0x8] sm:$0xff]  ;;  %v1794_v1 = vld [vmem:[%s2310_s3 + $0x18] sm:$0xff]  ;;  %v1791_v4 = vld [vmem:[%s2310_s3] sm:$0xff]  ;;  %s2025_s26 = scalar_select %p644_p3, %s2001_s25, 3  ;;  %vm749_vm0 = vcmask 261120   ;;  %vm1073_vm1 = vcmask 64512  }
  0x14   : > { %v1796_v2 = vld [vmem:[%s2310_s3 + $0x28] sm:$0xff]  ;;  %v1798_v3 = vld [vmem:[%s2310_s3 + $0x38] sm:$0xff]  ;;  %759 = vmatpush.bf16.msra.mxu0 %v1792_v0  ;;  %784 = vmatpush.bf16.msra.mxu1 %v1794_v1  ;;  %v1793_v5 = vld [vmem:[%s2310_s3 + $0x10] sm:$0xff]  ;;  %vm1215_vm2 = vcmask 1041408   ;;  %vm1158_vm3 = vcmask 27648   ;;  %vm1211_vm4 = vcmask 31744  }
  0x15   : > { %809 = vmatpush.bf16.msra.mxu2 %v1796_v2  ;;  %834 = vmatpush.bf16.msra.mxu3 %v1798_v3  ;;  %v1795_v6 = vld [vmem:[%s2310_s3 + $0x20] sm:$0xff]  ;;  %v1797_v7 = vld [vmem:[%s2310_s3 + $0x30] sm:$0xff]  ;;  %s1641_s4 = sshll.u32 %s2025_s26, 1  ;;  %v1800_v8 = vld [vmem:[%s2311_s22 + $0x8] sm:$0xff]  ;;  %vm1296_vm5 = vcmask 1043456   ;;  %vm1370_vm6 = vcmask 257024  }
  0x16   : > { %v1802_v9 = vld [vmem:[%s2311_s22 + $0x18] sm:$0xff]  ;;  %s647_s20 = scalar_lea.vmem %s2312_s21, %s1641_s4  ;;  %v1804_v10 = vld [vmem:[%s2311_s22 + $0x28] sm:$0xff]  ;;  %v1799_v13 = vld [vmem:[%s2311_s22] sm:$0xff]  ;;  %s2314_s21 = sld [smem:[#allocation5_spill]]  ;;  %vm1497_vm11 = vcmask 523264  }
  0x17   : > { %v1806_v11 = vld [vmem:[%s2311_s22 + $0x38] sm:$0xff]  ;;  %v2051_v12 = vld [vmem:[%s647_s20] sm:$0x3]  ;;  %v1801_v14 = vld [vmem:[%s2311_s22 + $0x10] sm:$0xff]  ;;  %s2317_s5 = sld [smem:[#allocation10_spill]] }
  0x18   : > { %760 = vmatpush.bf16.msra.mxu0 %v1791_v4  ;;  %785 = vmatpush.bf16.msra.mxu1 %v1793_v5  ;;  %v1803_v15 = vld [vmem:[%s2311_s22 + $0x20] sm:$0xff]  ;;  %v1805_v16 = vld [vmem:[%s2311_s22 + $0x30] sm:$0xff]  ;;  %v1812_v17 = vld [vmem:[%s2313_s29 + $0x28] sm:$0xff] }
  0x19   : > { %810 = vmatpush.bf16.msra.mxu2 %v1795_v6  ;;  %835 = vmatpush.bf16.msra.mxu3 %v1797_v7  ;;  %v1808_v18 = vld [vmem:[%s2313_s29 + $0x8] sm:$0xff]  ;;  %v1810_v19 = vld [vmem:[%s2313_s29 + $0x18] sm:$0xff]  ;;  %v1811_v20 = vld [vmem:[%s2313_s29 + $0x20] sm:$0xff] }
  0x1a   : > { %v1807_v21 = vld [vmem:[%s2313_s29] sm:$0xff]  ;;  %v1809_v22 = vld [vmem:[%s2313_s29 + $0x10] sm:$0xff]  ;;  %v1814_v23 = vld [vmem:[%s2313_s29 + $0x38] sm:$0xff] }
  0x1b   : > { %1651 = vmatmul.msk.bf16.vlgmr.msra.gmra.mxu0 %vm749_vm0, %v2051_v12  ;;  %1660 = vmatmul.msk.bf16.vlgmr.msra.gmra.mxu1 %vm749_vm0, %v2051_v12  ;;  %v1813_v24 = vld [vmem:[%s2313_s29 + $0x30] sm:$0xff]  ;;  %v1834_v31 = vld [vmem:[%s2281_s7] ss:$0 sm:$0xff]  ;;  %v1835_v32 = vld [vmem:[%s2281_s7 + $0x1] ss:$0 sm:$0xff] }
  0x1c   : > { %871 = vmatpush.bf16.msrb.mxu0 %v1800_v8  ;;  %896 = vmatpush.bf16.msrb.mxu1 %v1802_v9  ;;  %v1831_v39 = vld [vmem:[%s2280_s6 + $0x1] ss:$0 sm:$0xff]  ;;  %v1830_v42 = vld [vmem:[%s2280_s6] ss:$0 sm:$0xff]  ;;  %v1836_v43 = vld [vmem:[%s2281_s7 + $0x2] ss:$0 sm:$0xff]  ;;  %s656_s1 = scalar_lea.vmem %s2314_s21, %s2001_s25 }
  0x1d   : > { %1669 = vmatmul.msk.bf16.vlgmr.msra.gmra.mxu2 %vm749_vm0, %v2051_v12  ;;  %1678 = vmatmul.msk.bf16.vlgmr.msra.gmra.mxu3 %vm749_vm0, %v2051_v12  ;;  %v1837_v44 = vld [vmem:[%s2281_s7 + $0x3] ss:$0 sm:$0xff]  ;;  %v1832_v56 = vld [vmem:[%s2280_s6 + $0x2] ss:$0 sm:$0xff]  ;;  %v1838_v5 = vld [vmem:[%s2282_s8] ss:$0 sm:$0xff]  ;;  %s651_s23 = scalar_lea.vmem %s2317_s5, %s1641_s4 }
  0x1e   : > { %921 = vmatpush.bf16.msrb.mxu2 %v1804_v10  ;;  %946 = vmatpush.bf16.msrb.mxu3 %v1806_v11  ;;  %v1833_v57 = vld [vmem:[%s2280_s6 + $0x3] ss:$0 sm:$0xff]  ;;  %v1839_v6 = vld [vmem:[%s2282_s8 + $0x1] ss:$0 sm:$0xff]  ;;  %v1840_v11 = vld [vmem:[%s2282_s8 + $0x2] ss:$0 sm:$0xff] }
  0x20   : > { %872 = vmatpush.bf16.msrb.mxu0 %v1799_v13  ;;  %897 = vmatpush.bf16.msrb.mxu1 %v1801_v14 }
  0x22   : > { %922 = vmatpush.bf16.msrb.mxu2 %v1803_v15  ;;  %947 = vmatpush.bf16.msrb.mxu3 %v1805_v16 }
  0x24   : > { %983 = vmatpush.bf16.msra.mxu0 %v1808_v18  ;;  %1008 = vmatpush.bf16.msra.mxu1 %v1810_v19 }
  0x26   : > { %1033 = vmatpush.bf16.msra.mxu2 %v1812_v17  ;;  %1058 = vmatpush.bf16.msra.mxu3 %v1814_v23  ;;  %v1841_v23 = vld [vmem:[%s2282_s8 + $0x3] ss:$0 sm:$0xff] }
  0x28   : > { %984 = vmatpush.bf16.msra.mxu0 %v1807_v21  ;;  %1009 = vmatpush.bf16.msra.mxu1 %v1809_v22 }
  0x2a   : > { %1034 = vmatpush.bf16.msra.mxu2 %v1811_v20  ;;  %1059 = vmatpush.bf16.msra.mxu3 %v1813_v24 }
  0x2b   : > { %1687 = vmatmul.msk.bf16.vlgmr.msrb.gmra.mxu0 %vm749_vm0, %v2051_v12  ;;  %1696 = vmatmul.msk.bf16.vlgmr.msrb.gmra.mxu1 %vm749_vm0, %v2051_v12 }
  0x2d   : > { %1705 = vmatmul.msk.bf16.vlgmr.msrb.gmra.mxu2 %vm749_vm0, %v2051_v12  ;;  %1714 = vmatmul.msk.bf16.vlgmr.msrb.gmra.mxu3 %vm749_vm0, %v2051_v12 }
  0x3b   : > { %1723 = vmatmul.msk.bf16.vlgmr.msra.gmra.mxu0 %vm749_vm0, %v2051_v12  ;;  %1732 = vmatmul.msk.bf16.vlgmr.msra.gmra.mxu1 %vm749_vm0, %v2051_v12 }
  0x3d   : > { %1741 = vmatmul.msk.bf16.vlgmr.msra.gmra.mxu2 %vm749_vm0, %v2051_v12  ;;  %1750 = vmatmul.msk.bf16.vlgmr.msra.gmra.mxu3 %vm749_vm0, %v2051_v12 }
  0x98   : > { %v762_v25 = vpop.f32.mrf.mxu0  ;;  %v787_v26 = vpop.f32.mrf.mxu1 }
  0x99   : > { %v788_v47 = vadd.f32 %v1831_v39, %v787_v26  ;;  %v763_v50 = vadd.f32 %v1830_v42, %v762_v25 }
  0x9b   : > { %v1066_v55 = vpack.c.bf16 %v788_v47, %v788_v47  ;;  %v1065_v60 = vpack.c.bf16 %v763_v50, %v763_v50 }
  0xa0   : > { %v812_v27 = vpop.f32.mrf.mxu2  ;;  %v837_v28 = vpop.f32.mrf.mxu3 }
  0xa1   : > { %v764_v29 = vpop.f32.mrf.mxu0  ;;  %v789_v30 = vpop.f32.mrf.mxu1  ;;  %v813_v63 = vadd.f32 %v1832_v56, %v812_v27  ;;  %v838_v0 = vadd.f32 %v1833_v57, %v837_v28 }
  0xa2   : > { %v1842_v30 = vld [vmem:[%s656_s1] ss:$0 sm:$0xff] }
  0xa3   : > { %v1067_v3 = vpack.c.bf16 %v813_v63, %v813_v63  ;;  %v1068_v4 = vpack.c.bf16 %v838_v0, %v838_v0 }
  0xa8   : > { %v814_v33 = vpop.f32.mrf.mxu2  ;;  %v839_v34 = vpop.f32.mrf.mxu3 }
  0xa9   : > { %v874_v35 = vpop.f32.mrf.mxu0  ;;  %v899_v36 = vpop.f32.mrf.mxu1 }
  0xaa   : > { %v875_v37 = vadd.f32 %v1834_v31, %v874_v35  ;;  %v900_v38 = vadd.f32 %v1835_v32, %v899_v36  ;;  %v655_v31 = vld [vmem:[%s2315_s2] sm:$0xf] }
  0xab   : > { %v659_v32 = vadd.f32 %v1842_v30, %v655_v31  ;;  %v722_v30 = vld [vmem:[%s2283_s9 + $0x8] sm:$0xf] }
  0xac   : > { %v1069_v40 = vpack.c.bf16 %v875_v37, %v875_v37  ;;  %v1070_v41 = vpack.c.bf16 %v900_v38, %v900_v38  ;;  %v1336_v31 = vsel %vm1296_vm5, %v722_v30, 0 }
  0xae   : > { %v1078_v45 = vsel %vm1073_vm1, %v1069_v40, 0  ;;  %v1097_v46 = vsel %vm1073_vm1, %v1070_v41, 0 }
  0xaf   : > { %1087 = vmatpush.bf16.xpose.msrb.mxu0 %v1078_v45  ;;  %1106 = vmatpush.bf16.xpose.msrb.mxu1 %v1097_v46 }
  0xb0   : > { %v924_v48 = vpop.f32.mrf.mxu2  ;;  %v949_v49 = vpop.f32.mrf.mxu3 }
  0xb1   : > { %v925_v51 = vadd.f32 %v1836_v43, %v924_v48  ;;  %v950_v52 = vadd.f32 %v1837_v44, %v949_v49  ;;  %v876_v53 = vpop.f32.mrf.mxu0  ;;  %v901_v54 = vpop.f32.mrf.mxu1 }
  0xb3   : > { %v1071_v58 = vpack.c.bf16 %v925_v51, %v925_v51  ;;  %v1072_v59 = vpack.c.bf16 %v950_v52, %v950_v52 }
  0xb5   : > { %v1116_v61 = vsel %vm1073_vm1, %v1071_v58, 0  ;;  %v1135_v62 = vsel %vm1073_vm1, %v1072_v59, 0 }
  0xb6   : > { %1125 = vmatpush.bf16.xpose.msrb.mxu2 %v1116_v61  ;;  %1144 = vmatpush.bf16.xpose.msrb.mxu3 %v1135_v62 }
  0xb7   : > { %1751 = vmatmul.msk.bf16.vlgmr.msrb.gmra.mxu0 %vm1073_vm1, %v1065_v60  ;;  %1752 = vmatmul.msk.bf16.vlgmr.msrb.gmra.mxu1 %vm1073_vm1, %v1066_v55 }
  0xb8   : > { %v926_v1 = vpop.f32.mrf.mxu2  ;;  %v951_v2 = vpop.f32.mrf.mxu3 }
  0xb9   : > { %v986_v7 = vpop.f32.mrf.mxu0  ;;  %v1011_v8 = vpop.f32.mrf.mxu1 }
  0xba   : > { %v987_v9 = vadd.f32 %v1838_v5, %v986_v7  ;;  %v1012_v10 = vadd.f32 %v1839_v6, %v1011_v8 }
  0xbc   : > { %v1207_v13 = vpack.c.bf16 %v987_v9, %v987_v9  ;;  %v1208_v14 = vpack.c.bf16 %v1012_v10, %v1012_v10 }
  0xbd   : > { %1753 = vmatmul.msk.bf16.vlgmr.msrb.gmra.mxu2 %vm1073_vm1, %v1067_v3  ;;  %1754 = vmatmul.msk.bf16.vlgmr.msrb.gmra.mxu3 %vm1073_vm1, %v1068_v4 }
  0xbe   : > { %v1217_v16 = vsel %vm1215_vm2, %v1207_v13, 0  ;;  %v1236_v17 = vsel %vm1215_vm2, %v1208_v14, 0 }
  0xbf   : > { %1226 = vmatpush.bf16.msra.mxu0 %v1217_v16  ;;  %1245 = vmatpush.bf16.msra.mxu1 %v1236_v17 }
  0xc0   : > { %v1036_v15 = vpop.f32.mrf.mxu2  ;;  %v1061_v24 = vpop.f32.mrf.mxu3 }
  0xc1   : > { %v1037_v18 = vadd.f32 %v1840_v11, %v1036_v15  ;;  %v988_v20 = vpop.f32.mrf.mxu0  ;;  %v1013_v21 = vpop.f32.mrf.mxu1  ;;  %v1062_v26 = vadd.f32 %v1841_v23, %v1061_v24 }
  0xc3   : > { %v1209_v19 = vpack.c.bf16 %v1037_v18, %v1037_v18  ;;  %v1210_v27 = vpack.c.bf16 %v1062_v26, %v1062_v26  ;;  %v720_v26 = vld [vmem:[%s2283_s9] sm:$0xf] }
  0xc5   : > { %v1255_v22 = vsel %vm1215_vm2, %v1209_v19, 0  ;;  %v1274_v28 = vsel %vm1215_vm2, %v1210_v27, 0  ;;  %v1298_v27 = vsel %vm1296_vm5, %v720_v26, 0  ;;  %vm1580_vm2 = vcmask 254976  }
  0xc6   : > { %1264 = vmatpush.bf16.msra.mxu2 %v1255_v22  ;;  %1283 = vmatpush.bf16.msra.mxu3 %v1274_v28  ;;  %v721_v28 = vld [vmem:[%s2283_s9 + $0x4] sm:$0xf] }
  0xc7   : > { %1307 = vmatpush.bf16.msrb.mxu0 %v1298_v27  ;;  %v1844_v27 = vld [vmem:[%s2285_s11] ss:$0 sm:$0xff] }
  0xc8   : > { %v1038_v25 = vpop.f32.mrf.mxu2  ;;  %v1063_v29 = vpop.f32.mrf.mxu3 }
  0xc9   : > { %v1317_v29 = vsel %vm1296_vm5, %v721_v28, 0 }
  0xca   : > { %1326 = vmatpush.bf16.msrb.mxu1 %v1317_v29  ;;  %1345 = vmatpush.bf16.msrb.mxu2 %v1336_v31  ;;  %v1845_v29 = vld [vmem:[%s2286_s12] ss:$0 sm:$0xff] }
 0x134   : > { %v1089_v33 = vpop.f32.mrf.mxu0  ;;  %v1108_v34 = vpop.f32.mrf.mxu1 }
 0x135   : > { %v1150_v35 = vmul.f32 0.35355338, %v1089_v33  ;;  %v1151_v37 = vmul.f32 0.35355338, %v1108_v34 }
 0x137   : > { %v1154_v36 = vadd.f32 %v1150_v35, %v659_v32  ;;  %v1155_v41 = vadd.f32 %v1151_v37, %v659_v32 }
 0x139   : > { %v1159_v38 = vsel %vm1158_vm3, %v1154_v36, -inf  ;;  %v1162_v45 = vsel %vm1158_vm3, %v1155_v41, -inf }
 0x13a   : > { %1160 = vmax.xlane.f32.xlu1 %v1159_v38 }
 0x13c   : > { %v1091_v39 = vpop.f32.mrf.mxu0  ;;  %v1110_v40 = vpop.f32.mrf.mxu1 }
 0x140   : > { %v1127_v42 = vpop.f32.mrf.mxu2  ;;  %v1146_v43 = vpop.f32.mrf.mxu3 }
 0x141   : > { %v1152_v44 = vmul.f32 0.35355338, %v1127_v42  ;;  %v1153_v47 = vmul.f32 0.35355338, %v1146_v43 }
 0x142   : > { %1163 = vmax.xlane.f32.xlu1 %v1162_v45 }
 0x143   : > { %v1156_v46 = vadd.f32 %v1152_v44, %v659_v32  ;;  %v1157_v51 = vadd.f32 %v1153_v47, %v659_v32  ;;  %v723_v32 = vld [vmem:[%s2283_s9 + $0xc] sm:$0xf] }
 0x144   : > { %v1355_v33 = vsel %vm1296_vm5, %v723_v32, 0 }
 0x145   : > { %v1165_v48 = vsel %vm1158_vm3, %v1156_v46, -inf  ;;  %v1168_v52 = vsel %vm1158_vm3, %v1157_v51, -inf  ;;  %1364 = vmatpush.bf16.msrb.mxu3 %v1355_v33 }
 0x146   : > { %1166 = vmax.xlane.f32.xlu0 %v1165_v48 }
 0x148   : > { %v1129_v49 = vpop.f32.mrf.mxu2  ;;  %v1148_v50 = vpop.f32.mrf.mxu3 }
 0x14e   : > { %1169 = vmax.xlane.f32.xlu0 %v1168_v52 }
 0x1ad   : > { %v1161_v53 = vpop.xlane.xlu1 %1160 }
 0x1ae   : > { %v1171_v54 = vsub.f32 %v1154_v36, %v1161_v53 }
 0x1b0   : > { %v1175_v55 = vmul.f32 1.442695, %v1171_v54 }
 0x1b2   : > { %1852 = vpow2.f32 %v1175_v55 }
 0x1b5   : > { %v1164_v56 = vpop.xlane.xlu1 %1163 }
 0x1b6   : > { %v1172_v57 = vsub.f32 %v1155_v41, %v1164_v56 }
 0x1b8   : > { %v1853_v58 = vpop.eup %1852  ;;  %v1177_v59 = vmul.f32 1.442695, %v1172_v57 }
 0x1b9   : > { %v1167_v60 = vpop.xlane.xlu0 %1166  ;;  %v1183_v61 = vsel %vm1158_vm3, %v1853_v58, 0.0 }
 0x1ba   : > { %1854 = vpow2.f32 %v1177_v59  ;;  %v1173_v62 = vsub.f32 %v1156_v46, %v1167_v60  ;;  %1184 = vadd.xlane.f32.xlu0 %v1183_v61  ;;  %v654_v61 = vunpack.c.l.bf16 %v2051_v12 }
 0x1bc   : > { %v1179_v63 = vmul.f32 1.442695, %v1173_v62 }
 0x1be   : > { %1856 = vpow2.f32 %v1179_v63 }
 0x1c0   : > { %v1855_v0 = vpop.eup %1854 }
 0x1c1   : > { %v1170_v1 = vpop.xlane.xlu0 %1169  ;;  %v1186_v2 = vsel %vm1158_vm3, %v1855_v0, 0.0 }
 0x1c2   : > { %v1174_v3 = vsub.f32 %v1157_v51, %v1170_v1  ;;  %1187 = vadd.xlane.f32.xlu1 %v1186_v2  ;;  %v1884_v2 = vmov 32.0  }
 0x1c4   : > { %v1857_v4 = vpop.eup %1856  ;;  %v1181_v5 = vmul.f32 1.442695, %v1174_v3 }
 0x1c5   : > { %v1189_v6 = vsel %vm1158_vm3, %v1857_v4, 0.0 }
 0x1c6   : > { %1858 = vpow2.f32 %v1181_v5  ;;  %1190 = vadd.xlane.f32.xlu2 %v1189_v6 }
 0x1cc   : > { %v1859_v7 = vpop.eup %1858 }
 0x1cd   : > { %v1192_v8 = vsel %vm1158_vm3, %v1859_v7, 0.0 }
 0x1ce   : > { %1193 = vadd.xlane.f32.xlu2 %v1192_v8 }
 0x22d   : > { %v1185_v9 = vpop.xlane.xlu0 %1184 }
 0x22e   : > { %1860 = vrcp.f32 %v1185_v9 }
 0x234   : > { %v1861_v10 = vpop.eup %1860 }
 0x235   : > { %v1199_v11 = vmul.f32 %v1861_v10, %v1853_v58  ;;  %v1188_v13 = vpop.xlane.xlu1 %1187  ;;  %v1843_v58 = vld [vmem:[%s2284_s10] ss:$0 sm:$0xff] }
 0x236   : > { %1862 = vrcp.f32 %v1188_v13 }
 0x237   : > { %v1203_v14 = vpack.c.bf16 %v1199_v11, %v1199_v11 }
 0x239   : > { %v1191_v15 = vpop.xlane.xlu2 %1190  ;;  %1755 = vmatmul.msk.bf16.vlgmr.msra.gmra.mxu0 %vm1211_vm4, %v1203_v14  ;;  %v1816_v14 = vld [vmem:[%s2287_s13 + $0x8] sm:$0xff] }
 0x23a   : > { %1864 = vrcp.f32 %v1191_v15  ;;  %1452 = vmatpush.bf16.msra.mxu0 %v1816_v14  ;;  %v1815_v15 = vld [vmem:[%s2287_s13] sm:$0xff] }
 0x23c   : > { %v1863_v16 = vpop.eup %1862 }
 0x23d   : > { %v1200_v17 = vmul.f32 %v1863_v16, %v1855_v0  ;;  %v1820_v16 = vld [vmem:[%s2289_s15 + $0x18] sm:$0xff] }
 0x23e   : > { %1453 = vmatpush.bf16.msra.mxu0 %v1815_v15 }
 0x23f   : > { %v1204_v18 = vpack.c.bf16 %v1200_v17, %v1200_v17 }
 0x240   : > { %v1865_v19 = vpop.eup %1864 }
 0x241   : > { %v1201_v20 = vmul.f32 %v1865_v19, %v1857_v4  ;;  %v1194_v21 = vpop.xlane.xlu2 %1193  ;;  %1756 = vmatmul.msk.bf16.vlgmr.msra.gmra.mxu1 %vm1211_vm4, %v1204_v18  ;;  %v1819_v19 = vld [vmem:[%s2289_s15 + $0x10] sm:$0xff] }
 0x242   : > { %1866 = vrcp.f32 %v1194_v21  ;;  %1505 = vmatpush.bf16.msra.mxu1 %v1820_v16 }
 0x243   : > { %v1205_v22 = vpack.c.bf16 %v1201_v20, %v1201_v20  ;;  %1868 = vrcp.f32 %v1884_v2 }
 0x245   : > { %1757 = vmatmul.msk.bf16.vlgmr.msra.gmra.mxu2 %vm1211_vm4, %v1205_v22 }
 0x246   : > { %1506 = vmatpush.bf16.msra.mxu1 %v1819_v19 }
 0x248   : > { %v1867_v23 = vpop.eup %1866 }
 0x249   : > { %v1202_v24 = vmul.f32 %v1867_v23, %v1859_v7  ;;  %v1869_v3 = vpop.eup %1868 }
 0x24a   : > { %v1389_v4 = vmul.f32 32.0, %v1869_v3  ;;  %vm1393_vm7 = vweird.f32 %v1869_v3 }
 0x24b   : > { %v1206_v25 = vpack.c.bf16 %v1202_v24, %v1202_v24 }
 0x24c   : > { %v1390_v5 = vsub.f32 1.0, %v1389_v4 }
 0x24d   : > { %1758 = vmatmul.msk.bf16.vlgmr.msra.gmra.mxu3 %vm1211_vm4, %v1206_v25 }
 0x24e   : > { %v1391_v6 = vmul.f32 %v1869_v3, %v1390_v5 }
 0x250   : > { %v1392_v7 = vadd.f32 %v1869_v3, %v1391_v6 }
 0x252   : > { %v2210_v8 = vsel %vm1393_vm7, %v1869_v3, %v1392_v7 }
 0x2b6   : > { %v1228_v34 = vpop.f32.mrf.mxu0 }
 0x2b7   : > { %v1289_v35 = vpack.c.bf16 %v1228_v34, %v1228_v34  ;;  %v1818_v34 = vld [vmem:[%s2289_s15 + $0x8] sm:$0xff] }
 0x2b8   : > { %1507 = vmatpush.bf16.msra.mxu1 %v1818_v34 }
 0x2b9   : > { %1759 = vmatmul.msk.bf16.vlgmr.msrb.gmra.mxu0 %vm1073_vm1, %v1289_v35  ;;  %v1817_v35 = vld [vmem:[%s2289_s15] sm:$0xff] }
 0x2bc   : > { %1508 = vmatpush.bf16.msra.mxu1 %v1817_v35 }
 0x2be   : > { %v1230_v36 = vpop.f32.mrf.mxu0  ;;  %v1247_v37 = vpop.f32.mrf.mxu1 }
 0x2bf   : > { %v1290_v38 = vpack.c.bf16 %v1247_v37, %v1247_v37  ;;  %v1846_v36 = vld [vmem:[%s2288_s14] ss:$0 sm:$0xff] }
 0x2c1   : > { %1760 = vmatmul.msk.bf16.vlgmr.msrb.gmra.mxu1 %vm1073_vm1, %v1290_v38 }
 0x2c6   : > { %v1249_v39 = vpop.f32.mrf.mxu1 }
 0x2c8   : > { %v1266_v40 = vpop.f32.mrf.mxu2 }
 0x2c9   : > { %v1291_v41 = vpack.c.bf16 %v1266_v40, %v1266_v40 }
 0x2cb   : > { %1761 = vmatmul.msk.bf16.vlgmr.msrb.gmra.mxu2 %vm1073_vm1, %v1291_v41 }
 0x2d0   : > { %v1268_v42 = vpop.f32.mrf.mxu2  ;;  %v1285_v43 = vpop.f32.mrf.mxu3 }
 0x2d1   : > { %v1292_v44 = vpack.c.bf16 %v1285_v43, %v1285_v43  ;;  %v1847_v42 = vld [vmem:[%s2290_s16] ss:$0 sm:$0xff] }
 0x2d3   : > { %1762 = vmatmul.msk.bf16.vlgmr.msrb.gmra.mxu3 %vm1073_vm1, %v1292_v44 }
 0x2d8   : > { %v1287_v45 = vpop.f32.mrf.mxu3 }
 0x336   : > { %v1309_v46 = vpop.f32.mrf.mxu0 }
 0x337   : > { %v1371_v52 = vsel %vm1370_vm6, %v1309_v46, 0.0 }
 0x33e   : > { %v1311_v47 = vpop.f32.mrf.mxu0  ;;  %v1328_v48 = vpop.f32.mrf.mxu1 }
 0x33f   : > { %v1372_v51 = vsel %vm1370_vm6, %v1328_v48, 0.0 }
 0x340   : > { %v1373_v54 = vadd.f32 %v1372_v51, %v1371_v52 }
 0x346   : > { %v1330_v49 = vpop.f32.mrf.mxu1 }
 0x34e   : > { %v1347_v50 = vpop.f32.mrf.mxu2 }
 0x34f   : > { %v1374_v53 = vsel %vm1370_vm6, %v1347_v50, 0.0 }
 0x350   : > { %v1375_v55 = vadd.f32 %v1374_v53, %v1373_v54 }
 0x356   : > { %v1349_v56 = vpop.f32.mrf.mxu2  ;;  %v1366_v57 = vpop.f32.mrf.mxu3 }
 0x357   : > { %v1376_v59 = vsel %vm1370_vm6, %v1366_v57, 0.0 }
 0x358   : > { %v1377_v60 = vadd.f32 %v1376_v59, %v1375_v55 }
 0x35a   : > { %v1381_v62 = vadd.f32 %v1843_v58, %v1377_v60 }
 0x35c   : > { %v1382_v63 = vadd.f32 %v1381_v62, %v654_v61  ;;  %v1848_v62 = vld [vmem:[%s2291_s17] ss:$0 sm:$0xff] }
 0x35e   : > { %v1368_v0 = vpop.f32.mrf.mxu3  ;;  %v1385_v1 = vsel %vm1370_vm6, %v1382_v63, 0.0 }
 0x35f   : > { %1386 = vadd.xlane.f32.xlu2 %v1385_v1  ;;  %v1849_v1 = vld [vmem:[%s2292_s18] ss:$0 sm:$0xff] }
 0x3d2   : > { %v1387_v9 = vpop.xlane.xlu2 %1386 }
 0x3d3   : > { %v1395_v10 = vmul.f32 %v2210_v8, %v1387_v9 }
 0x3d5   : > { %v1396_v12 = vsub.f32 %v1382_v63, %v1395_v10 }
 0x3d7   : > { %v1397_v11 = vmul.f32 %v1396_v12, %v1396_v12 }
 0x3d9   : > { %v1398_v13 = vsel %vm1370_vm6, %v1397_v11, 0.0 }
 0x3da   : > { %1399 = vadd.xlane.f32.xlu0 %v1398_v13 }
 0x44d   : > { %v1400_v17 = vpop.xlane.xlu0 %1399 }
 0x44e   : > { %v1401_v18 = vmul.f32 %v1400_v17, %v2210_v8 }
 0x450   : > { %v1402_v20 = vadd.f32 1e-05, %v1401_v18 }
 0x452   : > { %1870 = vrsqrt.f32 %v1402_v20  ;;  %vm1409_vm9 = vweird.f32 %v1402_v20 }
 0x458   : > { %v1871_v21 = vpop.eup %1870 }
 0x459   : > { %v1404_v22 = vmul.f32 %v1871_v21, %v1402_v20  ;;  %vm1410_vm8 = vweird.f32 %v1871_v21  ;;  %v1850_v20 = vld [vmem:[%s2293_s19] ss:$0 sm:$0xff] }
 0x45a   : > { %vm1411_vm10 = vmor %vm1409_vm9, %vm1410_vm8 }
 0x45b   : > { %v1405_v23 = vmul.f32 %v1871_v21, %v1404_v22 }
 0x45d   : > { %v1406_v24 = vmul.f32 0.5, %v1405_v23 }
 0x45f   : > { %v1407_v25 = vsub.f32 1.5, %v1406_v24 }
 0x461   : > { %v1408_v26 = vmul.f32 %v1871_v21, %v1407_v25 }
 0x463   : > { %v1412_v28 = vsel %vm1411_vm10, %v1871_v21, %v1408_v26 }
 0x464   : > { %v1413_v30 = vmul.f32 %v1412_v28, %v1396_v12 }
 0x466   : > { %v1417_v31 = vmul.f32 %v1844_v27, %v1413_v30 }
 0x468   : > { %v1421_v32 = vadd.f32 %v1845_v29, %v1417_v31 }
 0x46a   : > { %v1422_v33 = vpack.c.bf16 %v1421_v32, %v1421_v32 }
 0x46c   : > { %1771 = vmatmul.msk.bf16.vlgmr.msra.gmra.mxu0 %vm749_vm0, %v1422_v33 }
 0x4e9   : > { %v1455_v37 = vpop.f32.mrf.mxu0 }
 0x4ea   : > { %v1456_v38 = vadd.f32 %v1846_v36, %v1455_v37 }
 0x4ec   : > { %v1459_v39 = vmax.f32 %v1456_v38, 0.0 }
 0x4ee   : > { %v1460_v40 = vpack.c.bf16 %v1459_v39, %v1459_v39 }
 0x4f0   : > { %1788 = vmatmul.msk.bf16.vlgmr.msra.gmra.mxu1 %vm1497_vm11, %v1460_v40 }
 0x4f1   : > { %v1457_v41 = vpop.f32.mrf.mxu0 }
 0x56d   : > { %v1510_v43 = vpop.f32.mrf.mxu1 }
 0x56e   : > { %v1511_v44 = vadd.f32 %v1847_v42, %v1510_v43 }
 0x570   : > { %v1514_v45 = vadd.f32 %v1511_v44, %v1421_v32 }
 0x572   : > { %v1517_v46 = vsel %vm1370_vm6, %v1514_v45, 0.0 }
 0x573   : > { %1518 = vadd.xlane.f32.xlu1 %v1517_v46 }
 0x575   : > { %v1512_v47 = vpop.f32.mrf.mxu1 }
 0x5e6   : > { %v1519_v48 = vpop.xlane.xlu1 %1518 }
 0x5e7   : > { %v1520_v49 = vmul.f32 %v1519_v48, %v2210_v8 }
 0x5e9   : > { %v1521_v50 = vsub.f32 %v1514_v45, %v1520_v49 }
 0x5eb   : > { %v1522_v51 = vmul.f32 %v1521_v50, %v1521_v50 }
 0x5ed   : > { %v1523_v52 = vsel %vm1370_vm6, %v1522_v51, 0.0 }
 0x5ee   : > { %1524 = vadd.xlane.f32.xlu2 %v1523_v52 }
 0x661   : > { %v1525_v53 = vpop.xlane.xlu2 %1524 }
 0x662   : > { %v1526_v54 = vmul.f32 %v1525_v53, %v2210_v8 }
 0x664   : > { %v1527_v55 = vadd.f32 1e-05, %v1526_v54 }
 0x666   : > { %1872 = vrsqrt.f32 %v1527_v55  ;;  %vm1534_vm13 = vweird.f32 %v1527_v55 }
 0x66c   : > { %v1873_v56 = vpop.eup %1872 }
 0x66d   : > { %v1529_v57 = vmul.f32 %v1873_v56, %v1527_v55  ;;  %vm1535_vm12 = vweird.f32 %v1873_v56 }
 0x66e   : > { %vm1536_vm14 = vmor %vm1534_vm13, %vm1535_vm12 }
 0x66f   : > { %v1530_v58 = vmul.f32 %v1873_v56, %v1529_v57 }
 0x671   : > { %v1531_v59 = vmul.f32 0.5, %v1530_v58 }
 0x673   : > { %v1532_v60 = vsub.f32 1.5, %v1531_v59 }
 0x675   : > { %v1533_v61 = vmul.f32 %v1873_v56, %v1532_v60 }
 0x677   : > { %v1537_v63 = vsel %vm1536_vm14, %v1873_v56, %v1533_v61 }
 0x678   : > { %v1538_v0 = vmul.f32 %v1537_v63, %v1521_v50 }
 0x67a   : > { %v1542_v2 = vmul.f32 %v1848_v62, %v1538_v0 }
 0x67c   : > { %v1546_v3 = vadd.f32 %v1849_v1, %v1542_v2 }
 0x67e   : > { %v1549_v4 = vsel %vm1370_vm6, %v1546_v3, 0.0 }
 0x67f   : > { %1550 = vadd.xlane.f32.xlu0 %v1549_v4 }
 0x6f2   : > { %v1551_v5 = vpop.xlane.xlu0 %1550 }
 0x6f3   : > { %v1552_v6 = vmul.f32 %v1551_v5, %v2210_v8 }
 0x6f5   : > { %v1553_v7 = vsub.f32 %v1546_v3, %v1552_v6 }
 0x6f7   : > { %v1554_v9 = vmul.f32 %v1553_v7, %v1553_v7 }
 0x6f9   : > { %v1555_v10 = vsel %vm1370_vm6, %v1554_v9, 0.0 }
 0x6fa   : > { %1556 = vadd.xlane.f32.xlu1 %v1555_v10 }
 0x76d   : > { %v1557_v12 = vpop.xlane.xlu1 %1556 }
 0x76e   : > { %v1558_v11 = vmul.f32 %v1557_v12, %v2210_v8  ;;  %v1851_v8 = vld [vmem:[%s2316_s28] ss:$0 sm:$0xff] }
 0x770   : > { %v1559_v13 = vadd.f32 1e-05, %v1558_v11 }
 0x772   : > { %1874 = vrsqrt.f32 %v1559_v13  ;;  %vm1566_vm0 = vweird.f32 %v1559_v13 }
 0x778   : > { %v1875_v14 = vpop.eup %1874 }
 0x779   : > { %v1561_v15 = vmul.f32 %v1875_v14, %v1559_v13  ;;  %vm1567_vm15 = vweird.f32 %v1875_v14 }
 0x77a   : > { %vm1568_vm1 = vmor %vm1566_vm0, %vm1567_vm15 }
 0x77b   : > { %v1562_v16 = vmul.f32 %v1875_v14, %v1561_v15 }
 0x77d   : > { %v1563_v17 = vmul.f32 0.5, %v1562_v16 }
 0x77f   : > { %v1564_v18 = vsub.f32 1.5, %v1563_v17 }
 0x781   : > { %v1565_v19 = vmul.f32 %v1875_v14, %v1564_v18 }
 0x783   : > { %v1569_v21 = vsel %vm1568_vm1, %v1875_v14, %v1565_v19 }
 0x784   : > { %v1570_v22 = vmul.f32 %v1569_v21, %v1553_v7 }
 0x786   : > { %v1574_v23 = vmul.f32 %v1850_v20, %v1570_v22 }
 0x788   : > { %v1578_v24 = vadd.f32 %v1851_v8, %v1574_v23 }
 0x78a   : > { %v1579_v25 = vpack.c.bf16 %v1578_v24, %v1578_v24 }
 0x78c   : > { %1581 = vst.msk [vmem:[%s651_s23] sm:$0x3] %vm1580_vm2, %v1579_v25 }
 0x78d PF: > { %s2318_s2 = sld [smem:[#allocation2_spill]] }
 0x793   : > { %s31_s2 = sadd.s32 1, %s2318_s2  }
 0x794   : > { %p28_p4 = scmp.ge.s32.totalorder %s31_s2, 6  }
 0x796   :  { %30 = sbr.rel (!%p28_p4) target bundleno = 9 (0x9), region = 135 }

// kernel: translation_model_forward.7
= control target key start
LH: loop header
LB: loop body
LE: loop exit
PB: predicated region body
PF: predicated region fallthrough
CT: control target
= control target key end

     0   :  { %s3137_s6 = smov 1   ;;  %s3138_s10 = smov 2   ;;  %s3576_s0 = inlined_call_operand.smem [shape: u32[31], index: -1, kind: input, shape index: {}] }
   0x1   :  { %s3176_s5 = sld [smem:[%s3576_s0]]   ;;  %s3139_s14 = smov 3  }
   0x2   :  { %s3181_s9 = sld [smem:[%s3576_s0 + %s3137_s6]]   ;;  %s3140_s18 = smov 4  }
   0x3   :  { %s3186_s13 = sld [smem:[%s3576_s0 + %s3138_s10]]   ;;  %s3141_s22 = smov 5  }
   0x4   :  { %s3191_s17 = sld [smem:[%s3576_s0 + %s3139_s14]]   ;;  %s3142_s26 = smov 6  }
   0x5   :  { %s3196_s21 = sld [smem:[%s3576_s0 + %s3140_s18]]   ;;  %s3143_s30 = smov 7  }
   0x6   :  { %s3201_s25 = sld [smem:[%s3576_s0 + %s3141_s22]]   ;;  %s3144_s4 = smov 8  }
   0x7   :  { %s3206_s29 = sld [smem:[%s3576_s0 + %s3142_s26]]   ;;  %s3145_s10 = smov 9  }
   0x8   :  { %3584 = sst [smem:[#allocation2_spill]] %s3181_s9  ;;  %s3146_s15 = smov 10  }
   0x9   :  { %s3211_s3 = sld [smem:[%s3576_s0 + %s3143_s30]]   ;;  %s3147_s20 = smov 11  }
   0xa   :  { %3585 = sst [smem:[#allocation3_spill]] %s3191_s17  ;;  %s3148_s26 = smov 12  }
   0xb   :  { %s3216_s8 = sld [smem:[%s3576_s0 + %s3144_s4]]   ;;  %s3149_s1 = smov 13  }
   0xc   :  { %s3221_s14 = sld [smem:[%s3576_s0 + %s3145_s10]]   ;;  %s3150_s7 = smov 14  }
   0xd   :  { %s3226_s19 = sld [smem:[%s3576_s0 + %s3146_s15]]   ;;  %s3151_s15 = smov 15  }
   0xe   :  { %s3231_s24 = sld [smem:[%s3576_s0 + %s3147_s20]]   ;;  %s3152_s22 = smov 16  }
   0xf   :  { %s3236_s30 = sld [smem:[%s3576_s0 + %s3148_s26]]   ;;  %s3153_s28 = smov 17  }
  0x10   :  { %s3241_s6 = sld [smem:[%s3576_s0 + %s3149_s1]]  }
  0x11   :  { %s3246_s12 = sld [smem:[%s3576_s0 + %s3150_s7]]   ;;  %s3154_s7 = smov 18  }
  0x12   :  { %s3251_s20 = sld [smem:[%s3576_s0 + %s3151_s15]]   ;;  %s3155_s15 = smov 19  }
  0x13   :  { %s3256_s27 = sld [smem:[%s3576_s0 + %s3152_s22]]   ;;  %s3156_s22 = smov 20  }
  0x14   :  { %s3261_s4 = sld [smem:[%s3576_s0 + %s3153_s28]]   ;;  %s3157_s28 = smov 21  }
  0x15   :  { %s3266_s17 = sld [smem:[%s3576_s0 + %s3154_s7]]   ;;  %s3158_s7 = smov 22  }
  0x16   :  { %s3271_s9 = sld [smem:[%s3576_s0 + %s3155_s15]]   ;;  %s3159_s15 = smov 23  }
  0x19   :  { %3586 = sst [smem:[#allocation4_spill]] %s3256_s27 }
  0x1a   :  { %3587 = sst [smem:[#allocation5_spill]] %s3261_s4 }
  0x1b   :  { %3588 = sst [smem:[#allocation6_spill]] %s3266_s17 }
  0x1c   :  { %3589 = sst [smem:[#allocation7_spill]] %s3271_s9 }
  0x1d   :  { %s3276_s27 = sld [smem:[%s3576_s0 + %s3156_s22]]   ;;  %s3160_s22 = smov 24  }
  0x1e   :  { %s3281_s4 = sld [smem:[%s3576_s0 + %s3157_s28]]   ;;  %s3161_s28 = smov 25  }
  0x1f   :  { %s3286_s17 = sld [smem:[%s3576_s0 + %s3158_s7]]   ;;  %s3162_s7 = smov 26  }
  0x20   :  { %s3291_s9 = sld [smem:[%s3576_s0 + %s3159_s15]]   ;;  %s3163_s15 = smov 27  }
  0x23   :  { %3590 = sst [smem:[#allocation8_spill]] %s3276_s27 }
  0x24   :  { %3591 = sst [smem:[#allocation9_spill]] %s3281_s4 }
  0x25   :  { %3592 = sst [smem:[#allocation10_spill]] %s3286_s17 }
  0x26   :  { %3593 = sst [smem:[#allocation11_spill]] %s3291_s9 }
  0x27   :  { %s3296_s27 = sld [smem:[%s3576_s0 + %s3160_s22]]   ;;  %s3164_s22 = smov 28  }
  0x28   :  { %s3301_s4 = sld [smem:[%s3576_s0 + %s3161_s28]]   ;;  %s3165_s28 = smov 29  }
  0x29   :  { %s3306_s17 = sld [smem:[%s3576_s0 + %s3162_s7]]   ;;  %s3166_s7 = smov 30  }
  0x2a   :  { %s3311_s9 = sld [smem:[%s3576_s0 + %s3163_s15]]   ;;  %s3328_s15 = smov 0  }
  0x2d   :  { %3594 = sst [smem:[#allocation12_spill]] %s3296_s27 }
  0x2e   :  { %3595 = sst [smem:[#allocation13_spill]] %s3301_s4 }
  0x2f   :  { %3596 = sst [smem:[#allocation14_spill]] %s3306_s17 }
  0x30   :  { %s3316_s27 = sld [smem:[%s3576_s0 + %s3164_s22]]  }
  0x31   :  { %s3321_s4 = sld [smem:[%s3576_s0 + %s3165_s28]]  }
  0x32   :  { %s3326_s17 = sld [smem:[%s3576_s0 + %s3166_s7]]  }
  0x33 LB: > { %s2686_s16 = sadd.s32 4294967295, %s3135_s15   ;;  %p2690_p0 = scmp.ge.s32.totalorder %s3135_s15, 1  ;;  %s3135_s15 = sphi %s3328_s15, %s71_s15  }
  0x34   : > { %p851_p1 = scmp.lt.s32.totalorder %s3135_s15, 5 }
  0x36   : > { %p852_p2 = pnand %p2690_p0, %p851_p1 }
  0x37   : > { %p931_p3 = scmp.lt.s32.totalorder (!%p852_p2), %s2686_s16, 3  ;;  %s3597_s22 = sld [smem:[#allocation2_spill]] (!%p852_p2) }
  0x38   : > { %855 = sbr.rel (%p852_p2) target bundleno = 2806 (0xaf6), region = 140  ;;  %s3598_s23 = sld [smem:[#allocation4_spill]] (!%p852_p2) }
  0x39   : > { %s3599_s28 = sld [smem:[#allocation6_spill]] (!%p852_p2) }
  0x3a   : > { %s3600_s1 = sld [smem:[#allocation5_spill]] (!%p852_p2) }
  0x3b   : > { %s3601_s2 = sld [smem:[#allocation7_spill]] (!%p852_p2) }
  0x3c   : > { %s3602_s7 = sld [smem:[#allocation3_spill]] (!%p852_p2) }
  0x3d   : > { %v2963_v0 = vld [vmem:[%s3196_s21 + $0x8] sm:$0xff]  ;;  %v2965_v1 = vld [vmem:[%s3196_s21 + $0x18] sm:$0xff]  ;;  %v2962_v4 = vld [vmem:[%s3196_s21] sm:$0xff]  ;;  %s3611_s16 = smov (!%p931_p3, %s2686_s16), 3  ;;  %vm1037_vm0 = vcmask 261120   ;;  %vm1361_vm1 = vcmask 64512  }
  0x3e   : > { %v2967_v2 = vld [vmem:[%s3196_s21 + $0x28] sm:$0xff]  ;;  %v2969_v3 = vld [vmem:[%s3196_s21 + $0x38] sm:$0xff]  ;;  %1047 = vmatpush.bf16.msra.mxu0 %v2963_v0  ;;  %1072 = vmatpush.bf16.msra.mxu1 %v2965_v1  ;;  %v2964_v5 = vld [vmem:[%s3196_s21 + $0x10] sm:$0xff]  ;;  %s3344_s0 = sshll.u32 %s3611_s16, 1  ;;  %vm1503_vm2 = vcmask 1041408   ;;  %vm1446_vm3 = vcmask 27648  }
  0x3f   : > { %1097 = vmatpush.bf16.msra.mxu2 %v2967_v2  ;;  %1122 = vmatpush.bf16.msra.mxu3 %v2969_v3  ;;  %v2966_v6 = vld [vmem:[%s3196_s21 + $0x20] sm:$0xff]  ;;  %v2968_v7 = vld [vmem:[%s3196_s21 + $0x30] sm:$0xff]  ;;  %v2971_v8 = vld [vmem:[%s3201_s25 + $0x8] sm:$0xff]  ;;  %s934_s18 = scalar_lea.vmem %s3176_s5, %s3344_s0  ;;  %vm1499_vm4 = vcmask 31744   ;;  %vm1584_vm5 = vcmask 1043456   ;;  %vm1658_vm6 = vcmask 257024   ;;  %s938_s26 = scalar_lea.vmem %s3597_s22, %s3344_s0 }
  0x40   : > { %v2973_v9 = vld [vmem:[%s3201_s25 + $0x18] sm:$0xff]  ;;  %v2975_v10 = vld [vmem:[%s3201_s25 + $0x28] sm:$0xff]  ;;  %v3352_v12 = vld [vmem:[%s934_s18] sm:$0x3]  ;;  %s3603_s10 = sld [smem:[#allocation8_spill]]  ;;  %vm2538_vm14 = vcmask 523264  }
  0x41   : > { %v2977_v11 = vld [vmem:[%s3201_s25 + $0x38] sm:$0xff]  ;;  %v2970_v13 = vld [vmem:[%s3201_s25] sm:$0xff]  ;;  %v2972_v14 = vld [vmem:[%s3201_s25 + $0x10] sm:$0xff]  ;;  %s3604_s11 = sld [smem:[#allocation9_spill]] }
  0x42   : > { %1048 = vmatpush.bf16.msra.mxu0 %v2962_v4  ;;  %1073 = vmatpush.bf16.msra.mxu1 %v2964_v5  ;;  %v2974_v15 = vld [vmem:[%s3201_s25 + $0x20] sm:$0xff]  ;;  %v2976_v16 = vld [vmem:[%s3201_s25 + $0x30] sm:$0xff]  ;;  %v2983_v17 = vld [vmem:[%s3206_s29 + $0x28] sm:$0xff]  ;;  %s3605_s16 = sld [smem:[#allocation12_spill]] }
  0x43   : > { %1098 = vmatpush.bf16.msra.mxu2 %v2966_v6  ;;  %1123 = vmatpush.bf16.msra.mxu3 %v2968_v7  ;;  %v2979_v18 = vld [vmem:[%s3206_s29 + $0x8] sm:$0xff]  ;;  %v2981_v19 = vld [vmem:[%s3206_s29 + $0x18] sm:$0xff]  ;;  %v2982_v20 = vld [vmem:[%s3206_s29 + $0x20] sm:$0xff]  ;;  %s3606_s18 = sld [smem:[#allocation14_spill]] }
  0x44   : > { %v2978_v21 = vld [vmem:[%s3206_s29] sm:$0xff]  ;;  %v2980_v22 = vld [vmem:[%s3206_s29 + $0x10] sm:$0xff]  ;;  %v2985_v23 = vld [vmem:[%s3206_s29 + $0x38] sm:$0xff]  ;;  %s3607_s22 = sld [smem:[#allocation10_spill]] }
  0x45   : > { %2702 = vmatmul.msk.bf16.vlgmr.msra.gmra.mxu0 %vm1037_vm0, %v3352_v12  ;;  %2711 = vmatmul.msk.bf16.vlgmr.msra.gmra.mxu1 %vm1037_vm0, %v3352_v12  ;;  %v2984_v24 = vld [vmem:[%s3206_s29 + $0x30] sm:$0xff]  ;;  %v3059_v31 = vld [vmem:[%s3216_s8] ss:$0 sm:$0xff]  ;;  %v3060_v32 = vld [vmem:[%s3216_s8 + $0x1] ss:$0 sm:$0xff] }
  0x46   : > { %1159 = vmatpush.bf16.msrb.mxu0 %v2971_v8  ;;  %1184 = vmatpush.bf16.msrb.mxu1 %v2973_v9  ;;  %v3056_v39 = vld [vmem:[%s3211_s3 + $0x1] ss:$0 sm:$0xff]  ;;  %v3055_v42 = vld [vmem:[%s3211_s3] ss:$0 sm:$0xff]  ;;  %v3061_v43 = vld [vmem:[%s3216_s8 + $0x2] ss:$0 sm:$0xff] }
  0x47   : > { %2720 = vmatmul.msk.bf16.vlgmr.msra.gmra.mxu2 %vm1037_vm0, %v3352_v12  ;;  %2729 = vmatmul.msk.bf16.vlgmr.msra.gmra.mxu3 %vm1037_vm0, %v3352_v12  ;;  %v3062_v44 = vld [vmem:[%s3216_s8 + $0x3] ss:$0 sm:$0xff]  ;;  %v3057_v56 = vld [vmem:[%s3211_s3 + $0x2] ss:$0 sm:$0xff]  ;;  %v3063_v5 = vld [vmem:[%s3221_s14] ss:$0 sm:$0xff] }
  0x48   : > { %1209 = vmatpush.bf16.msrb.mxu2 %v2975_v10  ;;  %1234 = vmatpush.bf16.msrb.mxu3 %v2977_v11  ;;  %v3058_v57 = vld [vmem:[%s3211_s3 + $0x3] ss:$0 sm:$0xff]  ;;  %v3064_v6 = vld [vmem:[%s3221_s14 + $0x1] ss:$0 sm:$0xff]  ;;  %v3065_v11 = vld [vmem:[%s3221_s14 + $0x2] ss:$0 sm:$0xff] }
  0x4a   : > { %1160 = vmatpush.bf16.msrb.mxu0 %v2970_v13  ;;  %1185 = vmatpush.bf16.msrb.mxu1 %v2972_v14 }
  0x4c   : > { %1210 = vmatpush.bf16.msrb.mxu2 %v2974_v15  ;;  %1235 = vmatpush.bf16.msrb.mxu3 %v2976_v16 }
  0x4e   : > { %1271 = vmatpush.bf16.msra.mxu0 %v2979_v18  ;;  %1296 = vmatpush.bf16.msra.mxu1 %v2981_v19 }
  0x50   : > { %1321 = vmatpush.bf16.msra.mxu2 %v2983_v17  ;;  %1346 = vmatpush.bf16.msra.mxu3 %v2985_v23  ;;  %v3066_v23 = vld [vmem:[%s3221_s14 + $0x3] ss:$0 sm:$0xff] }
  0x52   : > { %1272 = vmatpush.bf16.msra.mxu0 %v2978_v21  ;;  %1297 = vmatpush.bf16.msra.mxu1 %v2980_v22 }
  0x54   : > { %1322 = vmatpush.bf16.msra.mxu2 %v2982_v20  ;;  %1347 = vmatpush.bf16.msra.mxu3 %v2984_v24 }
  0x55   : > { %2738 = vmatmul.msk.bf16.vlgmr.msrb.gmra.mxu0 %vm1037_vm0, %v3352_v12  ;;  %2747 = vmatmul.msk.bf16.vlgmr.msrb.gmra.mxu1 %vm1037_vm0, %v3352_v12 }
  0x57   : > { %2756 = vmatmul.msk.bf16.vlgmr.msrb.gmra.mxu2 %vm1037_vm0, %v3352_v12  ;;  %2765 = vmatmul.msk.bf16.vlgmr.msrb.gmra.mxu3 %vm1037_vm0, %v3352_v12 }
  0x65   : > { %2774 = vmatmul.msk.bf16.vlgmr.msra.gmra.mxu0 %vm1037_vm0, %v3352_v12  ;;  %2783 = vmatmul.msk.bf16.vlgmr.msra.gmra.mxu1 %vm1037_vm0, %v3352_v12 }
  0x67   : > { %2792 = vmatmul.msk.bf16.vlgmr.msra.gmra.mxu2 %vm1037_vm0, %v3352_v12  ;;  %2801 = vmatmul.msk.bf16.vlgmr.msra.gmra.mxu3 %vm1037_vm0, %v3352_v12 }
  0xc2   : > { %v1050_v25 = vpop.f32.mrf.mxu0  ;;  %v1075_v26 = vpop.f32.mrf.mxu1 }
  0xc3   : > { %v1076_v47 = vadd.f32 %v3056_v39, %v1075_v26  ;;  %v1051_v50 = vadd.f32 %v3055_v42, %v1050_v25 }
  0xc5   : > { %v1354_v55 = vpack.c.bf16 %v1076_v47, %v1076_v47  ;;  %v1353_v60 = vpack.c.bf16 %v1051_v50, %v1051_v50 }
  0xca   : > { %v1100_v27 = vpop.f32.mrf.mxu2  ;;  %v1125_v28 = vpop.f32.mrf.mxu3 }
  0xcb   : > { %v1052_v29 = vpop.f32.mrf.mxu0  ;;  %v1077_v30 = vpop.f32.mrf.mxu1  ;;  %v1101_v63 = vadd.f32 %v3057_v56, %v1100_v27  ;;  %v1126_v0 = vadd.f32 %v3058_v57, %v1125_v28 }
  0xcd   : > { %v1355_v3 = vpack.c.bf16 %v1101_v63, %v1101_v63  ;;  %v1356_v4 = vpack.c.bf16 %v1126_v0, %v1126_v0 }
  0xd2   : > { %v1102_v33 = vpop.f32.mrf.mxu2  ;;  %v1127_v34 = vpop.f32.mrf.mxu3 }
  0xd3   : > { %v1162_v35 = vpop.f32.mrf.mxu0  ;;  %v1187_v36 = vpop.f32.mrf.mxu1 }
  0xd4   : > { %v1163_v37 = vadd.f32 %v3059_v31, %v1162_v35  ;;  %v1188_v38 = vadd.f32 %v3060_v32, %v1187_v36  ;;  %v947_v32 = vld [vmem:[%s3186_s13] sm:$0xf] }
  0xd6   : > { %v1357_v40 = vpack.c.bf16 %v1163_v37, %v1163_v37  ;;  %v1358_v41 = vpack.c.bf16 %v1188_v38, %v1188_v38 }
  0xd8   : > { %v1366_v45 = vsel %vm1361_vm1, %v1357_v40, 0  ;;  %v1385_v46 = vsel %vm1361_vm1, %v1358_v41, 0 }
  0xd9   : > { %1375 = vmatpush.bf16.xpose.msrb.mxu0 %v1366_v45  ;;  %1394 = vmatpush.bf16.xpose.msrb.mxu1 %v1385_v46 }
  0xda   : > { %v1212_v48 = vpop.f32.mrf.mxu2  ;;  %v1237_v49 = vpop.f32.mrf.mxu3 }
  0xdb   : > { %v1213_v51 = vadd.f32 %v3061_v43, %v1212_v48  ;;  %v1238_v52 = vadd.f32 %v3062_v44, %v1237_v49  ;;  %v1164_v53 = vpop.f32.mrf.mxu0  ;;  %v1189_v54 = vpop.f32.mrf.mxu1 }
  0xdd   : > { %v1359_v58 = vpack.c.bf16 %v1213_v51, %v1213_v51  ;;  %v1360_v59 = vpack.c.bf16 %v1238_v52, %v1238_v52 }
  0xdf   : > { %v1404_v61 = vsel %vm1361_vm1, %v1359_v58, 0  ;;  %v1423_v62 = vsel %vm1361_vm1, %v1360_v59, 0 }
  0xe0   : > { %1413 = vmatpush.bf16.xpose.msrb.mxu2 %v1404_v61  ;;  %1432 = vmatpush.bf16.xpose.msrb.mxu3 %v1423_v62 }
  0xe1   : > { %2802 = vmatmul.msk.bf16.vlgmr.msrb.gmra.mxu0 %vm1361_vm1, %v1353_v60  ;;  %2803 = vmatmul.msk.bf16.vlgmr.msrb.gmra.mxu1 %vm1361_vm1, %v1354_v55 }
  0xe2   : > { %v1214_v1 = vpop.f32.mrf.mxu2  ;;  %v1239_v2 = vpop.f32.mrf.mxu3 }
  0xe3   : > { %v1274_v7 = vpop.f32.mrf.mxu0  ;;  %v1299_v8 = vpop.f32.mrf.mxu1 }
  0xe4   : > { %v1275_v9 = vadd.f32 %v3063_v5, %v1274_v7  ;;  %v1300_v10 = vadd.f32 %v3064_v6, %v1299_v8 }
  0xe6   : > { %v1495_v13 = vpack.c.bf16 %v1275_v9, %v1275_v9  ;;  %v1496_v14 = vpack.c.bf16 %v1300_v10, %v1300_v10 }
  0xe7   : > { %2804 = vmatmul.msk.bf16.vlgmr.msrb.gmra.mxu2 %vm1361_vm1, %v1355_v3  ;;  %2805 = vmatmul.msk.bf16.vlgmr.msrb.gmra.mxu3 %vm1361_vm1, %v1356_v4 }
  0xe8   : > { %v1505_v16 = vsel %vm1503_vm2, %v1495_v13, 0  ;;  %v1524_v17 = vsel %vm1503_vm2, %v1496_v14, 0 }
  0xe9   : > { %1514 = vmatpush.bf16.msra.mxu0 %v1505_v16  ;;  %1533 = vmatpush.bf16.msra.mxu1 %v1524_v17 }
  0xea   : > { %v1324_v15 = vpop.f32.mrf.mxu2  ;;  %v1349_v25 = vpop.f32.mrf.mxu3 }
  0xeb   : > { %v1325_v18 = vadd.f32 %v3065_v11, %v1324_v15  ;;  %v1276_v20 = vpop.f32.mrf.mxu0  ;;  %v1301_v21 = vpop.f32.mrf.mxu1  ;;  %v1350_v26 = vadd.f32 %v3066_v23, %v1349_v25 }
  0xed   : > { %v1497_v19 = vpack.c.bf16 %v1325_v18, %v1325_v18  ;;  %v1498_v27 = vpack.c.bf16 %v1350_v26, %v1350_v26  ;;  %v1009_v26 = vld [vmem:[%s3226_s19 + $0x4] sm:$0xf] }
  0xef   : > { %v1543_v22 = vsel %vm1503_vm2, %v1497_v19, 0  ;;  %v1562_v28 = vsel %vm1503_vm2, %v1498_v27, 0  ;;  %v1605_v27 = vsel %vm1584_vm5, %v1009_v26, 0  ;;  %v2994_v26 = vld [vmem:[%s3251_s20] sm:$0xff] }
  0xf0   : > { %1552 = vmatpush.bf16.msra.mxu2 %v1543_v22  ;;  %1571 = vmatpush.bf16.msra.mxu3 %v1562_v28  ;;  %v1010_v28 = vld [vmem:[%s3226_s19 + $0x8] sm:$0xf] }
  0xf1   : > { %1614 = vmatpush.bf16.msrb.mxu1 %v1605_v27  ;;  %v2996_v27 = vld [vmem:[%s3251_s20 + $0x10] sm:$0xff] }
  0xf2   : > { %v1326_v24 = vpop.f32.mrf.mxu2  ;;  %v1351_v29 = vpop.f32.mrf.mxu3 }
  0xf3   : > { %v1008_v24 = vld [vmem:[%s3226_s19] sm:$0xf]  ;;  %v1624_v29 = vsel %vm1584_vm5, %v1010_v28, 0 }
  0xf4   : > { %v1586_v25 = vsel %vm1584_vm5, %v1008_v24, 0  ;;  %1633 = vmatpush.bf16.msrb.mxu2 %v1624_v29  ;;  %v2998_v29 = vld [vmem:[%s3251_s20 + $0x20] sm:$0xff] }
  0xf5   : > { %1595 = vmatpush.bf16.msrb.mxu0 %v1586_v25  ;;  %v3001_v25 = vld [vmem:[%s3251_s20 + $0x38] sm:$0xff] }
 0x15e   : > { %v1377_v30 = vpop.f32.mrf.mxu0  ;;  %v1396_v31 = vpop.f32.mrf.mxu1 }
 0x15f   : > { %v1438_v33 = vmul.f32 0.35355338, %v1377_v30  ;;  %v1439_v35 = vmul.f32 0.35355338, %v1396_v31  ;;  %v1011_v30 = vld [vmem:[%s3226_s19 + $0xc] sm:$0xf] }
 0x160   : > { %v1643_v31 = vsel %vm1584_vm5, %v1011_v30, 0  ;;  %v3000_v30 = vld [vmem:[%s3251_s20 + $0x30] sm:$0xff] }
 0x161   : > { %v1442_v34 = vadd.f32 %v1438_v33, %v947_v32  ;;  %v1443_v39 = vadd.f32 %v1439_v35, %v947_v32  ;;  %1652 = vmatpush.bf16.msrb.mxu3 %v1643_v31 }
 0x163   : > { %v1447_v36 = vsel %vm1446_vm3, %v1442_v34, -inf  ;;  %v1450_v43 = vsel %vm1446_vm3, %v1443_v39, -inf }
 0x164   : > { %1448 = vmax.xlane.f32.xlu1 %v1447_v36 }
 0x166   : > { %v1379_v37 = vpop.f32.mrf.mxu0  ;;  %v1398_v38 = vpop.f32.mrf.mxu1 }
 0x16a   : > { %v1415_v40 = vpop.f32.mrf.mxu2  ;;  %v1434_v41 = vpop.f32.mrf.mxu3 }
 0x16b   : > { %v1440_v42 = vmul.f32 0.35355338, %v1415_v40  ;;  %v1441_v45 = vmul.f32 0.35355338, %v1434_v41 }
 0x16c   : > { %1451 = vmax.xlane.f32.xlu1 %v1450_v43 }
 0x16d   : > { %v1444_v44 = vadd.f32 %v1440_v42, %v947_v32  ;;  %v1445_v49 = vadd.f32 %v1441_v45, %v947_v32 }
 0x16f   : > { %v1453_v46 = vsel %vm1446_vm3, %v1444_v44, -inf  ;;  %v1456_v50 = vsel %vm1446_vm3, %v1445_v49, -inf }
 0x170   : > { %1454 = vmax.xlane.f32.xlu0 %v1453_v46 }
 0x172   : > { %v1417_v47 = vpop.f32.mrf.mxu2  ;;  %v1436_v48 = vpop.f32.mrf.mxu3 }
 0x178   : > { %1457 = vmax.xlane.f32.xlu0 %v1456_v50 }
 0x1d7   : > { %v1449_v51 = vpop.xlane.xlu1 %1448 }
 0x1d8   : > { %v1459_v52 = vsub.f32 %v1442_v34, %v1449_v51 }
 0x1da   : > { %v1463_v53 = vmul.f32 1.442695, %v1459_v52 }
 0x1dc   : > { %3089 = vpow2.f32 %v1463_v53 }
 0x1df   : > { %v1452_v54 = vpop.xlane.xlu1 %1451 }
 0x1e0   : > { %v1460_v55 = vsub.f32 %v1443_v39, %v1452_v54 }
 0x1e2   : > { %v3090_v56 = vpop.eup %3089  ;;  %v1465_v57 = vmul.f32 1.442695, %v1460_v55 }
 0x1e3   : > { %v1455_v58 = vpop.xlane.xlu0 %1454  ;;  %v1471_v59 = vsel %vm1446_vm3, %v3090_v56, 0.0 }
 0x1e4   : > { %3091 = vpow2.f32 %v1465_v57  ;;  %v1461_v60 = vsub.f32 %v1444_v44, %v1455_v58  ;;  %1472 = vadd.xlane.f32.xlu0 %v1471_v59  ;;  %v946_v59 = vunpack.c.l.bf16 %v3352_v12 }
 0x1e6   : > { %v1467_v61 = vmul.f32 1.442695, %v1461_v60 }
 0x1e8   : > { %3093 = vpow2.f32 %v1467_v61 }
 0x1ea   : > { %v3092_v62 = vpop.eup %3091 }
 0x1eb   : > { %v1458_v63 = vpop.xlane.xlu0 %1457  ;;  %v1474_v0 = vsel %vm1446_vm3, %v3092_v62, 0.0 }
 0x1ec   : > { %v1462_v1 = vsub.f32 %v1445_v49, %v1458_v63  ;;  %1475 = vadd.xlane.f32.xlu1 %v1474_v0  ;;  %v3167_v0 = vmov 32.0  }
 0x1ee   : > { %v3094_v2 = vpop.eup %3093  ;;  %v1469_v3 = vmul.f32 1.442695, %v1462_v1 }
 0x1ef   : > { %v1477_v4 = vsel %vm1446_vm3, %v3094_v2, 0.0 }
 0x1f0   : > { %3095 = vpow2.f32 %v1469_v3  ;;  %1478 = vadd.xlane.f32.xlu2 %v1477_v4 }
 0x1f6   : > { %v3096_v5 = vpop.eup %3095 }
 0x1f7   : > { %v1480_v6 = vsel %vm1446_vm3, %v3096_v5, 0.0 }
 0x1f8   : > { %1481 = vadd.xlane.f32.xlu2 %v1480_v6 }
 0x257   : > { %v1473_v7 = vpop.xlane.xlu0 %1472 }
 0x258   : > { %3097 = vrcp.f32 %v1473_v7 }
 0x25e   : > { %v3098_v8 = vpop.eup %3097 }
 0x25f   : > { %v1487_v9 = vmul.f32 %v3098_v8, %v3090_v56  ;;  %v1476_v10 = vpop.xlane.xlu1 %1475  ;;  %v3067_v56 = vld [vmem:[%s3231_s24] ss:$0 sm:$0xff] }
 0x260   : > { %3099 = vrcp.f32 %v1476_v10 }
 0x261   : > { %v1491_v11 = vpack.c.bf16 %v1487_v9, %v1487_v9 }
 0x263   : > { %v1479_v13 = vpop.xlane.xlu2 %1478  ;;  %2806 = vmatmul.msk.bf16.vlgmr.msra.gmra.mxu0 %vm1499_vm4, %v1491_v11  ;;  %v2987_v11 = vld [vmem:[%s3246_s12 + $0x8] sm:$0xff] }
 0x264   : > { %3101 = vrcp.f32 %v1479_v13  ;;  %v2989_v13 = vld [vmem:[%s3246_s12 + $0x18] sm:$0xff]  ;;  %1810 = vmatpush.bf16.msra.mxu0 %v2987_v11 }
 0x266   : > { %v3100_v14 = vpop.eup %3099 }
 0x267   : > { %v1488_v15 = vmul.f32 %v3100_v14, %v3092_v62  ;;  %v2991_v14 = vld [vmem:[%s3246_s12 + $0x28] sm:$0xff] }
 0x269   : > { %v1492_v16 = vpack.c.bf16 %v1488_v15, %v1488_v15  ;;  %v2993_v15 = vld [vmem:[%s3246_s12 + $0x38] sm:$0xff] }
 0x26a   : > { %v3102_v17 = vpop.eup %3101 }
 0x26b   : > { %v1489_v18 = vmul.f32 %v3102_v17, %v3094_v2  ;;  %v1482_v19 = vpop.xlane.xlu2 %1481  ;;  %2807 = vmatmul.msk.bf16.vlgmr.msra.gmra.mxu1 %vm1499_vm4, %v1492_v16  ;;  %v2986_v16 = vld [vmem:[%s3246_s12] sm:$0xff]  ;;  %v2988_v17 = vld [vmem:[%s3246_s12 + $0x10] sm:$0xff] }
 0x26c   : > { %3103 = vrcp.f32 %v1482_v19  ;;  %1835 = vmatpush.bf16.msra.mxu1 %v2989_v13  ;;  %v2992_v19 = vld [vmem:[%s3246_s12 + $0x30] sm:$0xff]  ;;  %1811 = vmatpush.bf16.msra.mxu0 %v2986_v16 }
 0x26d   : > { %v1493_v20 = vpack.c.bf16 %v1489_v18, %v1489_v18  ;;  %3105 = vrcp.f32 %v3167_v0  ;;  %v2990_v18 = vld [vmem:[%s3246_s12 + $0x20] sm:$0xff] }
 0x26f   : > { %2808 = vmatmul.msk.bf16.vlgmr.msra.gmra.mxu2 %vm1499_vm4, %v1493_v20 }
 0x270   : > { %1860 = vmatpush.bf16.msra.mxu2 %v2991_v14  ;;  %1836 = vmatpush.bf16.msra.mxu1 %v2988_v17 }
 0x272   : > { %v3104_v21 = vpop.eup %3103 }
 0x273   : > { %v1490_v22 = vmul.f32 %v3104_v21, %v3096_v5  ;;  %v3106_v1 = vpop.eup %3105  ;;  %v2995_v21 = vld [vmem:[%s3251_s20 + $0x8] sm:$0xff] }
 0x274   : > { %v1677_v2 = vmul.f32 32.0, %v3106_v1  ;;  %vm1681_vm7 = vweird.f32 %v3106_v1  ;;  %1861 = vmatpush.bf16.msra.mxu2 %v2990_v18 }
 0x275   : > { %v1494_v23 = vpack.c.bf16 %v1490_v22, %v1490_v22  ;;  %v2997_v22 = vld [vmem:[%s3251_s20 + $0x18] sm:$0xff] }
 0x276   : > { %v1678_v3 = vsub.f32 1.0, %v1677_v2 }
 0x277   : > { %2809 = vmatmul.msk.bf16.vlgmr.msra.gmra.mxu3 %vm1499_vm4, %v1494_v23  ;;  %v2999_v23 = vld [vmem:[%s3251_s20 + $0x28] sm:$0xff] }
 0x278   : > { %v1679_v4 = vmul.f32 %v3106_v1, %v1678_v3  ;;  %1885 = vmatpush.bf16.msra.mxu3 %v2993_v15  ;;  %v3070_v3 = vld [vmem:[%s3600_s1] ss:$0 sm:$0xff] }
 0x27a   : > { %v1680_v5 = vadd.f32 %v3106_v1, %v1679_v4 }
 0x27c   : > { %v3446_v12 = vsel %vm1681_vm7, %v3106_v1, %v1680_v5  ;;  %1886 = vmatpush.bf16.msra.mxu3 %v2992_v19 }
 0x2e0   : > { %v1516_v32 = vpop.f32.mrf.mxu0 }
 0x2e1   : > { %v1577_v33 = vpack.c.bf16 %v1516_v32, %v1516_v32 }
 0x2e3   : > { %2810 = vmatmul.msk.bf16.vlgmr.msrb.gmra.mxu0 %vm1361_vm1, %v1577_v33 }
 0x2e4   : > { %1925 = vmatpush.bf16.msrb.mxu0 %v2995_v21  ;;  %v3073_v21 = vld [vmem:[%s3600_s1 + $0x3] ss:$0 sm:$0xff] }
 0x2e8   : > { %v1518_v34 = vpop.f32.mrf.mxu0  ;;  %v1535_v35 = vpop.f32.mrf.mxu1  ;;  %1926 = vmatpush.bf16.msrb.mxu0 %v2994_v26 }
 0x2e9   : > { %v1578_v36 = vpack.c.bf16 %v1535_v35, %v1535_v35 }
 0x2eb   : > { %2811 = vmatmul.msk.bf16.vlgmr.msrb.gmra.mxu1 %vm1361_vm1, %v1578_v36 }
 0x2ec   : > { %1950 = vmatpush.bf16.msrb.mxu1 %v2997_v22 }
 0x2f0   : > { %v1537_v37 = vpop.f32.mrf.mxu1  ;;  %1951 = vmatpush.bf16.msrb.mxu1 %v2996_v27 }
 0x2f1   : > { %v3068_v37 = vld [vmem:[%s3236_s30] ss:$0 sm:$0xff] }
 0x2f2   : > { %v1554_v38 = vpop.f32.mrf.mxu2 }
 0x2f3   : > { %v1579_v39 = vpack.c.bf16 %v1554_v38, %v1554_v38 }
 0x2f5   : > { %2812 = vmatmul.msk.bf16.vlgmr.msrb.gmra.mxu2 %vm1361_vm1, %v1579_v39  ;;  %v3069_v39 = vld [vmem:[%s3241_s6] ss:$0 sm:$0xff] }
 0x2f6   : > { %1975 = vmatpush.bf16.msrb.mxu2 %v2999_v23 }
 0x2fa   : > { %v1556_v40 = vpop.f32.mrf.mxu2  ;;  %v1573_v41 = vpop.f32.mrf.mxu3  ;;  %1976 = vmatpush.bf16.msrb.mxu2 %v2998_v29 }
 0x2fb   : > { %v1580_v42 = vpack.c.bf16 %v1573_v41, %v1573_v41 }
 0x2fd   : > { %2813 = vmatmul.msk.bf16.vlgmr.msrb.gmra.mxu3 %vm1361_vm1, %v1580_v42 }
 0x2fe   : > { %2000 = vmatpush.bf16.msrb.mxu3 %v3001_v25 }
 0x302   : > { %v1575_v43 = vpop.f32.mrf.mxu3  ;;  %2001 = vmatpush.bf16.msrb.mxu3 %v3000_v30 }
 0x360   : > { %v1597_v44 = vpop.f32.mrf.mxu0 }
 0x361   : > { %v1659_v50 = vsel %vm1658_vm6, %v1597_v44, 0.0  ;;  %v945_v44 = vld [vmem:[%s938_s26] sm:$0x3]  ;;  %s3608_s26 = sld [smem:[#allocation11_spill]] }
 0x368   : > { %v1599_v45 = vpop.f32.mrf.mxu0  ;;  %v1616_v46 = vpop.f32.mrf.mxu1 }
 0x369   : > { %v1660_v49 = vsel %vm1658_vm6, %v1616_v46, 0.0  ;;  %v3007_v45 = vld [vmem:[%s3598_s23 + $0x28] sm:$0xff] }
 0x36a   : > { %v1661_v52 = vadd.f32 %v1660_v49, %v1659_v50  ;;  %v3003_v46 = vld [vmem:[%s3598_s23 + $0x8] sm:$0xff]  ;;  %v3006_v49 = vld [vmem:[%s3598_s23 + $0x20] sm:$0xff] }
 0x36b   : > { %v3002_v50 = vld [vmem:[%s3598_s23] sm:$0xff] }
 0x370   : > { %v1618_v47 = vpop.f32.mrf.mxu1 }
 0x371   : > { %v3005_v47 = vld [vmem:[%s3598_s23 + $0x18] sm:$0xff] }
 0x378   : > { %v1635_v48 = vpop.f32.mrf.mxu2 }
 0x379   : > { %v1662_v51 = vsel %vm1658_vm6, %v1635_v48, 0.0  ;;  %v3009_v48 = vld [vmem:[%s3598_s23 + $0x38] sm:$0xff] }
 0x37a   : > { %v1663_v53 = vadd.f32 %v1662_v51, %v1661_v52  ;;  %v3004_v51 = vld [vmem:[%s3598_s23 + $0x10] sm:$0xff] }
 0x37b   : > { %v3008_v52 = vld [vmem:[%s3598_s23 + $0x30] sm:$0xff] }
 0x380   : > { %v1637_v54 = vpop.f32.mrf.mxu2  ;;  %v1654_v55 = vpop.f32.mrf.mxu3 }
 0x381   : > { %v1664_v57 = vsel %vm1658_vm6, %v1654_v55, 0.0 }
 0x382   : > { %v1665_v58 = vadd.f32 %v1664_v57, %v1663_v53 }
 0x384   : > { %v1669_v60 = vadd.f32 %v3067_v56, %v1665_v58 }
 0x386   : > { %v1670_v61 = vadd.f32 %v1669_v60, %v946_v59  ;;  %v3074_v59 = vld [vmem:[%s3599_s28] ss:$0 sm:$0xff]  ;;  %v3075_v60 = vld [vmem:[%s3599_s28 + $0x1] ss:$0 sm:$0xff] }
 0x388   : > { %v1656_v62 = vpop.f32.mrf.mxu3  ;;  %v1673_v63 = vsel %vm1658_vm6, %v1670_v61, 0.0 }
 0x389   : > { %1674 = vadd.xlane.f32.xlu2 %v1673_v63 }
 0x3fc   : > { %v1675_v6 = vpop.xlane.xlu2 %1674 }
 0x3fd   : > { %v1683_v7 = vmul.f32 %v3446_v12, %v1675_v6  ;;  %v3071_v6 = vld [vmem:[%s3600_s1 + $0x1] ss:$0 sm:$0xff] }
 0x3ff   : > { %v1684_v8 = vsub.f32 %v1670_v61, %v1683_v7  ;;  %v3076_v7 = vld [vmem:[%s3599_s28 + $0x2] ss:$0 sm:$0xff] }
 0x401   : > { %v1685_v9 = vmul.f32 %v1684_v8, %v1684_v8 }
 0x403   : > { %v1686_v10 = vsel %vm1658_vm6, %v1685_v9, 0.0 }
 0x404   : > { %1687 = vadd.xlane.f32.xlu0 %v1686_v10 }
 0x477   : > { %v1688_v20 = vpop.xlane.xlu0 %1687 }
 0x478   : > { %v1689_v24 = vmul.f32 %v1688_v20, %v3446_v12  ;;  %v3072_v20 = vld [vmem:[%s3600_s1 + $0x2] ss:$0 sm:$0xff] }
 0x47a   : > { %v1690_v28 = vadd.f32 1e-05, %v1689_v24 }
 0x47c   : > { %3107 = vrsqrt.f32 %v1690_v28  ;;  %vm1697_vm9 = vweird.f32 %v1690_v28 }
 0x482   : > { %v3108_v31 = vpop.eup %3107 }
 0x483   : > { %v1692_v32 = vmul.f32 %v3108_v31, %v1690_v28  ;;  %vm1698_vm8 = vweird.f32 %v3108_v31 }
 0x484   : > { %vm1699_vm10 = vmor %vm1697_vm9, %vm1698_vm8 }
 0x485   : > { %v1693_v33 = vmul.f32 %v3108_v31, %v1692_v32 }
 0x487   : > { %v1694_v34 = vmul.f32 0.5, %v1693_v33 }
 0x489   : > { %v1695_v35 = vsub.f32 1.5, %v1694_v34  ;;  %v3078_v34 = vld [vmem:[%s3601_s2] ss:$0 sm:$0xff] }
 0x48b   : > { %v1696_v36 = vmul.f32 %v3108_v31, %v1695_v35  ;;  %v3079_v35 = vld [vmem:[%s3601_s2 + $0x1] ss:$0 sm:$0xff] }
 0x48d   : > { %v1700_v38 = vsel %vm1699_vm10, %v3108_v31, %v1696_v36 }
 0x48e   : > { %v1701_v40 = vmul.f32 %v1700_v38, %v1684_v8  ;;  %v3077_v8 = vld [vmem:[%s3599_s28 + $0x3] ss:$0 sm:$0xff] }
 0x490   : > { %v1705_v41 = vmul.f32 %v3068_v37, %v1701_v40  ;;  %v3080_v40 = vld [vmem:[%s3601_s2 + $0x2] ss:$0 sm:$0xff] }
 0x492   : > { %v3469_v42 = vadd.f32 %v3069_v39, %v1705_v41 }
 0x494   : > { %v1710_v43 = vpack.c.bf16 %v3469_v42, %v3469_v42 }
 0x496   : > { %2822 = vmatmul.msk.bf16.vlgmr.msra.gmra.mxu0 %vm1037_vm0, %v1710_v43  ;;  %2831 = vmatmul.msk.bf16.vlgmr.msra.gmra.mxu1 %vm1037_vm0, %v1710_v43 }
 0x497   : > { %2840 = vmatmul.msk.bf16.vlgmr.msra.gmra.mxu2 %vm1037_vm0, %v1710_v43  ;;  %2849 = vmatmul.msk.bf16.vlgmr.msra.gmra.mxu3 %vm1037_vm0, %v1710_v43 }
 0x498   : > { %2087 = vmatpush.bf16.msra.mxu2 %v3007_v45  ;;  %2037 = vmatpush.bf16.msra.mxu0 %v3003_v46  ;;  %v3081_v45 = vld [vmem:[%s3601_s2 + $0x3] ss:$0 sm:$0xff] }
 0x499   : > { %2062 = vmatpush.bf16.msra.mxu1 %v3005_v47  ;;  %2112 = vmatpush.bf16.msra.mxu3 %v3009_v48 }
 0x49c   : > { %2088 = vmatpush.bf16.msra.mxu2 %v3006_v49  ;;  %2038 = vmatpush.bf16.msra.mxu0 %v3002_v50 }
 0x49d   : > { %2063 = vmatpush.bf16.msra.mxu1 %v3004_v51  ;;  %2113 = vmatpush.bf16.msra.mxu3 %v3008_v52 }
 0x4a6   : > { %2858 = vmatmul.msk.bf16.vlgmr.msrb.gmra.mxu0 %vm1037_vm0, %v945_v44  ;;  %2867 = vmatmul.msk.bf16.vlgmr.msrb.gmra.mxu1 %vm1037_vm0, %v945_v44 }
 0x4a7   : > { %2876 = vmatmul.msk.bf16.vlgmr.msrb.gmra.mxu2 %vm1037_vm0, %v945_v44  ;;  %2885 = vmatmul.msk.bf16.vlgmr.msrb.gmra.mxu3 %vm1037_vm0, %v945_v44 }
 0x4b6   : > { %2894 = vmatmul.msk.bf16.vlgmr.msra.gmra.mxu0 %vm1037_vm0, %v945_v44  ;;  %2903 = vmatmul.msk.bf16.vlgmr.msra.gmra.mxu1 %vm1037_vm0, %v945_v44 }
 0x4b7   : > { %2912 = vmatmul.msk.bf16.vlgmr.msra.gmra.mxu2 %vm1037_vm0, %v945_v44  ;;  %2921 = vmatmul.msk.bf16.vlgmr.msra.gmra.mxu3 %vm1037_vm0, %v945_v44 }
 0x513   : > { %v1813_v53 = vpop.f32.mrf.mxu0  ;;  %v1838_v54 = vpop.f32.mrf.mxu1 }
 0x514   : > { %v1814_v14 = vadd.f32 %v3070_v3, %v1813_v53  ;;  %v1839_v15 = vadd.f32 %v3071_v6, %v1838_v54 }
 0x516   : > { %v2119_v24 = vpack.c.bf16 %v1814_v14, %v1814_v14  ;;  %v2120_v25 = vpack.c.bf16 %v1839_v15, %v1839_v15 }
 0x51a   : > { %v1863_v55 = vpop.f32.mrf.mxu2  ;;  %v1888_v56 = vpop.f32.mrf.mxu3 }
 0x51b   : > { %v1815_v57 = vpop.f32.mrf.mxu0  ;;  %v1840_v58 = vpop.f32.mrf.mxu1  ;;  %v1864_v28 = vadd.f32 %v3072_v20, %v1863_v55  ;;  %v1889_v29 = vadd.f32 %v3073_v21, %v1888_v56 }
 0x51d   : > { %v2121_v32 = vpack.c.bf16 %v1864_v28, %v1864_v28  ;;  %v2122_v33 = vpack.c.bf16 %v1889_v29, %v1889_v29 }
 0x522   : > { %v1865_v61 = vpop.f32.mrf.mxu2  ;;  %v1890_v62 = vpop.f32.mrf.mxu3 }
 0x523   : > { %v1928_v63 = vpop.f32.mrf.mxu0  ;;  %v1953_v0 = vpop.f32.mrf.mxu1  ;;  %v1711_v61 = vld [vmem:[%s3602_s7] sm:$0xf]  ;;  %s3609_s7 = sld [smem:[#allocation13_spill]] }
 0x524   : > { %v1929_v1 = vadd.f32 %v3074_v59, %v1928_v63  ;;  %v1954_v2 = vadd.f32 %v3075_v60, %v1953_v0 }
 0x526   : > { %v2123_v4 = vpack.c.bf16 %v1929_v1, %v1929_v1  ;;  %v2124_v5 = vpack.c.bf16 %v1954_v2, %v1954_v2 }
 0x528   : > { %v2131_v9 = vsel %vm1361_vm1, %v2123_v4, 0  ;;  %v2150_v10 = vsel %vm1361_vm1, %v2124_v5, 0 }
 0x529   : > { %2140 = vmatpush.bf16.xpose.msrb.mxu0 %v2131_v9  ;;  %2159 = vmatpush.bf16.xpose.msrb.mxu1 %v2150_v10 }
 0x52a   : > { %v1978_v11 = vpop.f32.mrf.mxu2  ;;  %v2003_v13 = vpop.f32.mrf.mxu3 }
 0x52b   : > { %v1979_v16 = vadd.f32 %v3076_v7, %v1978_v11  ;;  %v2004_v17 = vadd.f32 %v3077_v8, %v2003_v13  ;;  %v1930_v18 = vpop.f32.mrf.mxu0  ;;  %v1955_v19 = vpop.f32.mrf.mxu1 }
 0x52d   : > { %v2125_v22 = vpack.c.bf16 %v1979_v16, %v1979_v16  ;;  %v2126_v23 = vpack.c.bf16 %v2004_v17, %v2004_v17 }
 0x52f   : > { %v2169_v26 = vsel %vm1361_vm1, %v2125_v22, 0  ;;  %v2188_v27 = vsel %vm1361_vm1, %v2126_v23, 0 }
 0x530   : > { %2178 = vmatpush.bf16.xpose.msrb.mxu2 %v2169_v26  ;;  %2197 = vmatpush.bf16.xpose.msrb.mxu3 %v2188_v27 }
 0x531   : > { %2922 = vmatmul.msk.bf16.vlgmr.msrb.gmra.mxu0 %vm1361_vm1, %v2119_v24  ;;  %2923 = vmatmul.msk.bf16.vlgmr.msrb.gmra.mxu1 %vm1361_vm1, %v2120_v25 }
 0x532   : > { %v1980_v30 = vpop.f32.mrf.mxu2  ;;  %v2005_v31 = vpop.f32.mrf.mxu3 }
 0x533   : > { %v2040_v36 = vpop.f32.mrf.mxu0  ;;  %v2065_v37 = vpop.f32.mrf.mxu1 }
 0x534   : > { %v2041_v38 = vadd.f32 %v3078_v34, %v2040_v36  ;;  %v2066_v39 = vadd.f32 %v3079_v35, %v2065_v37 }
 0x536   : > { %v2259_v41 = vpack.c.bf16 %v2041_v38, %v2041_v38  ;;  %v2260_v43 = vpack.c.bf16 %v2066_v39, %v2066_v39 }
 0x537   : > { %2924 = vmatmul.msk.bf16.vlgmr.msrb.gmra.mxu2 %vm1361_vm1, %v2121_v32  ;;  %2925 = vmatmul.msk.bf16.vlgmr.msrb.gmra.mxu3 %vm1361_vm1, %v2122_v33 }
 0x538   : > { %v2267_v46 = vsel %vm1503_vm2, %v2259_v41, 0  ;;  %v2286_v47 = vsel %vm1503_vm2, %v2260_v43, 0 }
 0x539   : > { %2276 = vmatpush.bf16.msra.mxu0 %v2267_v46  ;;  %2295 = vmatpush.bf16.msra.mxu1 %v2286_v47 }
 0x53a   : > { %v2090_v44 = vpop.f32.mrf.mxu2  ;;  %v2115_v50 = vpop.f32.mrf.mxu3 }
 0x53b   : > { %v2091_v48 = vadd.f32 %v3080_v40, %v2090_v44  ;;  %v2042_v51 = vpop.f32.mrf.mxu0  ;;  %v2067_v52 = vpop.f32.mrf.mxu1  ;;  %v2116_v53 = vadd.f32 %v3081_v45, %v2115_v50 }
 0x53d   : > { %v2261_v49 = vpack.c.bf16 %v2091_v48, %v2091_v48  ;;  %v2262_v55 = vpack.c.bf16 %v2116_v53, %v2116_v53 }
 0x53f   : > { %v2305_v54 = vsel %vm1503_vm2, %v2261_v49, 0  ;;  %v2324_v56 = vsel %vm1503_vm2, %v2262_v55, 0  ;;  %vm2589_vm2 = vcmask 254976  }
 0x540   : > { %2314 = vmatpush.bf16.msra.mxu2 %v2305_v54  ;;  %2333 = vmatpush.bf16.msra.mxu3 %v2324_v56  ;;  %v1772_v54 = vld [vmem:[%s3603_s10] sm:$0xf]  ;;  %v1774_v56 = vld [vmem:[%s3603_s10 + $0x8] sm:$0xf] }
 0x541   : > { %v2347_v55 = vsel %vm1584_vm5, %v1772_v54, 0 }
 0x542   : > { %v2092_v57 = vpop.f32.mrf.mxu2  ;;  %v2117_v58 = vpop.f32.mrf.mxu3  ;;  %2356 = vmatpush.bf16.msrb.mxu0 %v2347_v55  ;;  %v3013_v55 = vld [vmem:[%s3606_s18 + $0x8] sm:$0xff] }
 0x543   : > { %v1775_v57 = vld [vmem:[%s3603_s10 + $0xc] sm:$0xf]  ;;  %v2385_v58 = vsel %vm1584_vm5, %v1774_v56, 0  ;;  %v3012_v56 = vld [vmem:[%s3606_s18] sm:$0xff] }
 0x544   : > { %2394 = vmatpush.bf16.msrb.mxu2 %v2385_v58 }
 0x5ae   : > { %v2142_v59 = vpop.f32.mrf.mxu0  ;;  %v2161_v60 = vpop.f32.mrf.mxu1 }
 0x5af   : > { %v2203_v62 = vmul.f32 0.35355338, %v2142_v59  ;;  %v2204_v9 = vmul.f32 0.35355338, %v2161_v60  ;;  %v2404_v59 = vsel %vm1584_vm5, %v1775_v57, 0 }
 0x5b0   : > { %2413 = vmatpush.bf16.msrb.mxu3 %v2404_v59  ;;  %v1773_v60 = vld [vmem:[%s3603_s10 + $0x4] sm:$0xf]  ;;  %v3085_v57 = vld [vmem:[%s3609_s7] ss:$0 sm:$0xff] }
 0x5b1   : > { %v2207_v63 = vadd.f32 %v2203_v62, %v1711_v61  ;;  %v2208_v15 = vadd.f32 %v2204_v9, %v1711_v61 }
 0x5b3   : > { %v2211_v0 = vsel %vm1446_vm3, %v2207_v63, -inf  ;;  %v2214_v16 = vsel %vm1446_vm3, %v2208_v15, -inf }
 0x5b4   : > { %2212 = vmax.xlane.f32.xlu0 %v2211_v0 }
 0x5b6   : > { %v2144_v1 = vpop.f32.mrf.mxu0  ;;  %v2163_v2 = vpop.f32.mrf.mxu1 }
 0x5ba   : > { %v2180_v3 = vpop.f32.mrf.mxu2  ;;  %v2199_v4 = vpop.f32.mrf.mxu3 }
 0x5bb   : > { %v2205_v5 = vmul.f32 0.35355338, %v2180_v3  ;;  %v2206_v6 = vmul.f32 0.35355338, %v2199_v4 }
 0x5bd   : > { %v2210_v7 = vadd.f32 %v2206_v6, %v1711_v61  ;;  %v2209_v8 = vadd.f32 %v2205_v5, %v1711_v61  ;;  %v2366_v61 = vsel %vm1584_vm5, %v1773_v60, 0 }
 0x5be   : > { %2375 = vmatpush.bf16.msrb.mxu1 %v2366_v61 }
 0x5bf   : > { %v2220_v10 = vsel %vm1446_vm3, %v2210_v7, -inf  ;;  %v2217_v11 = vsel %vm1446_vm3, %v2209_v8, -inf }
 0x5c0   : > { %2221 = vmax.xlane.f32.xlu2 %v2220_v10  ;;  %2218 = vmax.xlane.f32.xlu1 %v2217_v11 }
 0x5c2   : > { %v2182_v13 = vpop.f32.mrf.mxu2  ;;  %v2201_v14 = vpop.f32.mrf.mxu3 }
 0x5c8   : > { %2215 = vmax.xlane.f32.xlu1 %v2214_v16 }
 0x627   : > { %v2213_v17 = vpop.xlane.xlu0 %2212 }
 0x628   : > { %v2223_v18 = vsub.f32 %v2207_v63, %v2213_v17 }
 0x62a   : > { %v2227_v19 = vmul.f32 1.442695, %v2223_v18 }
 0x62c   : > { %3109 = vpow2.f32 %v2227_v19 }
 0x632   : > { %v3110_v20 = vpop.eup %3109 }
 0x633   : > { %v2222_v21 = vpop.xlane.xlu2 %2221  ;;  %v2219_v22 = vpop.xlane.xlu1 %2218  ;;  %v2235_v23 = vsel %vm1446_vm3, %v3110_v20, 0.0 }
 0x634   : > { %v2226_v24 = vsub.f32 %v2210_v7, %v2222_v21  ;;  %v2225_v25 = vsub.f32 %v2209_v8, %v2219_v22  ;;  %2236 = vadd.xlane.f32.xlu1 %v2235_v23  ;;  %v3082_v21 = vld [vmem:[%s3604_s11] ss:$0 sm:$0xff]  ;;  %s942_s11 = scalar_lea.vmem %s3326_s17, %s3344_s0 }
 0x636   : > { %v2233_v26 = vmul.f32 1.442695, %v2226_v24  ;;  %v2231_v27 = vmul.f32 1.442695, %v2225_v25 }
 0x638   : > { %3111 = vpow2.f32 %v2233_v26 }
 0x639   : > { %3113 = vpow2.f32 %v2231_v27 }
 0x63b   : > { %v2216_v28 = vpop.xlane.xlu1 %2215 }
 0x63c   : > { %v2224_v29 = vsub.f32 %v2208_v15, %v2216_v28 }
 0x63e   : > { %v3112_v30 = vpop.eup %3111  ;;  %v2229_v31 = vmul.f32 1.442695, %v2224_v29 }
 0x63f   : > { %v3114_v32 = vpop.eup %3113  ;;  %v2244_v33 = vsel %vm1446_vm3, %v3112_v30, 0.0 }
 0x640   : > { %3115 = vpow2.f32 %v2229_v31  ;;  %v2241_v34 = vsel %vm1446_vm3, %v3114_v32, 0.0  ;;  %2245 = vadd.xlane.f32.xlu0 %v2244_v33 }
 0x641   : > { %2242 = vadd.xlane.f32.xlu2 %v2241_v34 }
 0x646   : > { %v3116_v35 = vpop.eup %3115 }
 0x647   : > { %v2238_v36 = vsel %vm1446_vm3, %v3116_v35, 0.0 }
 0x649   : > { %2239 = vadd.xlane.f32.xlu2 %v2238_v36  ;;  %v3010_v36 = vld [vmem:[%s3605_s16] sm:$0xff] }
 0x6a7   : > { %v2237_v37 = vpop.xlane.xlu1 %2236 }
 0x6a8   : > { %3117 = vrcp.f32 %v2237_v37  ;;  %v3015_v37 = vld [vmem:[%s3606_s18 + $0x18] sm:$0xff] }
 0x6ae   : > { %v3118_v38 = vpop.eup %3117 }
 0x6af   : > { %v2251_v39 = vmul.f32 %v3118_v38, %v3110_v20 }
 0x6b1   : > { %v2255_v40 = vpack.c.bf16 %v2251_v39, %v2251_v39  ;;  %v3014_v39 = vld [vmem:[%s3606_s18 + $0x10] sm:$0xff] }
 0x6b3   : > { %2926 = vmatmul.msk.bf16.vlgmr.msra.gmra.mxu0 %vm1499_vm4, %v2255_v40  ;;  %v2246_v41 = vpop.xlane.xlu0 %2245 }
 0x6b4   : > { %v2243_v43 = vpop.xlane.xlu2 %2242  ;;  %3119 = vrcp.f32 %v2246_v41 }
 0x6b5   : > { %3121 = vrcp.f32 %v2243_v43 }
 0x6ba   : > { %v3120_v44 = vpop.eup %3119 }
 0x6bb   : > { %v3122_v45 = vpop.eup %3121  ;;  %v2254_v46 = vmul.f32 %v3120_v44, %v3112_v30 }
 0x6bc   : > { %v2253_v47 = vmul.f32 %v3122_v45, %v3114_v32  ;;  %v2240_v48 = vpop.xlane.xlu2 %2239 }
 0x6bd   : > { %v2258_v49 = vpack.c.bf16 %v2254_v46, %v2254_v46  ;;  %3123 = vrcp.f32 %v2240_v48  ;;  %v3083_v48 = vld [vmem:[%s3607_s22] ss:$0 sm:$0xff] }
 0x6be   : > { %v2257_v50 = vpack.c.bf16 %v2253_v47, %v2253_v47 }
 0x6bf   : > { %2929 = vmatmul.msk.bf16.vlgmr.msra.gmra.mxu3 %vm1499_vm4, %v2258_v49 }
 0x6c0   : > { %2928 = vmatmul.msk.bf16.vlgmr.msra.gmra.mxu2 %vm1499_vm4, %v2257_v50  ;;  %v3084_v50 = vld [vmem:[%s3608_s26] ss:$0 sm:$0xff] }
 0x6c3   : > { %v3124_v51 = vpop.eup %3123 }
 0x6c4   : > { %v2252_v52 = vmul.f32 %v3124_v51, %v3116_v35  ;;  %v3011_v35 = vld [vmem:[%s3605_s16 + $0x8] sm:$0xff] }
 0x6c5   : > { %2493 = vmatpush.bf16.msra.mxu0 %v3011_v35 }
 0x6c6   : > { %v2256_v53 = vpack.c.bf16 %v2252_v52, %v2252_v52 }
 0x6c8   : > { %2927 = vmatmul.msk.bf16.vlgmr.msra.gmra.mxu1 %vm1499_vm4, %v2256_v53 }
 0x6c9   : > { %2494 = vmatpush.bf16.msra.mxu0 %v3010_v36  ;;  %2546 = vmatpush.bf16.msra.mxu1 %v3015_v37 }
 0x6cd   : > { %2547 = vmatpush.bf16.msra.mxu1 %v3014_v39 }
 0x6d1   : > { %2548 = vmatpush.bf16.msra.mxu1 %v3013_v55 }
 0x6d5   : > { %2549 = vmatpush.bf16.msra.mxu1 %v3012_v56 }
 0x730   : > { %v2278_v62 = vpop.f32.mrf.mxu0 }
 0x731   : > { %v2339_v63 = vpack.c.bf16 %v2278_v62, %v2278_v62 }
 0x733   : > { %2930 = vmatmul.msk.bf16.vlgmr.msrb.gmra.mxu0 %vm1361_vm1, %v2339_v63  ;;  %v3086_v63 = vld [vmem:[%s3311_s9] ss:$0 sm:$0xff] }
 0x738   : > { %v2280_v0 = vpop.f32.mrf.mxu0 }
 0x742   : > { %v2335_v1 = vpop.f32.mrf.mxu3 }
 0x743   : > { %v2316_v2 = vpop.f32.mrf.mxu2  ;;  %v2342_v3 = vpack.c.bf16 %v2335_v1, %v2335_v1 }
 0x744   : > { %v2341_v4 = vpack.c.bf16 %v2316_v2, %v2316_v2 }
 0x745   : > { %v2297_v5 = vpop.f32.mrf.mxu1  ;;  %2933 = vmatmul.msk.bf16.vlgmr.msrb.gmra.mxu3 %vm1361_vm1, %v2342_v3 }
 0x746   : > { %v2340_v6 = vpack.c.bf16 %v2297_v5, %v2297_v5  ;;  %2932 = vmatmul.msk.bf16.vlgmr.msrb.gmra.mxu2 %vm1361_vm1, %v2341_v4 }
 0x748   : > { %2931 = vmatmul.msk.bf16.vlgmr.msrb.gmra.mxu1 %vm1361_vm1, %v2340_v6 }
 0x74a   : > { %v2337_v7 = vpop.f32.mrf.mxu3 }
 0x74b   : > { %v2318_v8 = vpop.f32.mrf.mxu2 }
 0x74d   : > { %v2299_v9 = vpop.f32.mrf.mxu1 }
 0x7b0   : > { %v2358_v10 = vpop.f32.mrf.mxu0 }
 0x7b1   : > { %v2419_v15 = vsel %vm1658_vm6, %v2358_v10, 0.0 }
 0x7b8   : > { %v2360_v11 = vpop.f32.mrf.mxu0 }
 0x7c5   : > { %v2377_v13 = vpop.f32.mrf.mxu1 }
 0x7c6   : > { %v2420_v14 = vsel %vm1658_vm6, %v2377_v13, 0.0 }
 0x7c7   : > { %v2421_v17 = vadd.f32 %v2420_v14, %v2419_v15 }
 0x7c8   : > { %v2415_v16 = vpop.f32.mrf.mxu3 }
 0x7c9   : > { %v2396_v18 = vpop.f32.mrf.mxu2  ;;  %v2424_v22 = vsel %vm1658_vm6, %v2415_v16, 0.0 }
 0x7ca   : > { %v2422_v19 = vsel %vm1658_vm6, %v2396_v18, 0.0 }
 0x7cb   : > { %v2423_v20 = vadd.f32 %v2422_v19, %v2421_v17 }
 0x7cd   : > { %v2425_v23 = vadd.f32 %v2424_v22, %v2423_v20  ;;  %v2379_v24 = vpop.f32.mrf.mxu1  ;;  %v3087_v20 = vld [vmem:[%s3316_s27] ss:$0 sm:$0xff] }
 0x7ce   : > { %v3088_v22 = vld [vmem:[%s3321_s4] ss:$0 sm:$0xff] }
 0x7cf   : > { %v2429_v25 = vadd.f32 %v3082_v21, %v2425_v23 }
 0x7d0   : > { %v2417_v26 = vpop.f32.mrf.mxu3 }
 0x7d1   : > { %v2398_v27 = vpop.f32.mrf.mxu2  ;;  %v2430_v28 = vadd.f32 %v2429_v25, %v3469_v42 }
 0x7d3   : > { %v2433_v29 = vsel %vm1658_vm6, %v2430_v28, 0.0 }
 0x7d4   : > { %2434 = vadd.xlane.f32.xlu0 %v2433_v29 }
 0x847   : > { %v2435_v30 = vpop.xlane.xlu0 %2434 }
 0x848   : > { %v2436_v31 = vmul.f32 %v2435_v30, %v3446_v12 }
 0x84a   : > { %v2437_v32 = vsub.f32 %v2430_v28, %v2436_v31 }
 0x84c   : > { %v2438_v33 = vmul.f32 %v2437_v32, %v2437_v32 }
 0x84e   : > { %v2439_v34 = vsel %vm1658_vm6, %v2438_v33, 0.0 }
 0x84f   : > { %2440 = vadd.xlane.f32.xlu1 %v2439_v34 }
 0x8c2   : > { %v2441_v38 = vpop.xlane.xlu1 %2440 }
 0x8c3   : > { %v2442_v42 = vmul.f32 %v2441_v38, %v3446_v12 }
 0x8c5   : > { %v2443_v40 = vadd.f32 1e-05, %v2442_v42 }
 0x8c7   : > { %3125 = vrsqrt.f32 %v2443_v40  ;;  %vm2450_vm12 = vweird.f32 %v2443_v40 }
 0x8cd   : > { %v3126_v41 = vpop.eup %3125 }
 0x8ce   : > { %v2445_v43 = vmul.f32 %v3126_v41, %v2443_v40  ;;  %vm2451_vm11 = vweird.f32 %v3126_v41 }
 0x8cf   : > { %vm2452_vm13 = vmor %vm2450_vm12, %vm2451_vm11 }
 0x8d0   : > { %v2446_v44 = vmul.f32 %v3126_v41, %v2445_v43 }
 0x8d2   : > { %v2447_v45 = vmul.f32 0.5, %v2446_v44 }
 0x8d4   : > { %v2448_v46 = vsub.f32 1.5, %v2447_v45 }
 0x8d6   : > { %v2449_v47 = vmul.f32 %v3126_v41, %v2448_v46 }
 0x8d8   : > { %v2453_v49 = vsel %vm2452_vm13, %v3126_v41, %v2449_v47 }
 0x8d9   : > { %v2454_v51 = vmul.f32 %v2453_v49, %v2437_v32 }
 0x8db   : > { %v2458_v52 = vmul.f32 %v3083_v48, %v2454_v51 }
 0x8dd   : > { %v2462_v53 = vadd.f32 %v3084_v50, %v2458_v52 }
 0x8df   : > { %v2463_v54 = vpack.c.bf16 %v2462_v53, %v2462_v53 }
 0x8e1   : > { %2942 = vmatmul.msk.bf16.vlgmr.msra.gmra.mxu0 %vm1037_vm0, %v2463_v54 }
 0x95e   : > { %v2496_v58 = vpop.f32.mrf.mxu0 }
 0x95f   : > { %v2497_v59 = vadd.f32 %v3085_v57, %v2496_v58 }
 0x961   : > { %v2500_v60 = vmax.f32 %v2497_v59, 0.0 }
 0x963   : > { %v2501_v61 = vpack.c.bf16 %v2500_v60, %v2500_v60 }
 0x965   : > { %2959 = vmatmul.msk.bf16.vlgmr.msra.gmra.mxu1 %vm2538_vm14, %v2501_v61 }
 0x966   : > { %v2498_v62 = vpop.f32.mrf.mxu0 }
 0x9e2   : > { %v2551_v0 = vpop.f32.mrf.mxu1 }
 0x9e3   : > { %v2552_v1 = vadd.f32 %v3086_v63, %v2551_v0 }
 0x9e5   : > { %v2555_v2 = vadd.f32 %v2552_v1, %v2462_v53 }
 0x9e7   : > { %v2558_v3 = vsel %vm1658_vm6, %v2555_v2, 0.0 }
 0x9e8   : > { %2559 = vadd.xlane.f32.xlu2 %v2558_v3 }
 0x9ea   : > { %v2553_v4 = vpop.f32.mrf.mxu1 }
 0xa5b   : > { %v2560_v5 = vpop.xlane.xlu2 %2559 }
 0xa5c   : > { %v2561_v6 = vmul.f32 %v2560_v5, %v3446_v12 }
 0xa5e   : > { %v2562_v7 = vsub.f32 %v2555_v2, %v2561_v6 }
 0xa60   : > { %v2563_v8 = vmul.f32 %v2562_v7, %v2562_v7 }
 0xa62   : > { %v2564_v9 = vsel %vm1658_vm6, %v2563_v8, 0.0 }
 0xa63   : > { %2565 = vadd.xlane.f32.xlu0 %v2564_v9 }
 0xad6   : > { %v2566_v10 = vpop.xlane.xlu0 %2565 }
 0xad7   : > { %v2567_v11 = vmul.f32 %v2566_v10, %v3446_v12 }
 0xad9   : > { %v2568_v13 = vadd.f32 1e-05, %v2567_v11 }
 0xadb   : > { %3127 = vrsqrt.f32 %v2568_v13  ;;  %vm2575_vm0 = vweird.f32 %v2568_v13 }
 0xae1   : > { %v3128_v14 = vpop.eup %3127 }
 0xae2   : > { %v2570_v15 = vmul.f32 %v3128_v14, %v2568_v13  ;;  %vm2576_vm15 = vweird.f32 %v3128_v14 }
 0xae3   : > { %vm2577_vm1 = vmor %vm2575_vm0, %vm2576_vm15 }
 0xae4   : > { %v2571_v16 = vmul.f32 %v3128_v14, %v2570_v15 }
 0xae6   : > { %v2572_v17 = vmul.f32 0.5, %v2571_v16 }
 0xae8   : > { %v2573_v18 = vsub.f32 1.5, %v2572_v17 }
 0xaea   : > { %v2574_v19 = vmul.f32 %v3128_v14, %v2573_v18 }
 0xaec   : > { %v2578_v21 = vsel %vm2577_vm1, %v3128_v14, %v2574_v19 }
 0xaed   : > { %v2579_v23 = vmul.f32 %v2578_v21, %v2562_v7 }
 0xaef   : > { %v2583_v24 = vmul.f32 %v3087_v20, %v2579_v23 }
 0xaf1   : > { %v2587_v25 = vadd.f32 %v3088_v22, %v2583_v24 }
 0xaf3   : > { %v2588_v12 = vpack.c.bf16 %v2587_v25, %v2587_v25 }
 0xaf5   : > { %2590 = vst.msk [vmem:[%s942_s11] sm:$0x3] %vm2589_vm2, %v2588_v12 }
 0xaf6 PF: > { %s71_s15 = sadd.s32 1, %s3135_s15  }
 0xaf7   : > { %p68_p4 = scmp.ge.s32.totalorder %s71_s15, 6  }
 0xaf9   :  { %70 = sbr.rel (!%p68_p4) target bundleno = 51 (0x33), region = 203 }

</bundles_post_ra>
